<compile_context>
chip_gen: v6e
topology: v6e:2x2x1
jax: 0.10.0
libtpu: 0.0.40
codegen_flags: <defaults>
</compile_context>

<pallas_src>
import functools

import jax
import jax.numpy as jnp
from jax.experimental import pallas as pl
from jax.experimental.pallas import tpu as pltpu


def _head_kernel_fused(x_ref, w_ref, b_ref, o_ref, *, inv_hw):
    """Single-step fused global-average-pool + Linear head.

    x_ref: (tb, C, HW)  NCHW feature slab for this batch tile
    w_ref: (C, N)       fc weight (transposed: in_features x classes)
    b_ref: (1, N)       fc bias
    o_ref: (tb, N)      logits
    """
    # Pool over the spatial (lane) axis; result (tb, C) has C on lanes.
    pooled = jnp.sum(x_ref[...].astype(jnp.float32), axis=-1) * inv_hw
    o_ref[...] = (
        jnp.dot(pooled, w_ref[...].astype(jnp.float32),
                preferred_element_type=jnp.float32)
        + b_ref[...].astype(jnp.float32)
    ).astype(o_ref.dtype)


def _head_kernel_ktiled(x_ref, w_ref, b_ref, o_ref, acc_ref, *, inv_hw):
    """Fallback: channel-reduction-tiled pool + Linear (for very large B*HW).

    x_ref:   (B, tk, HW)  feature slab for this channel tile
    w_ref:   (tk, N)      fc weight tile
    b_ref:   (1, N)       fc bias
    o_ref:   (B, N)       logits (resident across the reduction axis)
    acc_ref: (B, N) f32   VMEM accumulator
    """
    k = pl.program_id(0)

    @pl.when(k == 0)
    def _():
        acc_ref[...] = jnp.zeros_like(acc_ref)

    pooled = jnp.sum(x_ref[...].astype(jnp.float32), axis=-1) * inv_hw   # (B, tk)
    acc_ref[...] += jnp.dot(pooled, w_ref[...].astype(jnp.float32),
                            preferred_element_type=jnp.float32)

    @pl.when(k == pl.num_programs(0) - 1)
    def _():
        o_ref[...] = (acc_ref[...] + b_ref[...].astype(jnp.float32)).astype(o_ref.dtype)


def baseline_head_forward(x_nchw, w_t, b, *, vmem_budget_bytes=24 * 1024 * 1024):
    """x_nchw: (B, C, H, W) backbone features; w_t: (C, N); b: (N,) -> (B, N) logits."""
    B, C, H, W = x_nchw.shape
    Cw, N = w_t.shape
    assert Cw == C
    HW = H * W

    # Plain NCHW reshape — no transpose, no extra HBM pass.
    x = x_nchw.reshape(B, C, HW)
    b2 = b.reshape(1, N)
    inv_hw = 1.0 / float(HW)

    x_item = jnp.dtype(x.dtype).itemsize
    w_item = jnp.dtype(w_t.dtype).itemsize
    w_bytes = C * N * w_item
    per_row_bytes = C * HW * x_item          # one batch row of features

    def _compiler_params(pipeline_bytes, semantics):
        # Explicit scoped-VMEM limit: clears v5e's 16 MiB default for bigger
        # slabs, clamped well under v7x's 64 MiB physical VMEM.
        limit = int(min(48 * 1024 * 1024, max(16 * 1024 * 1024, pipeline_bytes)))
        return pltpu.CompilerParams(
            dimension_semantics=semantics,
            vmem_limit_bytes=limit,
        )

    # ---- Preferred path: whole problem (per batch tile) in VMEM, one step. ----
    # Batch tile: keep the full batch unless it is big enough to split (multiple
    # of 8 on the sublane axis) — splitting shards work across v7x's two
    # TensorCores and halves the per-step VMEM footprint.
    tb = B
    if B >= 16 and B % 8 == 0:
        tb = 8
        while (tb * 2 <= B // 2 and B % (tb * 2) == 0
               and 2 * (tb * 2) * per_row_bytes + 2 * w_bytes <= vmem_budget_bytes):
            tb *= 2

    fused_bytes = 2 * tb * per_row_bytes + 2 * w_bytes   # double-buffered inputs
    if fused_bytes <= vmem_budget_bytes:
        kernel = functools.partial(_head_kernel_fused, inv_hw=inv_hw)
        return pl.pallas_call(
            kernel,
            out_shape=jax.ShapeDtypeStruct((B, N), x_nchw.dtype),
            grid_spec=pltpu.PrefetchScalarGridSpec(
                num_scalar_prefetch=0,
                grid=(B // tb,),
                in_specs=[
                    pl.BlockSpec((tb, C, HW), lambda i: (i, 0, 0)),   # NCHW slab
                    pl.BlockSpec((C, N), lambda i: (0, 0)),           # full weight
                    pl.BlockSpec((1, N), lambda i: (0, 0)),           # bias
                ],
                out_specs=pl.BlockSpec((tb, N), lambda i: (i, 0)),
            ),
            compiler_params=_compiler_params(fused_bytes, ("parallel",)),
        )(x, w_t, b2)

    # ---- Fallback: channel-reduction grid with large tiles (huge B*HW). ----
    candidates = [c for c in (4096, 2048, 1024, 512, 256, 128, 64, 32, 16, 8)
                  if C % c == 0]
    tk = candidates[-1]
    for c in candidates:
        if 2 * B * c * HW * x_item + 2 * c * N * w_item <= vmem_budget_bytes:
            tk = c
            break
    ktiled_bytes = 2 * B * tk * HW * x_item + 2 * tk * N * w_item

    kernel = functools.partial(_head_kernel_ktiled, inv_hw=inv_hw)
    return pl.pallas_call(
        kernel,
        out_shape=jax.ShapeDtypeStruct((B, N), x_nchw.dtype),
        grid_spec=pltpu.PrefetchScalarGridSpec(
            num_scalar_prefetch=0,
            grid=(C // tk,),
            in_specs=[
                pl.BlockSpec((B, tk, HW), lambda k: (0, k, 0)),   # channel tile (NCHW)
                pl.BlockSpec((tk, N), lambda k: (k, 0)),          # weight tile
                pl.BlockSpec((1, N), lambda k: (0, 0)),           # bias
            ],
            out_specs=pl.BlockSpec((B, N), lambda k: (0, 0)),     # accumulator output
            scratch_shapes=[pltpu.VMEM((B, N), jnp.float32)],
        ),
        compiler_params=_compiler_params(ktiled_bytes, ("arbitrary",)),
    )(x, w_t, b2)


if __name__ == "__main__":
    # Small shapes consistent with the resnet50 head: fc in_features = 2048,
    # num_classes = 30; backbone feature map spatial kept tiny (4x4), batch 2.
    B, C, H, W = 2, 2048, 4, 4
    NUM_CLASSES = 30

    key = jax.random.PRNGKey(0)
    kx, kw, kb = jax.random.split(key, 3)

    x = jax.random.normal(kx, (B, C, H, W), dtype=jnp.float32)
    # nn.Linear(2048, 30): weight (30, 2048), bias (30,). Store weight transposed.
    w = jax.random.normal(kw, (NUM_CLASSES, C), dtype=jnp.float32) * 0.02
    b = jax.random.normal(kb, (NUM_CLASSES,), dtype=jnp.float32) * 0.02
    w_t = w.T  # (C, NUM_CLASSES)

    logits = baseline_head_forward(x, w_t, b)
    logits = jax.block_until_ready(logits)

    # Pure-JAX reference: global avg pool over H,W then linear.
    pooled_ref = jnp.mean(x, axis=(2, 3))                 # (B, C)
    logits_ref = pooled_ref @ w_t + b                     # (B, NUM_CLASSES)

    assert logits.shape == (B, NUM_CLASSES)
    assert jnp.allclose(logits, logits_ref, atol=1e-4, rtol=1e-4)

    print("KERNEL_OK")
</pallas_src>

<mosaic_0001>
module attributes {stable_mosaic.version = 11 : i64} {
  func.func @_head_kernel_fused(%arg0: i32, %arg1: memref<2x2048x16xf32, #tpu.memory_space<vmem>>, %arg2: memref<2048x30xf32, #tpu.memory_space<vmem>>, %arg3: memref<1x30xf32, #tpu.memory_space<vmem>>, %arg4: memref<2x30xf32, #tpu.memory_space<vmem>>) attributes {dimension_semantics = [#tpu.dimension_semantics<parallel>], iteration_bounds = array<i64: 1>, scalar_prefetch = 0 : i64, scratch_operands = 0 : i64, tpu.core_type = #tpu.core_type<tc>, window_params = [{transform_indices = @transform_0, window_bounds = array<i64: 2, 2048, 16>}, {pipeline_mode = #tpu.pipeline_mode<synchronous>, transform_indices = @transform_1, window_bounds = array<i64: 2048, 30>}, {pipeline_mode = #tpu.pipeline_mode<synchronous>, transform_indices = @transform_2, window_bounds = array<i64: 1, 30>}, {transform_indices = @transform_3, window_bounds = array<i64: 2, 30>}]} {
    %c0 = arith.constant 0 : index
    %c0_0 = arith.constant 0 : index
    %c0_1 = arith.constant 0 : index
    %0 = vector.load %arg1[%c0, %c0_0, %c0_1] : memref<2x2048x16xf32, #tpu.memory_space<vmem>>, vector<2x2048x16xf32>
    %cst = arith.constant dense<0.000000e+00> : vector<2x2048xf32>
    %1 = vector.multi_reduction <add>, %0, %cst [2] : vector<2x2048x16xf32> to vector<2x2048xf32>
    %cst_2 = arith.constant 6.250000e-02 : f32
    %2 = vector.broadcast %cst_2 : f32 to vector<2x2048xf32>
    %3 = arith.mulf %1, %2 : vector<2x2048xf32>
    %c0_3 = arith.constant 0 : index
    %c0_4 = arith.constant 0 : index
    %4 = vector.load %arg2[%c0_3, %c0_4] : memref<2048x30xf32, #tpu.memory_space<vmem>>, vector<2048x30xf32>
    %cst_5 = arith.constant dense<0.000000e+00> : vector<2x30xf32>
    %5 = tpu.matmul %3, %4, %cst_5 {dimension_numbers = #tpu.dot_dimension_numbers<[1], [0], [0], [1], [0, 0, 1, 1], [], []>} : vector<2x2048xf32>, vector<2048x30xf32>, vector<2x30xf32> -> vector<2x30xf32>
    %c0_6 = arith.constant 0 : index
    %c0_7 = arith.constant 0 : index
    %6 = vector.load %arg3[%c0_6, %c0_7] : memref<1x30xf32, #tpu.memory_space<vmem>>, vector<1x30xf32>
    %7 = vector.broadcast %6 : vector<1x30xf32> to vector<2x30xf32>
    %8 = arith.addf %5, %7 : vector<2x30xf32>
    %c0_8 = arith.constant 0 : index
    %c0_9 = arith.constant 0 : index
    %9 = vector.load %arg4[%c0_8, %c0_9] : memref<2x30xf32, #tpu.memory_space<vmem>>, vector<2x30xf32>
    tpu.vector_store %arg4[%c0_8, %c0_9], %8 {strides = array<i32>} : memref<2x30xf32, #tpu.memory_space<vmem>>, vector<2x30xf32>,
    return
  }
  func.func @transform_0(%arg0: i32) -> (i32, i32, i32) {
    %c0_i32 = arith.constant 0 : i32
    %c0_i32_0 = arith.constant 0 : i32
    %c0_i32_1 = arith.constant 0 : i32
    return %arg0, %c0_i32, %c0_i32_0 : i32, i32, i32
  }
  func.func @transform_1(%arg0: i32) -> (i32, i32) {
    %c0_i32 = arith.constant 0 : i32
    %c0_i32_0 = arith.constant 0 : i32
    %c0_i32_1 = arith.constant 0 : i32
    return %c0_i32, %c0_i32_0 : i32, i32
  }
  func.func @transform_2(%arg0: i32) -> (i32, i32) {
    %c0_i32 = arith.constant 0 : i32
    %c0_i32_0 = arith.constant 0 : i32
    %c0_i32_1 = arith.constant 0 : i32
    return %c0_i32, %c0_i32_0 : i32, i32
  }
  func.func @transform_3(%arg0: i32) -> (i32, i32) {
    %c0_i32 = arith.constant 0 : i32
    %c0_i32_0 = arith.constant 0 : i32
    return %arg0, %c0_i32 : i32, i32
  }
}

</mosaic_0001>

<bundles_post_ra>
// kernel: tpu_custom_call.1
= control target key start
LH: loop header
LB: loop body
LE: loop exit
PB: predicated region body
PF: predicated region fallthrough
CT: control target
= control target key end

     0   :  { %vm527_vm0 = vcmask 130048   ;;  %s11124_s0 = inlined_call_operand.vmem [shape: f32[2,2048,16], index: 0, kind: input, shape index: {}]   ;;  %s11125_s1 = inlined_call_operand.vmem [shape: f32[2048,30], index: 1, kind: input, shape index: {}]   ;;  %s11126_s2 = inlined_call_operand.vmem [shape: f32[1,30], index: 2, kind: input, shape index: {}]   ;;  %s11127_s3 = inlined_call_operand.hbm [shape: f32[2,30], index: 3, kind: output, shape index: {}]  }
   0x1   :  { %v17_v0 = vld [vmem:[%s11124_s0 + $0x10] sm:$0xff]  ;;  %v15_v1 = vld [vmem:[%s11124_s0] sm:$0xff]  ;;  %v18_v2 = vld [vmem:[%s11124_s0 + $0x18] sm:$0xff] }
   0x2   :  { %v534_v3 = vsel %vm527_vm0, %v17_v0, 0.0  ;;  %v528_v4 = vsel %vm527_vm0, %v15_v1, 0.0  ;;  %v16_v5 = vld [vmem:[%s11124_s0 + $0x8] sm:$0xff]  ;;  %v537_v6 = vsel %vm527_vm0, %v18_v2, 0.0  ;;  %v19_v9 = vld [vmem:[%s11124_s0 + $0x20] sm:$0xff]  ;;  %v22_v12 = vld [vmem:[%s11124_s0 + $0x38] sm:$0xff] }
   0x3   :  { %535 = vadd.xlane.f32.xlu1 %v534_v3  ;;  %529 = vadd.xlane.f32.xlu0 %v528_v4  ;;  %v531_v7 = vsel %vm527_vm0, %v16_v5, 0.0  ;;  %v20_v8 = vld [vmem:[%s11124_s0 + $0x28] sm:$0xff]  ;;  %v540_v11 = vsel %vm527_vm0, %v19_v9, 0.0  ;;  %v21_v13 = vld [vmem:[%s11124_s0 + $0x30] sm:$0xff]  ;;  %v549_v14 = vsel %vm527_vm0, %v22_v12, 0.0  ;;  %v23_v17 = vld [vmem:[%s11124_s0 + $0x40] sm:$0xff] }
   0x4   :  { %v543_v10 = vsel %vm527_vm0, %v20_v8, 0.0  ;;  %v546_v15 = vsel %vm527_vm0, %v21_v13, 0.0  ;;  %v24_v16 = vld [vmem:[%s11124_s0 + $0x48] sm:$0xff]  ;;  %v552_v19 = vsel %vm527_vm0, %v23_v17, 0.0  ;;  %v26_v20 = vld [vmem:[%s11124_s0 + $0x58] sm:$0xff]  ;;  %v25_v21 = vld [vmem:[%s11124_s0 + $0x50] sm:$0xff] }
   0x5   :  { %v555_v18 = vsel %vm527_vm0, %v24_v16, 0.0  ;;  %v561_v22 = vsel %vm527_vm0, %v26_v20, 0.0  ;;  %v558_v23 = vsel %vm527_vm0, %v25_v21, 0.0  ;;  %v28_v24 = vld [vmem:[%s11124_s0 + $0x68] sm:$0xff]  ;;  %v27_v25 = vld [vmem:[%s11124_s0 + $0x60] sm:$0xff]  ;;  %v30_v28 = vld [vmem:[%s11124_s0 + $0x78] sm:$0xff] }
   0x6   :  { %v567_v26 = vsel %vm527_vm0, %v28_v24, 0.0  ;;  %v564_v27 = vsel %vm527_vm0, %v27_v25, 0.0  ;;  %v29_v29 = vld [vmem:[%s11124_s0 + $0x70] sm:$0xff]  ;;  %v573_v30 = vsel %vm527_vm0, %v30_v28, 0.0 }
   0x7   :  { %538 = vadd.xlane.f32.xlu1 %v537_v6  ;;  %532 = vadd.xlane.f32.xlu0 %v531_v7  ;;  %v570_v31 = vsel %vm527_vm0, %v29_v29, 0.0 }
   0xb   :  { %544 = vadd.xlane.f32.xlu1 %v543_v10  ;;  %541 = vadd.xlane.f32.xlu0 %v540_v11 }
   0xf   :  { %550 = vadd.xlane.f32.xlu1 %v549_v14  ;;  %547 = vadd.xlane.f32.xlu0 %v546_v15 }
  0x13   :  { %556 = vadd.xlane.f32.xlu1 %v555_v18  ;;  %553 = vadd.xlane.f32.xlu0 %v552_v19 }
  0x17   :  { %562 = vadd.xlane.f32.xlu1 %v561_v22  ;;  %559 = vadd.xlane.f32.xlu0 %v558_v23 }
  0x1b   :  { %568 = vadd.xlane.f32.xlu1 %v567_v26  ;;  %565 = vadd.xlane.f32.xlu0 %v564_v27 }
  0x1c   :  { %8 = vsyncpa [#allocation3], 0  ;;  %v32_v32 = vld [vmem:[%s11124_s0 + $0x88] sm:$0xff]  ;;  %v31_v33 = vld [vmem:[%s11124_s0 + $0x80] sm:$0xff]  ;;  %vm3362_vm1 = vcmask 130112   ;;  %vm3369_vm2 = vcmask 195712  }
  0x1d   :  { %v579_v34 = vsel %vm527_vm0, %v32_v32, 0.0  ;;  %v576_v35 = vsel %vm527_vm0, %v31_v33, 0.0  ;;  %v34_v36 = vld [vmem:[%s11124_s0 + $0x98] sm:$0xff]  ;;  %v33_v37 = vld [vmem:[%s11124_s0 + $0x90] sm:$0xff]  ;;  %v36_v40 = vld [vmem:[%s11124_s0 + $0xa8] sm:$0xff]  ;;  %vm3376_vm3 = vcmask 261312  }
  0x1e   :  { %v585_v38 = vsel %vm527_vm0, %v34_v36, 0.0  ;;  %v582_v39 = vsel %vm527_vm0, %v33_v37, 0.0  ;;  %v35_v41 = vld [vmem:[%s11124_s0 + $0xa0] sm:$0xff]  ;;  %v591_v42 = vsel %vm527_vm0, %v36_v40, 0.0  ;;  %v38_v44 = vld [vmem:[%s11124_s0 + $0xb8] sm:$0xff]  ;;  %v37_v45 = vld [vmem:[%s11124_s0 + $0xb0] sm:$0xff] }
  0x1f   :  { %574 = vadd.xlane.f32.xlu1 %v573_v30  ;;  %571 = vadd.xlane.f32.xlu0 %v570_v31  ;;  %v588_v43 = vsel %vm527_vm0, %v35_v41, 0.0  ;;  %v597_v46 = vsel %vm527_vm0, %v38_v44, 0.0  ;;  %v594_v47 = vsel %vm527_vm0, %v37_v45, 0.0  ;;  %v40_v48 = vld [vmem:[%s11124_s0 + $0xc8] sm:$0xff]  ;;  %v39_v49 = vld [vmem:[%s11124_s0 + $0xc0] sm:$0xff]  ;;  %v42_v52 = vld [vmem:[%s11124_s0 + $0xd8] sm:$0xff] }
  0x20   :  { %v603_v50 = vsel %vm527_vm0, %v40_v48, 0.0  ;;  %v600_v51 = vsel %vm527_vm0, %v39_v49, 0.0  ;;  %v41_v53 = vld [vmem:[%s11124_s0 + $0xd0] sm:$0xff]  ;;  %v609_v54 = vsel %vm527_vm0, %v42_v52, 0.0  ;;  %v44_v56 = vld [vmem:[%s11124_s0 + $0xe8] sm:$0xff]  ;;  %v43_v57 = vld [vmem:[%s11124_s0 + $0xe0] sm:$0xff] }
  0x21   :  { %v606_v55 = vsel %vm527_vm0, %v41_v53, 0.0  ;;  %v615_v58 = vsel %vm527_vm0, %v44_v56, 0.0  ;;  %v612_v59 = vsel %vm527_vm0, %v43_v57, 0.0  ;;  %v46_v60 = vld [vmem:[%s11124_s0 + $0xf8] sm:$0xff]  ;;  %v45_v61 = vld [vmem:[%s11124_s0 + $0xf0] sm:$0xff]  ;;  %v48_v0 = vld [vmem:[%s11124_s0 + $0x108] sm:$0xff] }
  0x22   :  { %v621_v62 = vsel %vm527_vm0, %v46_v60, 0.0  ;;  %v618_v63 = vsel %vm527_vm0, %v45_v61, 0.0  ;;  %v47_v1 = vld [vmem:[%s11124_s0 + $0x100] sm:$0xff]  ;;  %v627_v2 = vsel %vm527_vm0, %v48_v0, 0.0  ;;  %v50_v4 = vld [vmem:[%s11124_s0 + $0x118] sm:$0xff]  ;;  %v49_v5 = vld [vmem:[%s11124_s0 + $0x110] sm:$0xff] }
  0x23   :  { %580 = vadd.xlane.f32.xlu1 %v579_v34  ;;  %577 = vadd.xlane.f32.xlu0 %v576_v35  ;;  %v624_v3 = vsel %vm527_vm0, %v47_v1, 0.0  ;;  %v633_v6 = vsel %vm527_vm0, %v50_v4, 0.0  ;;  %v630_v7 = vsel %vm527_vm0, %v49_v5, 0.0  ;;  %v52_v8 = vld [vmem:[%s11124_s0 + $0x128] sm:$0xff]  ;;  %v51_v9 = vld [vmem:[%s11124_s0 + $0x120] sm:$0xff]  ;;  %v54_v12 = vld [vmem:[%s11124_s0 + $0x138] sm:$0xff] }
  0x24   :  { %v639_v10 = vsel %vm527_vm0, %v52_v8, 0.0  ;;  %v636_v11 = vsel %vm527_vm0, %v51_v9, 0.0  ;;  %v53_v13 = vld [vmem:[%s11124_s0 + $0x130] sm:$0xff]  ;;  %v645_v14 = vsel %vm527_vm0, %v54_v12, 0.0  ;;  %v56_v16 = vld [vmem:[%s11124_s0 + $0x148] sm:$0xff]  ;;  %v55_v17 = vld [vmem:[%s11124_s0 + $0x140] sm:$0xff]  ;;  %v3351_v8 = vlaneseq }
  0x25   :  { %v642_v15 = vsel %vm527_vm0, %v53_v13, 0.0  ;;  %v651_v18 = vsel %vm527_vm0, %v56_v16, 0.0  ;;  %v648_v19 = vsel %vm527_vm0, %v55_v17, 0.0  ;;  %v58_v20 = vld [vmem:[%s11124_s0 + $0x158] sm:$0xff]  ;;  %v57_v21 = vld [vmem:[%s11124_s0 + $0x150] sm:$0xff]  ;;  %v60_v24 = vld [vmem:[%s11124_s0 + $0x168] sm:$0xff] }
  0x26   :  { %v657_v22 = vsel %vm527_vm0, %v58_v20, 0.0  ;;  %v654_v23 = vsel %vm527_vm0, %v57_v21, 0.0  ;;  %v59_v25 = vld [vmem:[%s11124_s0 + $0x160] sm:$0xff]  ;;  %v663_v26 = vsel %vm527_vm0, %v60_v24, 0.0  ;;  %v62_v28 = vld [vmem:[%s11124_s0 + $0x178] sm:$0xff]  ;;  %v61_v29 = vld [vmem:[%s11124_s0 + $0x170] sm:$0xff] }
  0x27   :  { %586 = vadd.xlane.f32.xlu1 %v585_v38  ;;  %583 = vadd.xlane.f32.xlu0 %v582_v39  ;;  %v660_v27 = vsel %vm527_vm0, %v59_v25, 0.0  ;;  %v669_v30 = vsel %vm527_vm0, %v62_v28, 0.0  ;;  %v666_v31 = vsel %vm527_vm0, %v61_v29, 0.0  ;;  %v64_v32 = vld [vmem:[%s11124_s0 + $0x188] sm:$0xff]  ;;  %v63_v33 = vld [vmem:[%s11124_s0 + $0x180] sm:$0xff]  ;;  %v66_v36 = vld [vmem:[%s11124_s0 + $0x198] sm:$0xff] }
  0x28   :  { %v675_v34 = vsel %vm527_vm0, %v64_v32, 0.0  ;;  %v672_v35 = vsel %vm527_vm0, %v63_v33, 0.0  ;;  %v65_v37 = vld [vmem:[%s11124_s0 + $0x190] sm:$0xff]  ;;  %v681_v38 = vsel %vm527_vm0, %v66_v36, 0.0  ;;  %v68_v40 = vld [vmem:[%s11124_s0 + $0x1a8] sm:$0xff]  ;;  %v67_v41 = vld [vmem:[%s11124_s0 + $0x1a0] sm:$0xff] }
  0x29   :  { %v678_v39 = vsel %vm527_vm0, %v65_v37, 0.0  ;;  %v70_v44 = vld [vmem:[%s11124_s0 + $0x1b8] sm:$0xff]  ;;  %v69_v45 = vld [vmem:[%s11124_s0 + $0x1b0] sm:$0xff]  ;;  %v72_v48 = vld [vmem:[%s11124_s0 + $0x1c8] sm:$0xff]  ;;  %v7125_v13 = vand.u32 127, %v3351_v8  ;;  %v7133_v16 = vshrl.u32 %v3351_v8, 7 }
  0x2a   :  { %v71_v49 = vld [vmem:[%s11124_s0 + $0x1c0] sm:$0xff]  ;;  %v74_v52 = vld [vmem:[%s11124_s0 + $0x1d8] sm:$0xff]  ;;  %v73_v53 = vld [vmem:[%s11124_s0 + $0x1d0] sm:$0xff]  ;;  %vm3383_vm4 = vcmask 326912   ;;  %vm3390_vm5 = vcmask 392512   ;;  %vm11136_vm6 = vcmask 458112  }
  0x2b   :  { %592 = vadd.xlane.f32.xlu1 %v591_v42  ;;  %589 = vadd.xlane.f32.xlu0 %v588_v43  ;;  %v687_v42 = vsel %vm527_vm0, %v68_v40, 0.0  ;;  %v684_v43 = vsel %vm527_vm0, %v67_v41, 0.0  ;;  %v76_v56 = vld [vmem:[%s11124_s0 + $0x1e8] sm:$0xff]  ;;  %v75_v57 = vld [vmem:[%s11124_s0 + $0x1e0] sm:$0xff]  ;;  %v78_v60 = vld [vmem:[%s11124_s0 + $0x1f8] sm:$0xff]  ;;  %v3371_v17 = vadd.s32 4294967272, %v7125_v13  ;;  %v7150_v28 = vsub.s32 %v7125_v13, %v7133_v16 }
  0x2c   :  { %v77_v61 = vld [vmem:[%s11124_s0 + $0x1f0] sm:$0xff]  ;;  %v80_v0 = vld [vmem:[%s11124_s0 + $0x208] sm:$0xff]  ;;  %v79_v1 = vld [vmem:[%s11124_s0 + $0x200] sm:$0xff]  ;;  %vm3404_vm7 = vcmask 523712   ;;  %vm11129_vm8 = vcmask 589312   ;;  %vm3418_vm9 = vcmask 654912  }
  0x2d   :  { %v82_v4 = vld [vmem:[%s11124_s0 + $0x218] sm:$0xff]  ;;  %v81_v5 = vld [vmem:[%s11124_s0 + $0x210] sm:$0xff]  ;;  %v84_v9 = vld [vmem:[%s11124_s0 + $0x228] sm:$0xff]  ;;  %11139 = vst [vmem:[#allocation5_spill] sm:$0xff] %v7150_v28  ;;  %vm3425_vm10 = vcmask 720512   ;;  %vm3432_vm11 = vcmask 786112  }
  0x2e   :  { %v88_v24 = vld [vmem:[%s11124_s0 + $0x248] sm:$0xff]  ;;  %v87_v25 = vld [vmem:[%s11124_s0 + $0x240] sm:$0xff]  ;;  %v90_v40 = vld [vmem:[%s11124_s0 + $0x258] sm:$0xff]  ;;  %vm11128_vm12 = vcmask 851712   ;;  %vm3446_vm13 = vcmask 917312   ;;  %vm3453_vm14 = vcmask 982912  }
  0x2f   :  { %598 = vadd.xlane.f32.xlu1 %v597_v46  ;;  %595 = vadd.xlane.f32.xlu0 %v594_v47  ;;  %v693_v46 = vsel %vm527_vm0, %v70_v44, 0.0  ;;  %v690_v47 = vsel %vm527_vm0, %v69_v45, 0.0  ;;  %v747_v36 = vsel %vm527_vm0, %v88_v24, 0.0  ;;  %v744_v37 = vsel %vm527_vm0, %v87_v25, 0.0  ;;  %v89_v41 = vld [vmem:[%s11124_s0 + $0x250] sm:$0xff] }
  0x30   :  { %v3399_v44 = vadd.s32 4294967240, %v7125_v13  ;;  %v3392_v45 = vadd.s32 4294967248, %v7125_v13  ;;  %vm3460_vm15 = vcmask 1048512  }
  0x33   :  { %604 = vadd.xlane.f32.xlu1 %v603_v50  ;;  %601 = vadd.xlane.f32.xlu0 %v600_v51  ;;  %v699_v50 = vsel %vm527_vm0, %v72_v48, 0.0  ;;  %v696_v51 = vsel %vm527_vm0, %v71_v49, 0.0 }
  0x37   :  { %610 = vadd.xlane.f32.xlu1 %v609_v54  ;;  %607 = vadd.xlane.f32.xlu0 %v606_v55  ;;  %v705_v54 = vsel %vm527_vm0, %v74_v52, 0.0  ;;  %v702_v55 = vsel %vm527_vm0, %v73_v53, 0.0  ;;  %v753_v52 = vsel %vm527_vm0, %v90_v40, 0.0  ;;  %v750_v53 = vsel %vm527_vm0, %v89_v41, 0.0 }
  0x38   :  { %v3434_v40 = vadd.s32 4294967200, %v7125_v13 }
  0x3b   :  { %616 = vadd.xlane.f32.xlu1 %v615_v58  ;;  %613 = vadd.xlane.f32.xlu0 %v612_v59  ;;  %v711_v58 = vsel %vm527_vm0, %v76_v56, 0.0  ;;  %v708_v59 = vsel %vm527_vm0, %v75_v57, 0.0  ;;  %v92_v57 = vld [vmem:[%s11124_s0 + $0x268] sm:$0xff] }
  0x3f   :  { %622 = vadd.xlane.f32.xlu1 %v621_v62  ;;  %619 = vadd.xlane.f32.xlu0 %v618_v63  ;;  %v717_v62 = vsel %vm527_vm0, %v78_v60, 0.0  ;;  %v714_v63 = vsel %vm527_vm0, %v77_v61, 0.0  ;;  %v7192_v60 = vsub.s32 %v3399_v44, %v7133_v16  ;;  %v7195_v61 = vsub.s32 %v3392_v45, %v7133_v16 }
  0x43   :  { %628 = vadd.xlane.f32.xlu1 %v627_v2  ;;  %625 = vadd.xlane.f32.xlu0 %v624_v3  ;;  %v723_v2 = vsel %vm527_vm0, %v80_v0, 0.0  ;;  %v720_v3 = vsel %vm527_vm0, %v79_v1, 0.0 }
  0x47   :  { %634 = vadd.xlane.f32.xlu1 %v633_v6  ;;  %631 = vadd.xlane.f32.xlu0 %v630_v7  ;;  %v729_v6 = vsel %vm527_vm0, %v82_v4, 0.0  ;;  %v726_v7 = vsel %vm527_vm0, %v81_v5, 0.0  ;;  %v759_v5 = vsel %vm527_vm0, %v92_v57, 0.0  ;;  %v7259_v57 = vsub.s32 %v3434_v40, %v7133_v16 }
  0x4b   :  { %640 = vadd.xlane.f32.xlu1 %v639_v10  ;;  %637 = vadd.xlane.f32.xlu0 %v636_v11  ;;  %v83_v10 = vld [vmem:[%s11124_s0 + $0x220] sm:$0xff]  ;;  %v735_v11 = vsel %vm527_vm0, %v84_v9, 0.0 }
  0x4c   :  { %v732_v12 = vsel %vm527_vm0, %v83_v10, 0.0  ;;  %v94_v10 = vld [vmem:[%s11124_s0 + $0x278] sm:$0xff] }
  0x4f   :  { %646 = vadd.xlane.f32.xlu1 %v645_v14  ;;  %643 = vadd.xlane.f32.xlu0 %v642_v15  ;;  %v86_v14 = vld [vmem:[%s11124_s0 + $0x238] sm:$0xff]  ;;  %v85_v15 = vld [vmem:[%s11124_s0 + $0x230] sm:$0xff] }
  0x53   :  { %652 = vadd.xlane.f32.xlu1 %v651_v18  ;;  %649 = vadd.xlane.f32.xlu0 %v648_v19  ;;  %v3357_v18 = vadd.s32 4294967288, %v7125_v13  ;;  %v3364_v19 = vadd.s32 4294967280, %v7125_v13 }
  0x55   :  { %v7159_v32 = vsub.s32 %v3364_v19, %v7133_v16 }
  0x57   :  { %658 = vadd.xlane.f32.xlu1 %v657_v22  ;;  %655 = vadd.xlane.f32.xlu0 %v654_v23  ;;  %v741_v22 = vsel %vm527_vm0, %v86_v14, 0.0  ;;  %v738_v23 = vsel %vm527_vm0, %v85_v15, 0.0  ;;  %11141 = vst [vmem:[#allocation7_spill] sm:$0xff] %v7159_v32  ;;  %v3427_v15 = vadd.s32 4294967208, %v7125_v13 }
  0x5b   :  { %664 = vadd.xlane.f32.xlu1 %v663_v26  ;;  %661 = vadd.xlane.f32.xlu0 %v660_v27  ;;  %v3385_v26 = vadd.s32 4294967256, %v7125_v13  ;;  %v3378_v27 = vadd.s32 4294967264, %v7125_v13 }
  0x5f   :  { %670 = vadd.xlane.f32.xlu1 %v669_v30  ;;  %667 = vadd.xlane.f32.xlu0 %v666_v31  ;;  %v7153_v30 = vsub.s32 %v3371_v17, %v7133_v16  ;;  %v7156_v31 = vsub.s32 %v3357_v18, %v7133_v16 }
  0x61   :  { %11140 = vst [vmem:[#allocation6_spill] sm:$0xff] %v7156_v31 }
  0x63   :  { %676 = vadd.xlane.f32.xlu1 %v675_v34  ;;  %673 = vadd.xlane.f32.xlu0 %v672_v35 }
  0x67   :  { %682 = vadd.xlane.f32.xlu1 %v681_v38  ;;  %679 = vadd.xlane.f32.xlu0 %v678_v39 }
  0x6b   :  { %688 = vadd.xlane.f32.xlu1 %v687_v42  ;;  %685 = vadd.xlane.f32.xlu0 %v684_v43  ;;  %v7170_v42 = vsub.s32 %v3385_v26, %v7133_v16  ;;  %v7173_v43 = vsub.s32 %v3378_v27, %v7133_v16 }
  0x6d   :  { %11142 = vst [vmem:[#allocation8_spill] sm:$0xff] %v7173_v43 }
  0x6f   :  { %694 = vadd.xlane.f32.xlu1 %v693_v46  ;;  %691 = vadd.xlane.f32.xlu0 %v690_v47 }
  0x73   :  { %700 = vadd.xlane.f32.xlu1 %v699_v50  ;;  %697 = vadd.xlane.f32.xlu0 %v696_v51 }
  0x77   :  { %706 = vadd.xlane.f32.xlu1 %v705_v54  ;;  %703 = vadd.xlane.f32.xlu0 %v702_v55 }
  0x7b   :  { %712 = vadd.xlane.f32.xlu1 %v711_v58  ;;  %709 = vadd.xlane.f32.xlu0 %v708_v59  ;;  %v91_v58 = vld [vmem:[%s11124_s0 + $0x260] sm:$0xff] }
  0x7f   :  { %718 = vadd.xlane.f32.xlu1 %v717_v62  ;;  %715 = vadd.xlane.f32.xlu0 %v714_v63  ;;  %v3413_v62 = vadd.s32 4294967224, %v7125_v13 }
  0x81   :  { %v7213_v14 = vsub.s32 %v3413_v62, %v7133_v16 }
  0x83   :  { %724 = vadd.xlane.f32.xlu1 %v723_v2  ;;  %721 = vadd.xlane.f32.xlu0 %v720_v3  ;;  %v3406_v2 = vadd.s32 4294967232, %v7125_v13 }
  0x85   :  { %v7219_v19 = vsub.s32 %v3406_v2, %v7133_v16 }
  0x87   :  { %730 = vadd.xlane.f32.xlu1 %v729_v6  ;;  %727 = vadd.xlane.f32.xlu0 %v726_v7  ;;  %v756_v6 = vsel %vm527_vm0, %v91_v58, 0.0  ;;  %v3455_v58 = vadd.s32 4294967176, %v7125_v13 }
  0x8b   :  { %736 = vadd.xlane.f32.xlu1 %v735_v11  ;;  %733 = vadd.xlane.f32.xlu0 %v732_v12  ;;  %v93_v11 = vld [vmem:[%s11124_s0 + $0x270] sm:$0xff] }
  0x8c   :  { %v536_v20 = vpop.xlane.xlu1 %535  ;;  %v530_v21 = vpop.xlane.xlu0 %529  ;;  %v762_v24 = vsel %vm527_vm0, %v93_v11, 0.0 }
  0x8d   :  { %v2064_v29 = vmul.f32 0.0625, %v530_v21  ;;  %v2066_v33 = vmul.f32 0.0625, %v536_v20  ;;  %v3420_v20 = vadd.s32 4294967216, %v7125_v13 }
  0x8f   :  { %742 = vadd.xlane.f32.xlu1 %v741_v22  ;;  %739 = vadd.xlane.f32.xlu0 %v738_v23  ;;  %v3356_v46 = vrot.slane %v2064_v29, %v7150_v28  ;;  %v3368_v49 = vrot.slane %v2066_v33, %v7159_v32  ;;  %v765_v23 = vsel %vm527_vm0, %v94_v10, 0.0  ;;  %v96_v29 = vld [vmem:[%s11124_s0 + $0x288] sm:$0xff]  ;;  %v95_v33 = vld [vmem:[%s11124_s0 + $0x280] sm:$0xff] }
  0x90   :  { %v539_v34 = vpop.xlane.xlu1 %538  ;;  %v533_v35 = vpop.xlane.xlu0 %532  ;;  %v771_v45 = vsel %vm527_vm0, %v96_v29, 0.0 }
  0x91   :  { %v2067_v38 = vmul.f32 0.0625, %v539_v34  ;;  %v2065_v39 = vmul.f32 0.0625, %v533_v35  ;;  %v7233_v35 = vsub.s32 %v3427_v15, %v7133_v16 }
  0x93   :  { %v3375_v47 = vrot.slane %v2067_v38, %v7153_v30  ;;  %v3361_v48 = vrot.slane %v2065_v39, %v7156_v31  ;;  %748 = vadd.xlane.f32.xlu1 %v747_v36  ;;  %745 = vadd.xlane.f32.xlu0 %v744_v37  ;;  %v3441_v36 = vadd.s32 4294967192, %v7125_v13  ;;  %v7239_v39 = vsub.s32 %v3420_v20, %v7133_v16 }
  0x94   :  { %v545_v50 = vpop.xlane.xlu1 %544  ;;  %v542_v51 = vpop.xlane.xlu0 %541 }
  0x95   :  { %v3363_v54 = vsel %vm3362_vm1, %v3361_v48, %v3356_v46  ;;  %v2069_v55 = vmul.f32 0.0625, %v545_v50  ;;  %v2068_v56 = vmul.f32 0.0625, %v542_v51  ;;  %v768_v46 = vsel %vm527_vm0, %v95_v33, 0.0  ;;  %v98_v50 = vld [vmem:[%s11124_s0 + $0x298] sm:$0xff]  ;;  %v97_v51 = vld [vmem:[%s11124_s0 + $0x290] sm:$0xff] }
  0x96   :  { %v3370_v59 = vsel %vm3369_vm2, %v3368_v49, %v3363_v54  ;;  %v3448_v54 = vadd.s32 4294967184, %v7125_v13 }
  0x97   :  { %v3389_v63 = vrot.slane %v2069_v55, %v7170_v42  ;;  %v3377_v0 = vsel %vm3376_vm3, %v3375_v47, %v3370_v59  ;;  %v3382_v1 = vrot.slane %v2068_v56, %v7173_v43  ;;  %754 = vadd.xlane.f32.xlu1 %v753_v52  ;;  %751 = vadd.xlane.f32.xlu0 %v750_v53 }
  0x98   :  { %v551_v3 = vpop.xlane.xlu1 %550  ;;  %v548_v4 = vpop.xlane.xlu0 %547  ;;  %v7253_v53 = vsub.s32 %v3441_v36, %v7133_v16  ;;  %v104_v36 = vld [vmem:[%s11124_s0 + $0x2c8] sm:$0xff] }
  0x99   :  { %v3384_v7 = vsel %vm3383_vm4, %v3382_v1, %v3377_v0  ;;  %v2071_v8 = vmul.f32 0.0625, %v551_v3  ;;  %v2070_v9 = vmul.f32 0.0625, %v548_v4  ;;  %v774_v0 = vsel %vm527_vm0, %v97_v51, 0.0  ;;  %v100_v4 = vld [vmem:[%s11124_s0 + $0x2a8] sm:$0xff] }
  0x9a   :  { %v3391_v12 = vsel %vm3390_vm5, %v3389_v63, %v3384_v7  ;;  %v777_v63 = vsel %vm527_vm0, %v98_v50, 0.0 }
  0x9b   :  { %v3403_v17 = vrot.slane %v2071_v8, %v7192_v60  ;;  %v3396_v18 = vrot.slane %v2070_v9, %v7195_v61  ;;  %760 = vadd.xlane.f32.xlu1 %v759_v5  ;;  %757 = vadd.xlane.f32.xlu0 %v756_v6  ;;  %v99_v5 = vld [vmem:[%s11124_s0 + $0x2a0] sm:$0xff]  ;;  %v7273_v6 = vsub.s32 %v3448_v54, %v7133_v16  ;;  %v105_v54 = vld [vmem:[%s11124_s0 + $0x2d0] sm:$0xff] }
  0x9c   :  { %v557_v21 = vpop.xlane.xlu1 %556  ;;  %v554_v22 = vpop.xlane.xlu0 %553  ;;  %v7278_v9 = vsub.s32 %v3455_v58, %v7133_v16  ;;  %v780_v15 = vsel %vm527_vm0, %v99_v5, 0.0  ;;  %v101_v16 = vld [vmem:[%s11124_s0 + $0x2b0] sm:$0xff] }
  0x9d   :  { %v3398_v25 = vsel %vm11136_vm6, %v3396_v18, %v3391_v12  ;;  %v2073_v26 = vmul.f32 0.0625, %v557_v21  ;;  %v2072_v27 = vmul.f32 0.0625, %v554_v22  ;;  %v783_v12 = vsel %vm527_vm0, %v100_v4, 0.0  ;;  %v102_v21 = vld [vmem:[%s11124_s0 + $0x2b8] sm:$0xff]  ;;  %v107_v4 = vld [vmem:[%s11124_s0 + $0x2e0] sm:$0xff] }
  0x9e   :  { %v3405_v34 = vsel %vm3404_vm7, %v3403_v17, %v3398_v25  ;;  %v786_v29 = vsel %vm527_vm0, %v101_v16, 0.0 }
  0x9f   :  { %v3417_v37 = vrot.slane %v2073_v26, %v7213_v14  ;;  %v3410_v38 = vrot.slane %v2072_v27, %v7219_v19  ;;  %766 = vadd.xlane.f32.xlu1 %v765_v23  ;;  %763 = vadd.xlane.f32.xlu0 %v762_v24  ;;  %v789_v27 = vsel %vm527_vm0, %v102_v21, 0.0  ;;  %v109_v21 = vld [vmem:[%s11124_s0 + $0x2f0] sm:$0xff] }
  0xa0   :  { %v563_v41 = vpop.xlane.xlu1 %562  ;;  %v560_v44 = vpop.xlane.xlu0 %559 }
  0xa1   :  { %v3412_v47 = vsel %vm11129_vm8, %v3410_v38, %v3405_v34  ;;  %v2075_v48 = vmul.f32 0.0625, %v563_v41  ;;  %v2074_v49 = vmul.f32 0.0625, %v560_v44 }
  0xa2   :  { %v3419_v52 = vsel %vm3418_vm9, %v3417_v37, %v3412_v47  ;;  %v103_v37 = vld [vmem:[%s11124_s0 + $0x2c0] sm:$0xff]  ;;  %v795_v47 = vsel %vm527_vm0, %v104_v36, 0.0  ;;  %v112_v36 = vld [vmem:[%s11124_s0 + $0x308] sm:$0xff] }
  0xa3   :  { %v3431_v55 = vrot.slane %v2075_v48, %v7233_v35  ;;  %v3424_v56 = vrot.slane %v2074_v49, %v7239_v39  ;;  %772 = vadd.xlane.f32.xlu1 %v771_v45  ;;  %769 = vadd.xlane.f32.xlu0 %v768_v46  ;;  %v792_v48 = vsel %vm527_vm0, %v103_v37, 0.0  ;;  %v111_v37 = vld [vmem:[%s11124_s0 + $0x300] sm:$0xff] }
  0xa4   :  { %v569_v59 = vpop.xlane.xlu1 %568  ;;  %v566_v62 = vpop.xlane.xlu0 %565 }
  0xa5   :  { %v3426_v1 = vsel %vm3425_vm10, %v3424_v56, %v3419_v52  ;;  %v2077_v2 = vmul.f32 0.0625, %v569_v59  ;;  %v2076_v3 = vmul.f32 0.0625, %v566_v62  ;;  %v106_v52 = vld [vmem:[%s11124_s0 + $0x2d8] sm:$0xff] }
  0xa6   :  { %v3433_v13 = vsel %vm3432_vm11, %v3431_v55, %v3426_v1  ;;  %v801_v62 = vsel %vm527_vm0, %v106_v52, 0.0  ;;  %v114_v52 = vld [vmem:[%s11124_s0 + $0x318] sm:$0xff] }
  0xa7   :  { %v3445_v7 = vrot.slane %v2077_v2, %v7253_v53  ;;  %v3438_v8 = vrot.slane %v2076_v3, %v7259_v57  ;;  %778 = vadd.xlane.f32.xlu1 %v777_v63  ;;  %775 = vadd.xlane.f32.xlu0 %v774_v0  ;;  %v798_v63 = vsel %vm527_vm0, %v105_v54, 0.0  ;;  %v108_v3 = vld [vmem:[%s11124_s0 + $0x2e8] sm:$0xff]  ;;  %v113_v54 = vld [vmem:[%s11124_s0 + $0x310] sm:$0xff] }
  0xa8   :  { %v575_v10 = vpop.xlane.xlu1 %574  ;;  %v572_v11 = vpop.xlane.xlu0 %571 }
  0xa9   :  { %v3440_v17 = vsel %vm11128_vm12, %v3438_v8, %v3433_v13  ;;  %v2079_v18 = vmul.f32 0.0625, %v575_v10  ;;  %v2078_v20 = vmul.f32 0.0625, %v572_v11  ;;  %v807_v11 = vsel %vm527_vm0, %v108_v3, 0.0 }
  0xaa   :  { %v3447_v22 = vsel %vm3446_vm13, %v3445_v7, %v3440_v17 }
  0xab   :  { %v3459_v23 = vrot.slane %v2079_v18, %v7278_v9  ;;  %v3452_v24 = vrot.slane %v2078_v20, %v7273_v6  ;;  %784 = vadd.xlane.f32.xlu1 %v783_v12  ;;  %781 = vadd.xlane.f32.xlu0 %v780_v15  ;;  %v804_v12 = vsel %vm527_vm0, %v107_v4, 0.0  ;;  %v110_v20 = vld [vmem:[%s11124_s0 + $0x2f8] sm:$0xff]  ;;  %v116_v4 = vld [vmem:[%s11124_s0 + $0x328] sm:$0xff] }
  0xac   :  { %v581_v25 = vpop.xlane.xlu1 %580  ;;  %v578_v26 = vpop.xlane.xlu0 %577 }
  0xad   :  { %v2081_v33 = vmul.f32 0.0625, %v581_v25  ;;  %v2080_v34 = vmul.f32 0.0625, %v578_v26  ;;  %v3454_v38 = vsel %vm3453_vm14, %v3452_v24, %v3447_v22  ;;  %v813_v26 = vsel %vm527_vm0, %v110_v20, 0.0 }
  0xae   :  { %v7302_v40 = vsel %vm3460_vm15, %v3459_v23, %v3454_v38 }
  0xaf   :  { %v3469_v41 = vrot.slane %v2081_v33, %v7156_v31  ;;  %v3465_v44 = vrot.slane %v2080_v34, %v7150_v28  ;;  %790 = vadd.xlane.f32.xlu1 %v789_v27  ;;  %787 = vadd.xlane.f32.xlu0 %v786_v29  ;;  %v810_v27 = vsel %vm527_vm0, %v109_v21, 0.0  ;;  %v118_v21 = vld [vmem:[%s11124_s0 + $0x338] sm:$0xff] }
  0xb0   :  { %v587_v45 = vpop.xlane.xlu1 %586  ;;  %v584_v46 = vpop.xlane.xlu0 %583 }
  0xb1   :  { %v3470_v49 = vsel %vm3362_vm1, %v3469_v41, %v3465_v44  ;;  %v2083_v50 = vmul.f32 0.0625, %v587_v45  ;;  %v2082_v51 = vmul.f32 0.0625, %v584_v46 }
  0xb3   :  { %v3479_v55 = vrot.slane %v2083_v50, %v7153_v30  ;;  %v3474_v56 = vrot.slane %v2082_v51, %v7159_v32  ;;  %796 = vadd.xlane.f32.xlu1 %v795_v47  ;;  %793 = vadd.xlane.f32.xlu0 %v792_v48  ;;  %v819_v47 = vsel %vm527_vm0, %v112_v36, 0.0  ;;  %v816_v48 = vsel %vm527_vm0, %v111_v37, 0.0  ;;  %v120_v36 = vld [vmem:[%s11124_s0 + $0x348] sm:$0xff]  ;;  %v119_v37 = vld [vmem:[%s11124_s0 + $0x340] sm:$0xff] }
  0xb4   :  { %v593_v58 = vpop.xlane.xlu1 %592  ;;  %v590_v59 = vpop.xlane.xlu0 %589 }
  0xb5   :  { %v3475_v0 = vsel %vm3369_vm2, %v3474_v56, %v3470_v49  ;;  %v2085_v1 = vmul.f32 0.0625, %v593_v58  ;;  %v2084_v2 = vmul.f32 0.0625, %v590_v59 }
  0xb6   :  { %v3480_v5 = vsel %vm3376_vm3, %v3479_v55, %v3475_v0  ;;  %v822_v0 = vsel %vm527_vm0, %v113_v54, 0.0  ;;  %v122_v54 = vld [vmem:[%s11124_s0 + $0x358] sm:$0xff] }
  0xb7   :  { %v3489_v13 = vrot.slane %v2085_v1, %v7170_v42  ;;  %v3484_v7 = vrot.slane %v2084_v2, %v7173_v43  ;;  %802 = vadd.xlane.f32.xlu1 %v801_v62  ;;  %799 = vadd.xlane.f32.xlu0 %v798_v63  ;;  %v825_v63 = vsel %vm527_vm0, %v114_v52, 0.0 }
  0xb8   :  { %v599_v8 = vpop.xlane.xlu1 %598  ;;  %v596_v10 = vpop.xlane.xlu0 %595 }
  0xb9   :  { %v3485_v15 = vsel %vm3383_vm4, %v3484_v7, %v3480_v5  ;;  %v2087_v17 = vmul.f32 0.0625, %v599_v8  ;;  %v2086_v18 = vmul.f32 0.0625, %v596_v10  ;;  %v115_v5 = vld [vmem:[%s11124_s0 + $0x320] sm:$0xff] }
  0xba   :  { %v3490_v16 = vsel %vm3390_vm5, %v3489_v13, %v3485_v15  ;;  %v828_v15 = vsel %vm527_vm0, %v115_v5, 0.0  ;;  %v123_v5 = vld [vmem:[%s11124_s0 + $0x360] sm:$0xff] }
  0xbb   :  { %v3499_v22 = vrot.slane %v2087_v17, %v7192_v60  ;;  %v3494_v23 = vrot.slane %v2086_v18, %v7195_v61  ;;  %808 = vadd.xlane.f32.xlu1 %v807_v11  ;;  %805 = vadd.xlane.f32.xlu0 %v804_v12  ;;  %v831_v12 = vsel %vm527_vm0, %v116_v4, 0.0  ;;  %v124_v4 = vld [vmem:[%s11124_s0 + $0x368] sm:$0xff] }
  0xbc   :  { %v605_v24 = vpop.xlane.xlu1 %604  ;;  %v602_v25 = vpop.xlane.xlu0 %601 }
  0xbd   :  { %v3495_v29 = vsel %vm11136_vm6, %v3494_v23, %v3490_v16  ;;  %v2089_v33 = vmul.f32 0.0625, %v605_v24  ;;  %v2088_v34 = vmul.f32 0.0625, %v602_v25  ;;  %v117_v16 = vld [vmem:[%s11124_s0 + $0x330] sm:$0xff] }
  0xbe   :  { %v3500_v38 = vsel %vm3404_vm7, %v3499_v22, %v3495_v29  ;;  %v834_v29 = vsel %vm527_vm0, %v117_v16, 0.0  ;;  %v125_v16 = vld [vmem:[%s11124_s0 + $0x370] sm:$0xff] }
  0xbf   :  { %v3509_v41 = vrot.slane %v2089_v33, %v7213_v14  ;;  %v3504_v44 = vrot.slane %v2088_v34, %v7219_v19  ;;  %814 = vadd.xlane.f32.xlu1 %v813_v26  ;;  %811 = vadd.xlane.f32.xlu0 %v810_v27  ;;  %v837_v27 = vsel %vm527_vm0, %v118_v21, 0.0  ;;  %v126_v21 = vld [vmem:[%s11124_s0 + $0x378] sm:$0xff] }
  0xc0   :  { %v611_v45 = vpop.xlane.xlu1 %610  ;;  %v608_v46 = vpop.xlane.xlu0 %607 }
  0xc1   :  { %v3505_v49 = vsel %vm11129_vm8, %v3504_v44, %v3500_v38  ;;  %v2091_v50 = vmul.f32 0.0625, %v611_v45  ;;  %v2090_v51 = vmul.f32 0.0625, %v608_v46 }
  0xc2   :  { %v3510_v55 = vsel %vm3418_vm9, %v3509_v41, %v3505_v49  ;;  %v840_v49 = vsel %vm527_vm0, %v119_v37, 0.0  ;;  %v128_v37 = vld [vmem:[%s11124_s0 + $0x388] sm:$0xff] }
  0xc3   :  { %v3519_v56 = vrot.slane %v2091_v50, %v7233_v35  ;;  %v3514_v58 = vrot.slane %v2090_v51, %v7239_v39  ;;  %820 = vadd.xlane.f32.xlu1 %v819_v47  ;;  %817 = vadd.xlane.f32.xlu0 %v816_v48  ;;  %v843_v48 = vsel %vm527_vm0, %v120_v36, 0.0 }
  0xc4   :  { %v617_v59 = vpop.xlane.xlu1 %616  ;;  %v614_v62 = vpop.xlane.xlu0 %613 }
  0xc5   :  { %v3515_v1 = vsel %vm3425_vm10, %v3514_v58, %v3510_v55  ;;  %v2093_v2 = vmul.f32 0.0625, %v617_v59  ;;  %v2092_v3 = vmul.f32 0.0625, %v614_v62  ;;  %v121_v55 = vld [vmem:[%s11124_s0 + $0x350] sm:$0xff] }
  0xc6   :  { %v3520_v13 = vsel %vm3432_vm11, %v3519_v56, %v3515_v1 }
  0xc7   :  { %v3529_v7 = vrot.slane %v2093_v2, %v7253_v53  ;;  %v3524_v8 = vrot.slane %v2092_v3, %v7259_v57  ;;  %826 = vadd.xlane.f32.xlu1 %v825_v63  ;;  %823 = vadd.xlane.f32.xlu0 %v822_v0  ;;  %v849_v63 = vsel %vm527_vm0, %v122_v54, 0.0  ;;  %v846_v0 = vsel %vm527_vm0, %v121_v55, 0.0  ;;  %v130_v55 = vld [vmem:[%s11124_s0 + $0x398] sm:$0xff] }
  0xc8   :  { %v623_v10 = vpop.xlane.xlu1 %622  ;;  %v620_v11 = vpop.xlane.xlu0 %619 }
  0xc9   :  { %v3525_v17 = vsel %vm11128_vm12, %v3524_v8, %v3520_v13  ;;  %v2095_v18 = vmul.f32 0.0625, %v623_v10  ;;  %v2094_v20 = vmul.f32 0.0625, %v620_v11 }
  0xca   :  { %v3530_v22 = vsel %vm3446_vm13, %v3529_v7, %v3525_v17 }
  0xcb   :  { %v3539_v23 = vrot.slane %v2095_v18, %v7278_v9  ;;  %v3534_v24 = vrot.slane %v2094_v20, %v7273_v6  ;;  %832 = vadd.xlane.f32.xlu1 %v831_v12  ;;  %829 = vadd.xlane.f32.xlu0 %v828_v15  ;;  %v855_v12 = vsel %vm527_vm0, %v124_v4, 0.0  ;;  %v852_v15 = vsel %vm527_vm0, %v123_v5, 0.0 }
  0xcc   :  { %v629_v25 = vpop.xlane.xlu1 %628  ;;  %v626_v26 = vpop.xlane.xlu0 %625 }
  0xcd   :  { %v2097_v33 = vmul.f32 0.0625, %v629_v25  ;;  %v2096_v34 = vmul.f32 0.0625, %v626_v26  ;;  %v3535_v38 = vsel %vm3453_vm14, %v3534_v24, %v3530_v22 }
  0xce   :  { %v7399_v41 = vsel %vm3460_vm15, %v3539_v23, %v3535_v38  ;;  %v127_v38 = vld [vmem:[%s11124_s0 + $0x380] sm:$0xff] }
  0xcf   :  { %v3548_v44 = vrot.slane %v2097_v33, %v7156_v31  ;;  %v3544_v45 = vrot.slane %v2096_v34, %v7150_v28  ;;  %838 = vadd.xlane.f32.xlu1 %v837_v27  ;;  %835 = vadd.xlane.f32.xlu0 %v834_v29  ;;  %v861_v27 = vsel %vm527_vm0, %v126_v21, 0.0  ;;  %v858_v29 = vsel %vm527_vm0, %v125_v16, 0.0 }
  0xd0   :  { %v635_v46 = vpop.xlane.xlu1 %634  ;;  %v632_v47 = vpop.xlane.xlu0 %631 }
  0xd1   :  { %v3549_v50 = vsel %vm3362_vm1, %v3548_v44, %v3544_v45  ;;  %v2099_v51 = vmul.f32 0.0625, %v635_v46  ;;  %v2098_v52 = vmul.f32 0.0625, %v632_v47 }
  0xd3   :  { %v3558_v56 = vrot.slane %v2099_v51, %v7153_v30  ;;  %v3553_v58 = vrot.slane %v2098_v52, %v7159_v32  ;;  %844 = vadd.xlane.f32.xlu1 %v843_v48  ;;  %841 = vadd.xlane.f32.xlu0 %v840_v49  ;;  %v867_v49 = vsel %vm527_vm0, %v128_v37, 0.0 }
  0xd4   :  { %v641_v59 = vpop.xlane.xlu1 %640  ;;  %v638_v62 = vpop.xlane.xlu0 %637 }
  0xd5   :  { %v3554_v1 = vsel %vm3369_vm2, %v3553_v58, %v3549_v50  ;;  %v2101_v2 = vmul.f32 0.0625, %v641_v59  ;;  %v2100_v3 = vmul.f32 0.0625, %v638_v62  ;;  %v864_v50 = vsel %vm527_vm0, %v127_v38, 0.0  ;;  %v136_v38 = vld [vmem:[%s11124_s0 + $0x3c8] sm:$0xff] }
  0xd6   :  { %v3559_v13 = vsel %vm3376_vm3, %v3558_v56, %v3554_v1  ;;  %v129_v56 = vld [vmem:[%s11124_s0 + $0x390] sm:$0xff]  ;;  %v873_v1 = vsel %vm527_vm0, %v130_v55, 0.0 }
  0xd7   :  { %v3568_v7 = vrot.slane %v2101_v2, %v7170_v42  ;;  %v3563_v8 = vrot.slane %v2100_v3, %v7173_v43  ;;  %850 = vadd.xlane.f32.xlu1 %v849_v63  ;;  %847 = vadd.xlane.f32.xlu0 %v846_v0  ;;  %v870_v2 = vsel %vm527_vm0, %v129_v56, 0.0 }
  0xd8   :  { %v647_v10 = vpop.xlane.xlu1 %646  ;;  %v644_v11 = vpop.xlane.xlu0 %643 }
  0xd9   :  { %v3564_v17 = vsel %vm3383_vm4, %v3563_v8, %v3559_v13  ;;  %v2103_v18 = vmul.f32 0.0625, %v647_v10  ;;  %v2102_v20 = vmul.f32 0.0625, %v644_v11  ;;  %v132_v13 = vld [vmem:[%s11124_s0 + $0x3a8] sm:$0xff] }
  0xda   :  { %v3569_v22 = vsel %vm3390_vm5, %v3568_v7, %v3564_v17  ;;  %v131_v7 = vld [vmem:[%s11124_s0 + $0x3a0] sm:$0xff]  ;;  %v879_v17 = vsel %vm527_vm0, %v132_v13, 0.0 }
  0xdb   :  { %v3578_v23 = vrot.slane %v2103_v18, %v7192_v60  ;;  %v3573_v24 = vrot.slane %v2102_v20, %v7195_v61  ;;  %856 = vadd.xlane.f32.xlu1 %v855_v12  ;;  %853 = vadd.xlane.f32.xlu0 %v852_v15  ;;  %v876_v18 = vsel %vm527_vm0, %v131_v7, 0.0  ;;  %v140_v7 = vld [vmem:[%s11124_s0 + $0x3e8] sm:$0xff] }
  0xdc   :  { %v653_v25 = vpop.xlane.xlu1 %652  ;;  %v650_v26 = vpop.xlane.xlu0 %649 }
  0xdd   :  { %v3574_v33 = vsel %vm11136_vm6, %v3573_v24, %v3569_v22  ;;  %v2105_v34 = vmul.f32 0.0625, %v653_v25  ;;  %v2104_v36 = vmul.f32 0.0625, %v650_v26  ;;  %v134_v22 = vld [vmem:[%s11124_s0 + $0x3b8] sm:$0xff] }
  0xde   :  { %v3579_v44 = vsel %vm3404_vm7, %v3578_v23, %v3574_v33  ;;  %v133_v23 = vld [vmem:[%s11124_s0 + $0x3b0] sm:$0xff]  ;;  %v885_v33 = vsel %vm527_vm0, %v134_v22, 0.0 }
  0xdf   :  { %v3588_v45 = vrot.slane %v2105_v34, %v7213_v14  ;;  %v3583_v46 = vrot.slane %v2104_v36, %v7219_v19  ;;  %862 = vadd.xlane.f32.xlu1 %v861_v27  ;;  %859 = vadd.xlane.f32.xlu0 %v858_v29  ;;  %v882_v34 = vsel %vm527_vm0, %v133_v23, 0.0  ;;  %v142_v23 = vld [vmem:[%s11124_s0 + $0x3f8] sm:$0xff] }
  0xe0   :  { %v659_v47 = vpop.xlane.xlu1 %658  ;;  %v656_v48 = vpop.xlane.xlu0 %655 }
  0xe1   :  { %v3584_v51 = vsel %vm11129_vm8, %v3583_v46, %v3579_v44  ;;  %v2107_v52 = vmul.f32 0.0625, %v659_v47  ;;  %v2106_v54 = vmul.f32 0.0625, %v656_v48  ;;  %v135_v44 = vld [vmem:[%s11124_s0 + $0x3c0] sm:$0xff] }
  0xe2   :  { %v3589_v58 = vsel %vm3418_vm9, %v3588_v45, %v3584_v51  ;;  %v891_v51 = vsel %vm527_vm0, %v136_v38, 0.0 }
  0xe3   :  { %v3598_v59 = vrot.slane %v2107_v52, %v7233_v35  ;;  %v3593_v62 = vrot.slane %v2106_v54, %v7239_v39  ;;  %868 = vadd.xlane.f32.xlu1 %v867_v49  ;;  %865 = vadd.xlane.f32.xlu0 %v864_v50  ;;  %v888_v52 = vsel %vm527_vm0, %v135_v44, 0.0 }
  0xe4   :  { %v665_v63 = vpop.xlane.xlu1 %664  ;;  %v662_v0 = vpop.xlane.xlu0 %661 }
  0xe5   :  { %v3594_v3 = vsel %vm3425_vm10, %v3593_v62, %v3589_v58  ;;  %v2109_v4 = vmul.f32 0.0625, %v665_v63  ;;  %v2108_v5 = vmul.f32 0.0625, %v662_v0  ;;  %v138_v58 = vld [vmem:[%s11124_s0 + $0x3d8] sm:$0xff] }
  0xe6   :  { %v3599_v8 = vsel %vm3432_vm11, %v3598_v59, %v3594_v3  ;;  %v137_v59 = vld [vmem:[%s11124_s0 + $0x3d0] sm:$0xff] }
  0xe7   :  { %v3608_v10 = vrot.slane %v2109_v4, %v7253_v53  ;;  %v3603_v11 = vrot.slane %v2108_v5, %v7259_v57  ;;  %874 = vadd.xlane.f32.xlu1 %v873_v1  ;;  %871 = vadd.xlane.f32.xlu0 %v870_v2  ;;  %v897_v2 = vsel %vm527_vm0, %v138_v58, 0.0  ;;  %v894_v3 = vsel %vm527_vm0, %v137_v59, 0.0 }
  0xe8   :  { %v671_v12 = vpop.xlane.xlu1 %670  ;;  %v668_v15 = vpop.xlane.xlu0 %667 }
  0xe9   :  { %v3604_v20 = vsel %vm11128_vm12, %v3603_v11, %v3599_v8  ;;  %v2111_v21 = vmul.f32 0.0625, %v671_v12  ;;  %v2110_v16 = vmul.f32 0.0625, %v668_v15  ;;  %v139_v8 = vld [vmem:[%s11124_s0 + $0x3e0] sm:$0xff] }
  0xea   :  { %v3609_v24 = vsel %vm3446_vm13, %v3608_v10, %v3604_v20  ;;  %v900_v20 = vsel %vm527_vm0, %v139_v8, 0.0 }
  0xeb   :  { %v3618_v25 = vrot.slane %v2111_v21, %v7278_v9  ;;  %v3613_v26 = vrot.slane %v2110_v16, %v7273_v6  ;;  %880 = vadd.xlane.f32.xlu1 %v879_v17  ;;  %877 = vadd.xlane.f32.xlu0 %v876_v18  ;;  %v903_v18 = vsel %vm527_vm0, %v140_v7, 0.0 }
  0xec   :  { %v677_v27 = vpop.xlane.xlu1 %676  ;;  %v674_v29 = vpop.xlane.xlu0 %673 }
  0xed   :  { %v2113_v36 = vmul.f32 0.0625, %v677_v27  ;;  %v2112_v37 = vmul.f32 0.0625, %v674_v29  ;;  %v3614_v45 = vsel %vm3453_vm14, %v3613_v26, %v3609_v24  ;;  %v141_v24 = vld [vmem:[%s11124_s0 + $0x3f0] sm:$0xff] }
  0xee   :  { %v7496_v46 = vsel %vm3460_vm15, %v3618_v25, %v3614_v45  ;;  %v144_v45 = vld [vmem:[%s11124_s0 + $0x408] sm:$0xff] }
  0xef   :  { %v3627_v47 = vrot.slane %v2113_v36, %v7156_v31  ;;  %v3623_v48 = vrot.slane %v2112_v37, %v7150_v28  ;;  %886 = vadd.xlane.f32.xlu1 %v885_v33  ;;  %883 = vadd.xlane.f32.xlu0 %v882_v34  ;;  %v909_v34 = vsel %vm527_vm0, %v142_v23, 0.0  ;;  %v906_v36 = vsel %vm527_vm0, %v141_v24, 0.0 }
  0xf0   :  { %v683_v49 = vpop.xlane.xlu1 %682  ;;  %v680_v50 = vpop.xlane.xlu0 %679 }
  0xf1   :  { %v3628_v54 = vsel %vm3362_vm1, %v3627_v47, %v3623_v48  ;;  %v2115_v55 = vmul.f32 0.0625, %v683_v49  ;;  %v2114_v56 = vmul.f32 0.0625, %v680_v50  ;;  %v143_v47 = vld [vmem:[%s11124_s0 + $0x400] sm:$0xff] }
  0xf3   :  { %v3637_v62 = vrot.slane %v2115_v55, %v7153_v30  ;;  %v3632_v63 = vrot.slane %v2114_v56, %v7159_v32  ;;  %892 = vadd.xlane.f32.xlu1 %v891_v51  ;;  %889 = vadd.xlane.f32.xlu0 %v888_v52  ;;  %v912_v55 = vsel %vm527_vm0, %v143_v47, 0.0 }
  0xf4   :  { %v689_v0 = vpop.xlane.xlu1 %688  ;;  %v686_v1 = vpop.xlane.xlu0 %685 }
  0xf5   :  { %v3633_v4 = vsel %vm3369_vm2, %v3632_v63, %v3628_v54  ;;  %v2117_v5 = vmul.f32 0.0625, %v689_v0  ;;  %v2116_v13 = vmul.f32 0.0625, %v686_v1  ;;  %v915_v54 = vsel %vm527_vm0, %v144_v45, 0.0  ;;  %v145_v63 = vld [vmem:[%s11124_s0 + $0x410] sm:$0xff] }
  0xf6   :  { %v3638_v10 = vsel %vm3376_vm3, %v3637_v62, %v3633_v4  ;;  %v146_v62 = vld [vmem:[%s11124_s0 + $0x418] sm:$0xff] }
  0xf7   :  { %v3647_v11 = vrot.slane %v2117_v5, %v7170_v42  ;;  %v3642_v12 = vrot.slane %v2116_v13, %v7173_v43  ;;  %898 = vadd.xlane.f32.xlu1 %v897_v2  ;;  %895 = vadd.xlane.f32.xlu0 %v894_v3  ;;  %v921_v5 = vsel %vm527_vm0, %v146_v62, 0.0  ;;  %v918_v13 = vsel %vm527_vm0, %v145_v63, 0.0 }
  0xf8   :  { %v695_v15 = vpop.xlane.xlu1 %694  ;;  %v692_v17 = vpop.xlane.xlu0 %691 }
  0xf9   :  { %v3643_v21 = vsel %vm3383_vm4, %v3642_v12, %v3638_v10  ;;  %v2119_v16 = vmul.f32 0.0625, %v695_v15  ;;  %v2118_v22 = vmul.f32 0.0625, %v692_v17  ;;  %v147_v12 = vld [vmem:[%s11124_s0 + $0x420] sm:$0xff] }
  0xfa   :  { %v3648_v25 = vsel %vm3390_vm5, %v3647_v11, %v3643_v21  ;;  %v148_v11 = vld [vmem:[%s11124_s0 + $0x428] sm:$0xff] }
  0xfb   :  { %v3657_v26 = vrot.slane %v2119_v16, %v7192_v60  ;;  %v3652_v27 = vrot.slane %v2118_v22, %v7195_v61  ;;  %904 = vadd.xlane.f32.xlu1 %v903_v18  ;;  %901 = vadd.xlane.f32.xlu0 %v900_v20  ;;  %v927_v16 = vsel %vm527_vm0, %v148_v11, 0.0  ;;  %v924_v22 = vsel %vm527_vm0, %v147_v12, 0.0 }
  0xfc   :  { %v701_v29 = vpop.xlane.xlu1 %700  ;;  %v698_v33 = vpop.xlane.xlu0 %697 }
  0xfd   :  { %v3653_v37 = vsel %vm11136_vm6, %v3652_v27, %v3648_v25  ;;  %v2121_v38 = vmul.f32 0.0625, %v701_v29  ;;  %v2120_v44 = vmul.f32 0.0625, %v698_v33  ;;  %v149_v27 = vld [vmem:[%s11124_s0 + $0x430] sm:$0xff] }
  0xfe   :  { %v3658_v48 = vsel %vm3404_vm7, %v3657_v26, %v3653_v37  ;;  %v150_v26 = vld [vmem:[%s11124_s0 + $0x438] sm:$0xff] }
  0xff   :  { %v3667_v49 = vrot.slane %v2121_v38, %v7213_v14  ;;  %v3662_v50 = vrot.slane %v2120_v44, %v7219_v19  ;;  %910 = vadd.xlane.f32.xlu1 %v909_v34  ;;  %907 = vadd.xlane.f32.xlu0 %v906_v36  ;;  %v933_v38 = vsel %vm527_vm0, %v150_v26, 0.0  ;;  %v930_v44 = vsel %vm527_vm0, %v149_v27, 0.0 }
 0x100   :  { %v707_v51 = vpop.xlane.xlu1 %706  ;;  %v704_v52 = vpop.xlane.xlu0 %703 }
 0x101   :  { %v3663_v56 = vsel %vm11129_vm8, %v3662_v50, %v3658_v48  ;;  %v2123_v58 = vmul.f32 0.0625, %v707_v51  ;;  %v2122_v59 = vmul.f32 0.0625, %v704_v52  ;;  %v152_v48 = vld [vmem:[%s11124_s0 + $0x448] sm:$0xff] }
 0x102   :  { %v3668_v0 = vsel %vm3418_vm9, %v3667_v49, %v3663_v56  ;;  %v151_v49 = vld [vmem:[%s11124_s0 + $0x440] sm:$0xff] }
 0x103   :  { %v3677_v1 = vrot.slane %v2123_v58, %v7233_v35  ;;  %v3672_v2 = vrot.slane %v2122_v59, %v7239_v39  ;;  %916 = vadd.xlane.f32.xlu1 %v915_v54  ;;  %913 = vadd.xlane.f32.xlu0 %v912_v55  ;;  %v939_v58 = vsel %vm527_vm0, %v152_v48, 0.0  ;;  %v936_v59 = vsel %vm527_vm0, %v151_v49, 0.0 }
 0x104   :  { %v713_v3 = vpop.xlane.xlu1 %712  ;;  %v710_v4 = vpop.xlane.xlu0 %709 }
 0x105   :  { %v3673_v7 = vsel %vm3425_vm10, %v3672_v2, %v3668_v0  ;;  %v2125_v8 = vmul.f32 0.0625, %v713_v3  ;;  %v2124_v10 = vmul.f32 0.0625, %v710_v4  ;;  %v153_v2 = vld [vmem:[%s11124_s0 + $0x450] sm:$0xff] }
 0x106   :  { %v3678_v15 = vsel %vm3432_vm11, %v3677_v1, %v3673_v7  ;;  %v154_v1 = vld [vmem:[%s11124_s0 + $0x458] sm:$0xff] }
 0x107   :  { %v3687_v17 = vrot.slane %v2125_v8, %v7253_v53  ;;  %v3682_v18 = vrot.slane %v2124_v10, %v7259_v57  ;;  %922 = vadd.xlane.f32.xlu1 %v921_v5  ;;  %919 = vadd.xlane.f32.xlu0 %v918_v13  ;;  %v945_v7 = vsel %vm527_vm0, %v154_v1, 0.0  ;;  %v942_v8 = vsel %vm527_vm0, %v153_v2, 0.0 }
 0x108   :  { %v719_v20 = vpop.xlane.xlu1 %718  ;;  %v716_v21 = vpop.xlane.xlu0 %715 }
 0x109   :  { %v3683_v23 = vsel %vm11128_vm12, %v3682_v18, %v3678_v15  ;;  %v2127_v24 = vmul.f32 0.0625, %v719_v20  ;;  %v2126_v25 = vmul.f32 0.0625, %v716_v21  ;;  %v156_v15 = vld [vmem:[%s11124_s0 + $0x468] sm:$0xff] }
 0x10a   :  { %v3688_v29 = vsel %vm3446_vm13, %v3687_v17, %v3683_v23  ;;  %v155_v17 = vld [vmem:[%s11124_s0 + $0x460] sm:$0xff]  ;;  %v951_v23 = vsel %vm527_vm0, %v156_v15, 0.0 }
 0x10b   :  { %v3697_v33 = vrot.slane %v2127_v24, %v7278_v9  ;;  %v3692_v34 = vrot.slane %v2126_v25, %v7273_v6  ;;  %928 = vadd.xlane.f32.xlu1 %v927_v16  ;;  %925 = vadd.xlane.f32.xlu0 %v924_v22  ;;  %v948_v24 = vsel %vm527_vm0, %v155_v17, 0.0 }
 0x10c   :  { %v725_v36 = vpop.xlane.xlu1 %724  ;;  %v722_v37 = vpop.xlane.xlu0 %721 }
 0x10d   :  { %v2129_v45 = vmul.f32 0.0625, %v725_v36  ;;  %v2128_v47 = vmul.f32 0.0625, %v722_v37  ;;  %v3693_v50 = vsel %vm3453_vm14, %v3692_v34, %v3688_v29  ;;  %v158_v29 = vld [vmem:[%s11124_s0 + $0x478] sm:$0xff] }
 0x10e   :  { %v7593_v51 = vsel %vm3460_vm15, %v3697_v33, %v3693_v50  ;;  %v157_v33 = vld [vmem:[%s11124_s0 + $0x470] sm:$0xff] }
 0x10f   :  { %v3706_v52 = vrot.slane %v2129_v45, %v7156_v31  ;;  %v3702_v54 = vrot.slane %v2128_v47, %v7150_v28  ;;  %934 = vadd.xlane.f32.xlu1 %v933_v38  ;;  %931 = vadd.xlane.f32.xlu0 %v930_v44  ;;  %v957_v45 = vsel %vm527_vm0, %v158_v29, 0.0  ;;  %v954_v47 = vsel %vm527_vm0, %v157_v33, 0.0 }
 0x110   :  { %v731_v55 = vpop.xlane.xlu1 %730  ;;  %v728_v56 = vpop.xlane.xlu0 %727 }
 0x111   :  { %v3707_v62 = vsel %vm3362_vm1, %v3706_v52, %v3702_v54  ;;  %v2131_v63 = vmul.f32 0.0625, %v731_v55  ;;  %v2130_v0 = vmul.f32 0.0625, %v728_v56  ;;  %v160_v52 = vld [vmem:[%s11124_s0 + $0x488] sm:$0xff]  ;;  %v159_v54 = vld [vmem:[%s11124_s0 + $0x480] sm:$0xff] }
 0x113   :  { %v3716_v3 = vrot.slane %v2131_v63, %v7153_v30  ;;  %v3711_v4 = vrot.slane %v2130_v0, %v7159_v32  ;;  %940 = vadd.xlane.f32.xlu1 %v939_v58  ;;  %937 = vadd.xlane.f32.xlu0 %v936_v59  ;;  %v963_v63 = vsel %vm527_vm0, %v160_v52, 0.0  ;;  %v960_v0 = vsel %vm527_vm0, %v159_v54, 0.0 }
 0x114   :  { %v737_v5 = vpop.xlane.xlu1 %736  ;;  %v734_v13 = vpop.xlane.xlu0 %733 }
 0x115   :  { %v3712_v10 = vsel %vm3369_vm2, %v3711_v4, %v3707_v62  ;;  %v2133_v11 = vmul.f32 0.0625, %v737_v5  ;;  %v2132_v12 = vmul.f32 0.0625, %v734_v13  ;;  %v162_v4 = vld [vmem:[%s11124_s0 + $0x498] sm:$0xff]  ;;  %v161_v5 = vld [vmem:[%s11124_s0 + $0x490] sm:$0xff] }
 0x116   :  { %v3717_v18 = vsel %vm3376_vm3, %v3716_v3, %v3712_v10  ;;  %v966_v15 = vsel %vm527_vm0, %v161_v5, 0.0 }
 0x117   :  { %v3726_v20 = vrot.slane %v2133_v11, %v7170_v42  ;;  %v3721_v21 = vrot.slane %v2132_v12, %v7173_v43  ;;  %946 = vadd.xlane.f32.xlu1 %v945_v7  ;;  %943 = vadd.xlane.f32.xlu0 %v942_v8  ;;  %v969_v12 = vsel %vm527_vm0, %v162_v4, 0.0 }
 0x118   :  { %v743_v16 = vpop.xlane.xlu1 %742  ;;  %v740_v22 = vpop.xlane.xlu0 %739 }
 0x119   :  { %v3722_v25 = vsel %vm3383_vm4, %v3721_v21, %v3717_v18  ;;  %v2135_v26 = vmul.f32 0.0625, %v743_v16  ;;  %v2134_v27 = vmul.f32 0.0625, %v740_v22  ;;  %v164_v21 = vld [vmem:[%s11124_s0 + $0x4a8] sm:$0xff]  ;;  %v163_v16 = vld [vmem:[%s11124_s0 + $0x4a0] sm:$0xff] }
 0x11a   :  { %v3727_v34 = vsel %vm3390_vm5, %v3726_v20, %v3722_v25  ;;  %v972_v29 = vsel %vm527_vm0, %v163_v16, 0.0 }
 0x11b   :  { %v3736_v36 = vrot.slane %v2135_v26, %v7192_v60  ;;  %v3731_v37 = vrot.slane %v2134_v27, %v7195_v61  ;;  %952 = vadd.xlane.f32.xlu1 %v951_v23  ;;  %949 = vadd.xlane.f32.xlu0 %v948_v24  ;;  %v975_v27 = vsel %vm527_vm0, %v164_v21, 0.0 }
 0x11c   :  { %v749_v38 = vpop.xlane.xlu1 %748  ;;  %v746_v44 = vpop.xlane.xlu0 %745 }
 0x11d   :  { %v3732_v48 = vsel %vm11136_vm6, %v3731_v37, %v3727_v34  ;;  %v2137_v49 = vmul.f32 0.0625, %v749_v38  ;;  %v2136_v50 = vmul.f32 0.0625, %v746_v44  ;;  %v166_v37 = vld [vmem:[%s11124_s0 + $0x4b8] sm:$0xff]  ;;  %v165_v38 = vld [vmem:[%s11124_s0 + $0x4b0] sm:$0xff] }
 0x11e   :  { %v3737_v55 = vsel %vm3404_vm7, %v3736_v36, %v3732_v48  ;;  %v978_v52 = vsel %vm527_vm0, %v165_v38, 0.0 }
 0x11f   :  { %v3746_v56 = vrot.slane %v2137_v49, %v7213_v14  ;;  %v3741_v58 = vrot.slane %v2136_v50, %v7219_v19  ;;  %958 = vadd.xlane.f32.xlu1 %v957_v45  ;;  %955 = vadd.xlane.f32.xlu0 %v954_v47  ;;  %v981_v50 = vsel %vm527_vm0, %v166_v37, 0.0 }
 0x120   :  { %v755_v59 = vpop.xlane.xlu1 %754  ;;  %v752_v62 = vpop.xlane.xlu0 %751 }
 0x121   :  { %v3742_v1 = vsel %vm11129_vm8, %v3741_v58, %v3737_v55  ;;  %v2139_v2 = vmul.f32 0.0625, %v755_v59  ;;  %v2138_v3 = vmul.f32 0.0625, %v752_v62  ;;  %v167_v58 = vld [vmem:[%s11124_s0 + $0x4c0] sm:$0xff] }
 0x122   :  { %v3747_v13 = vsel %vm3418_vm9, %v3746_v56, %v3742_v1  ;;  %v168_v56 = vld [vmem:[%s11124_s0 + $0x4c8] sm:$0xff]  ;;  %v984_v4 = vsel %vm527_vm0, %v167_v58, 0.0 }
 0x123   :  { %v3756_v7 = vrot.slane %v2139_v2, %v7233_v35  ;;  %v3751_v8 = vrot.slane %v2138_v3, %v7239_v39  ;;  %964 = vadd.xlane.f32.xlu1 %v963_v63  ;;  %961 = vadd.xlane.f32.xlu0 %v960_v0  ;;  %v987_v3 = vsel %vm527_vm0, %v168_v56, 0.0 }
 0x124   :  { %v761_v10 = vpop.xlane.xlu1 %760  ;;  %v758_v11 = vpop.xlane.xlu0 %757 }
 0x125   :  { %v3752_v17 = vsel %vm3425_vm10, %v3751_v8, %v3747_v13  ;;  %v2141_v18 = vmul.f32 0.0625, %v761_v10  ;;  %v2140_v20 = vmul.f32 0.0625, %v758_v11  ;;  %v170_v8 = vld [vmem:[%s11124_s0 + $0x4d8] sm:$0xff]  ;;  %v169_v10 = vld [vmem:[%s11124_s0 + $0x4d0] sm:$0xff] }
 0x126   :  { %v3757_v22 = vsel %vm3432_vm11, %v3756_v7, %v3752_v17 }
 0x127   :  { %v3766_v23 = vrot.slane %v2141_v18, %v7253_v53  ;;  %v3761_v24 = vrot.slane %v2140_v20, %v7259_v57  ;;  %970 = vadd.xlane.f32.xlu1 %v969_v12  ;;  %967 = vadd.xlane.f32.xlu0 %v966_v15  ;;  %v993_v18 = vsel %vm527_vm0, %v170_v8, 0.0  ;;  %v990_v20 = vsel %vm527_vm0, %v169_v10, 0.0 }
 0x128   :  { %v767_v25 = vpop.xlane.xlu1 %766  ;;  %v764_v26 = vpop.xlane.xlu0 %763 }
 0x129   :  { %v3762_v33 = vsel %vm11128_vm12, %v3761_v24, %v3757_v22  ;;  %v2143_v34 = vmul.f32 0.0625, %v767_v25  ;;  %v2142_v36 = vmul.f32 0.0625, %v764_v26  ;;  %v171_v24 = vld [vmem:[%s11124_s0 + $0x4e0] sm:$0xff] }
 0x12a   :  { %v3767_v44 = vsel %vm3446_vm13, %v3766_v23, %v3762_v33  ;;  %v172_v23 = vld [vmem:[%s11124_s0 + $0x4e8] sm:$0xff] }
 0x12b   :  { %v3776_v45 = vrot.slane %v2143_v34, %v7278_v9  ;;  %v3771_v47 = vrot.slane %v2142_v36, %v7273_v6  ;;  %976 = vadd.xlane.f32.xlu1 %v975_v27  ;;  %973 = vadd.xlane.f32.xlu0 %v972_v29  ;;  %v999_v34 = vsel %vm527_vm0, %v172_v23, 0.0  ;;  %v996_v36 = vsel %vm527_vm0, %v171_v24, 0.0 }
 0x12c   :  { %v773_v48 = vpop.xlane.xlu1 %772  ;;  %v770_v49 = vpop.xlane.xlu0 %769 }
 0x12d   :  { %v2145_v54 = vmul.f32 0.0625, %v773_v48  ;;  %v2144_v55 = vmul.f32 0.0625, %v770_v49  ;;  %v3772_v59 = vsel %vm3453_vm14, %v3771_v47, %v3767_v44  ;;  %v173_v47 = vld [vmem:[%s11124_s0 + $0x4f0] sm:$0xff] }
 0x12e   :  { %v7690_v62 = vsel %vm3460_vm15, %v3776_v45, %v3772_v59  ;;  %v174_v45 = vld [vmem:[%s11124_s0 + $0x4f8] sm:$0xff]  ;;  %v1002_v56 = vsel %vm527_vm0, %v173_v47, 0.0 }
 0x12f   :  { %11143 = vst [vmem:[#allocation9_spill] sm:$0xff] %v7690_v62  ;;  %v3785_v63 = vrot.slane %v2145_v54, %v7156_v31  ;;  %v3781_v0 = vrot.slane %v2144_v55, %v7150_v28  ;;  %982 = vadd.xlane.f32.xlu1 %v981_v50  ;;  %979 = vadd.xlane.f32.xlu0 %v978_v52  ;;  %v1005_v55 = vsel %vm527_vm0, %v174_v45, 0.0 }
 0x130   :  { %v779_v1 = vpop.xlane.xlu1 %778  ;;  %v776_v2 = vpop.xlane.xlu0 %775 }
 0x131   :  { %v3786_v5 = vsel %vm3362_vm1, %v3785_v63, %v3781_v0  ;;  %v2147_v13 = vmul.f32 0.0625, %v779_v1  ;;  %v2146_v7 = vmul.f32 0.0625, %v776_v2  ;;  %v176_v0 = vld [vmem:[%s11124_s0 + $0x508] sm:$0xff]  ;;  %v175_v1 = vld [vmem:[%s11124_s0 + $0x500] sm:$0xff] }
 0x132   :  { %v1008_v8 = vsel %vm527_vm0, %v175_v1, 0.0 }
 0x133   :  { %v3795_v11 = vrot.slane %v2147_v13, %v7153_v30  ;;  %v3790_v12 = vrot.slane %v2146_v7, %v7159_v32  ;;  %988 = vadd.xlane.f32.xlu1 %v987_v3  ;;  %985 = vadd.xlane.f32.xlu0 %v984_v4  ;;  %v1011_v7 = vsel %vm527_vm0, %v176_v0, 0.0 }
 0x134   :  { %v785_v15 = vpop.xlane.xlu1 %784  ;;  %v782_v17 = vpop.xlane.xlu0 %781 }
 0x135   :  { %v3791_v21 = vsel %vm3369_vm2, %v3790_v12, %v3786_v5  ;;  %v2149_v16 = vmul.f32 0.0625, %v785_v15  ;;  %v2148_v22 = vmul.f32 0.0625, %v782_v17  ;;  %v178_v15 = vld [vmem:[%s11124_s0 + $0x518] sm:$0xff]  ;;  %v177_v17 = vld [vmem:[%s11124_s0 + $0x510] sm:$0xff] }
 0x136   :  { %v3796_v25 = vsel %vm3376_vm3, %v3795_v11, %v3791_v21  ;;  %v1017_v23 = vsel %vm527_vm0, %v178_v15, 0.0  ;;  %v1014_v24 = vsel %vm527_vm0, %v177_v17, 0.0 }
 0x137   :  { %v3805_v26 = vrot.slane %v2149_v16, %v7170_v42  ;;  %v3800_v27 = vrot.slane %v2148_v22, %v7173_v43  ;;  %994 = vadd.xlane.f32.xlu1 %v993_v18  ;;  %991 = vadd.xlane.f32.xlu0 %v990_v20 }
 0x138   :  { %v791_v29 = vpop.xlane.xlu1 %790  ;;  %v788_v33 = vpop.xlane.xlu0 %787 }
 0x139   :  { %v3801_v37 = vsel %vm3383_vm4, %v3800_v27, %v3796_v25  ;;  %v2151_v38 = vmul.f32 0.0625, %v791_v29  ;;  %v2150_v44 = vmul.f32 0.0625, %v788_v33  ;;  %v180_v29 = vld [vmem:[%s11124_s0 + $0x528] sm:$0xff]  ;;  %v179_v33 = vld [vmem:[%s11124_s0 + $0x520] sm:$0xff] }
 0x13a   :  { %v3806_v48 = vsel %vm3390_vm5, %v3805_v26, %v3801_v37  ;;  %v1023_v45 = vsel %vm527_vm0, %v180_v29, 0.0  ;;  %v1020_v47 = vsel %vm527_vm0, %v179_v33, 0.0 }
 0x13b   :  { %v3815_v49 = vrot.slane %v2151_v38, %v7192_v60  ;;  %v3810_v50 = vrot.slane %v2150_v44, %v7195_v61  ;;  %1000 = vadd.xlane.f32.xlu1 %v999_v34  ;;  %997 = vadd.xlane.f32.xlu0 %v996_v36 }
 0x13c   :  { %v797_v52 = vpop.xlane.xlu1 %796  ;;  %v794_v54 = vpop.xlane.xlu0 %793 }
 0x13d   :  { %v3811_v58 = vsel %vm11136_vm6, %v3810_v50, %v3806_v48  ;;  %v2153_v59 = vmul.f32 0.0625, %v797_v52  ;;  %v2152_v63 = vmul.f32 0.0625, %v794_v54  ;;  %v182_v52 = vld [vmem:[%s11124_s0 + $0x538] sm:$0xff]  ;;  %v181_v54 = vld [vmem:[%s11124_s0 + $0x530] sm:$0xff] }
 0x13e   :  { %v3816_v2 = vsel %vm3404_vm7, %v3815_v49, %v3811_v58  ;;  %v1029_v0 = vsel %vm527_vm0, %v182_v52, 0.0  ;;  %v1026_v1 = vsel %vm527_vm0, %v181_v54, 0.0 }
 0x13f   :  { %v3825_v3 = vrot.slane %v2153_v59, %v7213_v14  ;;  %v3820_v4 = vrot.slane %v2152_v63, %v7219_v19  ;;  %1006 = vadd.xlane.f32.xlu1 %v1005_v55  ;;  %1003 = vadd.xlane.f32.xlu0 %v1002_v56 }
 0x140   :  { %v803_v5 = vpop.xlane.xlu1 %802  ;;  %v800_v13 = vpop.xlane.xlu0 %799 }
 0x141   :  { %v3821_v10 = vsel %vm11129_vm8, %v3820_v4, %v3816_v2  ;;  %v2155_v11 = vmul.f32 0.0625, %v803_v5  ;;  %v2154_v12 = vmul.f32 0.0625, %v800_v13  ;;  %v184_v4 = vld [vmem:[%s11124_s0 + $0x548] sm:$0xff]  ;;  %v183_v5 = vld [vmem:[%s11124_s0 + $0x540] sm:$0xff] }
 0x142   :  { %v3826_v18 = vsel %vm3418_vm9, %v3825_v3, %v3821_v10  ;;  %v1035_v15 = vsel %vm527_vm0, %v184_v4, 0.0  ;;  %v1032_v17 = vsel %vm527_vm0, %v183_v5, 0.0 }
 0x143   :  { %v3835_v20 = vrot.slane %v2155_v11, %v7233_v35  ;;  %v3830_v21 = vrot.slane %v2154_v12, %v7239_v39  ;;  %1012 = vadd.xlane.f32.xlu1 %v1011_v7  ;;  %1009 = vadd.xlane.f32.xlu0 %v1008_v8 }
 0x144   :  { %v809_v16 = vpop.xlane.xlu1 %808  ;;  %v806_v22 = vpop.xlane.xlu0 %805 }
 0x145   :  { %v3831_v25 = vsel %vm3425_vm10, %v3830_v21, %v3826_v18  ;;  %v2157_v26 = vmul.f32 0.0625, %v809_v16  ;;  %v2156_v27 = vmul.f32 0.0625, %v806_v22  ;;  %v186_v16 = vld [vmem:[%s11124_s0 + $0x558] sm:$0xff]  ;;  %v185_v22 = vld [vmem:[%s11124_s0 + $0x550] sm:$0xff] }
 0x146   :  { %v3836_v34 = vsel %vm3432_vm11, %v3835_v20, %v3831_v25  ;;  %v1038_v29 = vsel %vm527_vm0, %v185_v22, 0.0 }
 0x147   :  { %v3845_v36 = vrot.slane %v2157_v26, %v7253_v53  ;;  %v3840_v37 = vrot.slane %v2156_v27, %v7259_v57  ;;  %1018 = vadd.xlane.f32.xlu1 %v1017_v23  ;;  %1015 = vadd.xlane.f32.xlu0 %v1014_v24  ;;  %v1041_v27 = vsel %vm527_vm0, %v186_v16, 0.0 }
 0x148   :  { %v815_v38 = vpop.xlane.xlu1 %814  ;;  %v812_v44 = vpop.xlane.xlu0 %811 }
 0x149   :  { %v3841_v48 = vsel %vm11128_vm12, %v3840_v37, %v3836_v34  ;;  %v2159_v49 = vmul.f32 0.0625, %v815_v38  ;;  %v2158_v50 = vmul.f32 0.0625, %v812_v44  ;;  %v188_v37 = vld [vmem:[%s11124_s0 + $0x568] sm:$0xff]  ;;  %v187_v38 = vld [vmem:[%s11124_s0 + $0x560] sm:$0xff] }
 0x14a   :  { %v3846_v55 = vsel %vm3446_vm13, %v3845_v36, %v3841_v48  ;;  %v1044_v52 = vsel %vm527_vm0, %v187_v38, 0.0 }
 0x14b   :  { %v3855_v56 = vrot.slane %v2159_v49, %v7278_v9  ;;  %v3850_v58 = vrot.slane %v2158_v50, %v7273_v6  ;;  %1024 = vadd.xlane.f32.xlu1 %v1023_v45  ;;  %1021 = vadd.xlane.f32.xlu0 %v1020_v47  ;;  %v1047_v50 = vsel %vm527_vm0, %v188_v37, 0.0 }
 0x14c   :  { %v821_v59 = vpop.xlane.xlu1 %820  ;;  %v818_v63 = vpop.xlane.xlu0 %817 }
 0x14d   :  { %v2161_v2 = vmul.f32 0.0625, %v821_v59  ;;  %v2160_v3 = vmul.f32 0.0625, %v818_v63  ;;  %v3851_v13 = vsel %vm3453_vm14, %v3850_v58, %v3846_v55  ;;  %v190_v58 = vld [vmem:[%s11124_s0 + $0x578] sm:$0xff]  ;;  %v189_v59 = vld [vmem:[%s11124_s0 + $0x570] sm:$0xff] }
 0x14e   :  { %v7787_v7 = vsel %vm3460_vm15, %v3855_v56, %v3851_v13  ;;  %v1053_v4 = vsel %vm527_vm0, %v190_v58, 0.0  ;;  %v1050_v5 = vsel %vm527_vm0, %v189_v59, 0.0 }
 0x14f   :  { %v3864_v8 = vrot.slane %v2161_v2, %v7156_v31  ;;  %v3860_v10 = vrot.slane %v2160_v3, %v7150_v28  ;;  %1030 = vadd.xlane.f32.xlu1 %v1029_v0  ;;  %1027 = vadd.xlane.f32.xlu0 %v1026_v1 }
 0x150   :  { %v827_v11 = vpop.xlane.xlu1 %826  ;;  %v824_v12 = vpop.xlane.xlu0 %823 }
 0x151   :  { %v3865_v18 = vsel %vm3362_vm1, %v3864_v8, %v3860_v10  ;;  %v2163_v20 = vmul.f32 0.0625, %v827_v11  ;;  %v2162_v21 = vmul.f32 0.0625, %v824_v12  ;;  %v192_v11 = vld [vmem:[%s11124_s0 + $0x588] sm:$0xff]  ;;  %v191_v12 = vld [vmem:[%s11124_s0 + $0x580] sm:$0xff] }
 0x152   :  { %v1059_v16 = vsel %vm527_vm0, %v192_v11, 0.0  ;;  %v1056_v22 = vsel %vm527_vm0, %v191_v12, 0.0 }
 0x153   :  { %v3874_v23 = vrot.slane %v2163_v20, %v7153_v30  ;;  %v3869_v24 = vrot.slane %v2162_v21, %v7159_v32  ;;  %1036 = vadd.xlane.f32.xlu1 %v1035_v15  ;;  %1033 = vadd.xlane.f32.xlu0 %v1032_v17 }
 0x154   :  { %v833_v25 = vpop.xlane.xlu1 %832  ;;  %v830_v26 = vpop.xlane.xlu0 %829 }
 0x155   :  { %v3870_v33 = vsel %vm3369_vm2, %v3869_v24, %v3865_v18  ;;  %v2165_v34 = vmul.f32 0.0625, %v833_v25  ;;  %v2164_v36 = vmul.f32 0.0625, %v830_v26  ;;  %v194_v26 = vld [vmem:[%s11124_s0 + $0x598] sm:$0xff] }
 0x156   :  { %v3875_v44 = vsel %vm3376_vm3, %v3874_v23, %v3870_v33  ;;  %v1065_v38 = vsel %vm527_vm0, %v194_v26, 0.0 }
 0x157   :  { %v3884_v45 = vrot.slane %v2165_v34, %v7170_v42  ;;  %v3879_v47 = vrot.slane %v2164_v36, %v7173_v43  ;;  %1042 = vadd.xlane.f32.xlu1 %v1041_v27  ;;  %1039 = vadd.xlane.f32.xlu0 %v1038_v29  ;;  %v193_v27 = vld [vmem:[%s11124_s0 + $0x590] sm:$0xff] }
 0x158   :  { %v839_v48 = vpop.xlane.xlu1 %838  ;;  %v836_v49 = vpop.xlane.xlu0 %835 }
 0x159   :  { %v3880_v54 = vsel %vm3383_vm4, %v3879_v47, %v3875_v44  ;;  %v2167_v55 = vmul.f32 0.0625, %v839_v48  ;;  %v2166_v56 = vmul.f32 0.0625, %v836_v49  ;;  %v1062_v44 = vsel %vm527_vm0, %v193_v27, 0.0  ;;  %v196_v49 = vld [vmem:[%s11124_s0 + $0x5a8] sm:$0xff] }
 0x15a   :  { %v3885_v63 = vsel %vm3390_vm5, %v3884_v45, %v3880_v54  ;;  %v1071_v59 = vsel %vm527_vm0, %v196_v49, 0.0 }
 0x15b   :  { %v3894_v0 = vrot.slane %v2167_v55, %v7192_v60  ;;  %v3889_v1 = vrot.slane %v2166_v56, %v7195_v61  ;;  %1048 = vadd.xlane.f32.xlu1 %v1047_v50  ;;  %1045 = vadd.xlane.f32.xlu0 %v1044_v52  ;;  %v195_v50 = vld [vmem:[%s11124_s0 + $0x5a0] sm:$0xff] }
 0x15c   :  { %v845_v2 = vpop.xlane.xlu1 %844  ;;  %v842_v3 = vpop.xlane.xlu0 %841 }
 0x15d   :  { %v3890_v13 = vsel %vm11136_vm6, %v3889_v1, %v3885_v63  ;;  %v2169_v8 = vmul.f32 0.0625, %v845_v2  ;;  %v2168_v10 = vmul.f32 0.0625, %v842_v3  ;;  %v1068_v63 = vsel %vm527_vm0, %v195_v50, 0.0  ;;  %v198_v3 = vld [vmem:[%s11124_s0 + $0x5b8] sm:$0xff] }
 0x15e   :  { %v3895_v15 = vsel %vm3404_vm7, %v3894_v0, %v3890_v13  ;;  %v1077_v12 = vsel %vm527_vm0, %v198_v3, 0.0 }
 0x15f   :  { %v3904_v17 = vrot.slane %v2169_v8, %v7213_v14  ;;  %v3899_v18 = vrot.slane %v2168_v10, %v7219_v19  ;;  %1054 = vadd.xlane.f32.xlu1 %v1053_v4  ;;  %1051 = vadd.xlane.f32.xlu0 %v1050_v5  ;;  %v197_v4 = vld [vmem:[%s11124_s0 + $0x5b0] sm:$0xff] }
 0x160   :  { %v851_v20 = vpop.xlane.xlu1 %850  ;;  %v848_v21 = vpop.xlane.xlu0 %847 }
 0x161   :  { %v3900_v23 = vsel %vm11129_vm8, %v3899_v18, %v3895_v15  ;;  %v2171_v24 = vmul.f32 0.0625, %v851_v20  ;;  %v2170_v25 = vmul.f32 0.0625, %v848_v21  ;;  %v1074_v15 = vsel %vm527_vm0, %v197_v4, 0.0  ;;  %v200_v20 = vld [vmem:[%s11124_s0 + $0x5c8] sm:$0xff]  ;;  %v199_v21 = vld [vmem:[%s11124_s0 + $0x5c0] sm:$0xff] }
 0x162   :  { %v3905_v29 = vsel %vm3418_vm9, %v3904_v17, %v3900_v23  ;;  %v1083_v27 = vsel %vm527_vm0, %v200_v20, 0.0 }
 0x163   :  { %v3914_v33 = vrot.slane %v2171_v24, %v7233_v35  ;;  %v3909_v34 = vrot.slane %v2170_v25, %v7239_v39  ;;  %1060 = vadd.xlane.f32.xlu1 %v1059_v16  ;;  %1057 = vadd.xlane.f32.xlu0 %v1056_v22 }
 0x164   :  { %v857_v36 = vpop.xlane.xlu1 %856  ;;  %v854_v37 = vpop.xlane.xlu0 %853 }
 0x165   :  { %v3910_v45 = vsel %vm3425_vm10, %v3909_v34, %v3905_v29  ;;  %v2173_v47 = vmul.f32 0.0625, %v857_v36  ;;  %v2172_v48 = vmul.f32 0.0625, %v854_v37  ;;  %v1080_v29 = vsel %vm527_vm0, %v199_v21, 0.0  ;;  %v202_v37 = vld [vmem:[%s11124_s0 + $0x5d8] sm:$0xff] }
 0x166   :  { %v3915_v52 = vsel %vm3432_vm11, %v3914_v33, %v3910_v45  ;;  %v1089_v49 = vsel %vm527_vm0, %v202_v37, 0.0 }
 0x167   :  { %v3924_v54 = vrot.slane %v2173_v47, %v7253_v53  ;;  %v3919_v55 = vrot.slane %v2172_v48, %v7259_v57  ;;  %1066 = vadd.xlane.f32.xlu1 %v1065_v38  ;;  %1063 = vadd.xlane.f32.xlu0 %v1062_v44  ;;  %v201_v38 = vld [vmem:[%s11124_s0 + $0x5d0] sm:$0xff] }
 0x168   :  { %v863_v56 = vpop.xlane.xlu1 %862  ;;  %v860_v58 = vpop.xlane.xlu0 %859  ;;  %v1086_v50 = vsel %vm527_vm0, %v201_v38, 0.0 }
 0x169   :  { %v3920_v0 = vsel %vm11128_vm12, %v3919_v55, %v3915_v52  ;;  %v2175_v1 = vmul.f32 0.0625, %v863_v56  ;;  %v2174_v2 = vmul.f32 0.0625, %v860_v58  ;;  %v204_v56 = vld [vmem:[%s11124_s0 + $0x5e8] sm:$0xff]  ;;  %v203_v58 = vld [vmem:[%s11124_s0 + $0x5e0] sm:$0xff] }
 0x16a   :  { %v3925_v5 = vsel %vm3446_vm13, %v3924_v54, %v3920_v0  ;;  %v1095_v3 = vsel %vm527_vm0, %v204_v56, 0.0  ;;  %v1092_v4 = vsel %vm527_vm0, %v203_v58, 0.0 }
 0x16b   :  { %v3934_v13 = vrot.slane %v2175_v1, %v7278_v9  ;;  %v3929_v8 = vrot.slane %v2174_v2, %v7273_v6  ;;  %1072 = vadd.xlane.f32.xlu1 %v1071_v59  ;;  %1069 = vadd.xlane.f32.xlu0 %v1068_v63 }
 0x16c   :  { %v869_v10 = vpop.xlane.xlu1 %868  ;;  %v866_v11 = vpop.xlane.xlu0 %865 }
 0x16d   :  { %v2177_v17 = vmul.f32 0.0625, %v869_v10  ;;  %v2176_v18 = vmul.f32 0.0625, %v866_v11  ;;  %v3930_v16 = vsel %vm3453_vm14, %v3929_v8, %v3925_v5  ;;  %v206_v10 = vld [vmem:[%s11124_s0 + $0x5f8] sm:$0xff]  ;;  %v205_v11 = vld [vmem:[%s11124_s0 + $0x5f0] sm:$0xff] }
 0x16e   :  { %v7884_v22 = vsel %vm3460_vm15, %v3934_v13, %v3930_v16  ;;  %v1101_v21 = vsel %vm527_vm0, %v206_v10, 0.0  ;;  %v1098_v16 = vsel %vm527_vm0, %v205_v11, 0.0 }
 0x16f   :  { %11144 = vst [vmem:[#allocation10_spill] sm:$0xff] %v7884_v22  ;;  %v3943_v23 = vrot.slane %v2177_v17, %v7156_v31  ;;  %v3939_v24 = vrot.slane %v2176_v18, %v7150_v28  ;;  %1078 = vadd.xlane.f32.xlu1 %v1077_v12  ;;  %1075 = vadd.xlane.f32.xlu0 %v1074_v15 }
 0x170   :  { %v875_v25 = vpop.xlane.xlu1 %874  ;;  %v872_v26 = vpop.xlane.xlu0 %871 }
 0x171   :  { %v3944_v33 = vsel %vm3362_vm1, %v3943_v23, %v3939_v24  ;;  %v2179_v34 = vmul.f32 0.0625, %v875_v25  ;;  %v2178_v36 = vmul.f32 0.0625, %v872_v26  ;;  %v208_v26 = vld [vmem:[%s11124_s0 + $0x608] sm:$0xff] }
 0x172   :  { %v1107_v38 = vsel %vm527_vm0, %v208_v26, 0.0 }
 0x173   :  { %v3953_v44 = vrot.slane %v2179_v34, %v7153_v30  ;;  %v3948_v45 = vrot.slane %v2178_v36, %v7159_v32  ;;  %1084 = vadd.xlane.f32.xlu1 %v1083_v27  ;;  %1081 = vadd.xlane.f32.xlu0 %v1080_v29  ;;  %v207_v27 = vld [vmem:[%s11124_s0 + $0x600] sm:$0xff] }
 0x174   :  { %v881_v47 = vpop.xlane.xlu1 %880  ;;  %v878_v48 = vpop.xlane.xlu0 %877 }
 0x175   :  { %v3949_v52 = vsel %vm3369_vm2, %v3948_v45, %v3944_v33  ;;  %v2181_v54 = vmul.f32 0.0625, %v881_v47  ;;  %v2180_v55 = vmul.f32 0.0625, %v878_v48 }
 0x176   :  { %v3954_v59 = vsel %vm3376_vm3, %v3953_v44, %v3949_v52  ;;  %v1104_v44 = vsel %vm527_vm0, %v207_v27, 0.0 }
 0x177   :  { %v3963_v63 = vrot.slane %v2181_v54, %v7170_v42  ;;  %v3958_v0 = vrot.slane %v2180_v55, %v7173_v43  ;;  %1090 = vadd.xlane.f32.xlu1 %v1089_v49  ;;  %1087 = vadd.xlane.f32.xlu0 %v1086_v50  ;;  %v210_v49 = vld [vmem:[%s11124_s0 + $0x618] sm:$0xff]  ;;  %v209_v50 = vld [vmem:[%s11124_s0 + $0x610] sm:$0xff] }
 0x178   :  { %v887_v1 = vpop.xlane.xlu1 %886  ;;  %v884_v2 = vpop.xlane.xlu0 %883 }
 0x179   :  { %v3959_v5 = vsel %vm3383_vm4, %v3958_v0, %v3954_v59  ;;  %v2183_v13 = vmul.f32 0.0625, %v887_v1  ;;  %v2182_v8 = vmul.f32 0.0625, %v884_v2  ;;  %v1113_v59 = vsel %vm527_vm0, %v210_v49, 0.0 }
 0x17a   :  { %v3964_v12 = vsel %vm3390_vm5, %v3963_v63, %v3959_v5  ;;  %v1110_v63 = vsel %vm527_vm0, %v209_v50, 0.0 }
 0x17b   :  { %v3973_v15 = vrot.slane %v2183_v13, %v7192_v60  ;;  %v3968_v17 = vrot.slane %v2182_v8, %v7195_v61  ;;  %1096 = vadd.xlane.f32.xlu1 %v1095_v3  ;;  %1093 = vadd.xlane.f32.xlu0 %v1092_v4  ;;  %v212_v3 = vld [vmem:[%s11124_s0 + $0x628] sm:$0xff]  ;;  %v211_v4 = vld [vmem:[%s11124_s0 + $0x620] sm:$0xff] }
 0x17c   :  { %v893_v18 = vpop.xlane.xlu1 %892  ;;  %v890_v20 = vpop.xlane.xlu0 %889 }
 0x17d   :  { %v3969_v23 = vsel %vm11136_vm6, %v3968_v17, %v3964_v12  ;;  %v2185_v24 = vmul.f32 0.0625, %v893_v18  ;;  %v2184_v25 = vmul.f32 0.0625, %v890_v20  ;;  %v1119_v12 = vsel %vm527_vm0, %v212_v3, 0.0 }
 0x17e   :  { %v3974_v29 = vsel %vm3404_vm7, %v3973_v15, %v3969_v23  ;;  %v1116_v15 = vsel %vm527_vm0, %v211_v4, 0.0 }
 0x17f   :  { %v3983_v33 = vrot.slane %v2185_v24, %v7213_v14  ;;  %v3978_v34 = vrot.slane %v2184_v25, %v7219_v19  ;;  %1102 = vadd.xlane.f32.xlu1 %v1101_v21  ;;  %1099 = vadd.xlane.f32.xlu0 %v1098_v16  ;;  %v214_v21 = vld [vmem:[%s11124_s0 + $0x638] sm:$0xff]  ;;  %v213_v16 = vld [vmem:[%s11124_s0 + $0x630] sm:$0xff] }
 0x180   :  { %v899_v36 = vpop.xlane.xlu1 %898  ;;  %v896_v37 = vpop.xlane.xlu0 %895 }
 0x181   :  { %v3979_v45 = vsel %vm11129_vm8, %v3978_v34, %v3974_v29  ;;  %v2187_v47 = vmul.f32 0.0625, %v899_v36  ;;  %v2186_v48 = vmul.f32 0.0625, %v896_v37  ;;  %v1125_v29 = vsel %vm527_vm0, %v214_v21, 0.0  ;;  %v216_v37 = vld [vmem:[%s11124_s0 + $0x648] sm:$0xff] }
 0x182   :  { %v3984_v52 = vsel %vm3418_vm9, %v3983_v33, %v3979_v45  ;;  %v1122_v33 = vsel %vm527_vm0, %v213_v16, 0.0 }
 0x183   :  { %v3993_v54 = vrot.slane %v2187_v47, %v7233_v35  ;;  %v3988_v55 = vrot.slane %v2186_v48, %v7239_v39  ;;  %1108 = vadd.xlane.f32.xlu1 %v1107_v38  ;;  %1105 = vadd.xlane.f32.xlu0 %v1104_v44  ;;  %v215_v38 = vld [vmem:[%s11124_s0 + $0x640] sm:$0xff] }
 0x184   :  { %v905_v56 = vpop.xlane.xlu1 %904  ;;  %v902_v58 = vpop.xlane.xlu0 %901 }
 0x185   :  { %v3989_v0 = vsel %vm3425_vm10, %v3988_v55, %v3984_v52  ;;  %v2189_v1 = vmul.f32 0.0625, %v905_v56  ;;  %v2188_v2 = vmul.f32 0.0625, %v902_v58  ;;  %v1131_v52 = vsel %vm527_vm0, %v216_v37, 0.0 }
 0x186   :  { %v3994_v5 = vsel %vm3432_vm11, %v3993_v54, %v3989_v0  ;;  %v1128_v54 = vsel %vm527_vm0, %v215_v38, 0.0 }
 0x187   :  { %v4003_v13 = vrot.slane %v2189_v1, %v7253_v53  ;;  %v3998_v8 = vrot.slane %v2188_v2, %v7259_v57  ;;  %1114 = vadd.xlane.f32.xlu1 %v1113_v59  ;;  %1111 = vadd.xlane.f32.xlu0 %v1110_v63  ;;  %v218_v59 = vld [vmem:[%s11124_s0 + $0x658] sm:$0xff]  ;;  %v217_v63 = vld [vmem:[%s11124_s0 + $0x650] sm:$0xff] }
 0x188   :  { %v911_v10 = vpop.xlane.xlu1 %910  ;;  %v908_v11 = vpop.xlane.xlu0 %907  ;;  %v1137_v4 = vsel %vm527_vm0, %v218_v59, 0.0 }
 0x189   :  { %v3999_v17 = vsel %vm11128_vm12, %v3998_v8, %v3994_v5  ;;  %v2191_v18 = vmul.f32 0.0625, %v911_v10  ;;  %v2190_v20 = vmul.f32 0.0625, %v908_v11  ;;  %v1134_v5 = vsel %vm527_vm0, %v217_v63, 0.0  ;;  %v220_v11 = vld [vmem:[%s11124_s0 + $0x668] sm:$0xff] }
 0x18a   :  { %v4004_v23 = vsel %vm3446_vm13, %v4003_v13, %v3999_v17  ;;  %v1143_v16 = vsel %vm527_vm0, %v220_v11, 0.0 }
 0x18b   :  { %v4013_v24 = vrot.slane %v2191_v18, %v7278_v9  ;;  %v4008_v25 = vrot.slane %v2190_v20, %v7273_v6  ;;  %1120 = vadd.xlane.f32.xlu1 %v1119_v12  ;;  %1117 = vadd.xlane.f32.xlu0 %v1116_v15  ;;  %v219_v12 = vld [vmem:[%s11124_s0 + $0x660] sm:$0xff] }
 0x18c   :  { %v917_v26 = vpop.xlane.xlu1 %916  ;;  %v914_v27 = vpop.xlane.xlu0 %913 }
 0x18d   :  { %v2193_v34 = vmul.f32 0.0625, %v917_v26  ;;  %v2192_v36 = vmul.f32 0.0625, %v914_v27  ;;  %v4009_v44 = vsel %vm3453_vm14, %v4008_v25, %v4004_v23  ;;  %v1140_v23 = vsel %vm527_vm0, %v219_v12, 0.0  ;;  %v222_v27 = vld [vmem:[%s11124_s0 + $0x678] sm:$0xff] }
 0x18e   :  { %v7981_v45 = vsel %vm3460_vm15, %v4013_v24, %v4009_v44  ;;  %v1149_v44 = vsel %vm527_vm0, %v222_v27, 0.0 }
 0x18f   :  { %11145 = vst [vmem:[#allocation11_spill] sm:$0xff] %v7981_v45  ;;  %v4022_v47 = vrot.slane %v2193_v34, %v7156_v31  ;;  %v4018_v48 = vrot.slane %v2192_v36, %v7150_v28  ;;  %1126 = vadd.xlane.f32.xlu1 %v1125_v29  ;;  %1123 = vadd.xlane.f32.xlu0 %v1122_v33  ;;  %v221_v29 = vld [vmem:[%s11124_s0 + $0x670] sm:$0xff] }
 0x190   :  { %v923_v49 = vpop.xlane.xlu1 %922  ;;  %v920_v50 = vpop.xlane.xlu0 %919 }
 0x191   :  { %v4023_v55 = vsel %vm3362_vm1, %v4022_v47, %v4018_v48  ;;  %v2195_v56 = vmul.f32 0.0625, %v923_v49  ;;  %v2194_v58 = vmul.f32 0.0625, %v920_v50  ;;  %v1146_v47 = vsel %vm527_vm0, %v221_v29, 0.0 }
 0x193   :  { %v4032_v0 = vrot.slane %v2195_v56, %v7153_v30  ;;  %v4027_v1 = vrot.slane %v2194_v58, %v7159_v32  ;;  %1132 = vadd.xlane.f32.xlu1 %v1131_v52  ;;  %1129 = vadd.xlane.f32.xlu0 %v1128_v54  ;;  %v224_v52 = vld [vmem:[%s11124_s0 + $0x688] sm:$0xff]  ;;  %v223_v54 = vld [vmem:[%s11124_s0 + $0x680] sm:$0xff] }
 0x194   :  { %v929_v2 = vpop.xlane.xlu1 %928  ;;  %v926_v3 = vpop.xlane.xlu0 %925 }
 0x195   :  { %v4028_v13 = vsel %vm3369_vm2, %v4027_v1, %v4023_v55  ;;  %v2197_v8 = vmul.f32 0.0625, %v929_v2  ;;  %v2196_v10 = vmul.f32 0.0625, %v926_v3  ;;  %v1152_v1 = vsel %vm527_vm0, %v223_v54, 0.0 }
 0x196   :  { %v4033_v15 = vsel %vm3376_vm3, %v4032_v0, %v4028_v13  ;;  %v1155_v0 = vsel %vm527_vm0, %v224_v52, 0.0  ;;  %v225_v13 = vld [vmem:[%s11124_s0 + $0x690] sm:$0xff] }
 0x197   :  { %v4042_v17 = vrot.slane %v2197_v8, %v7170_v42  ;;  %v4037_v18 = vrot.slane %v2196_v10, %v7173_v43  ;;  %1138 = vadd.xlane.f32.xlu1 %v1137_v4  ;;  %1135 = vadd.xlane.f32.xlu0 %v1134_v5  ;;  %v226_v5 = vld [vmem:[%s11124_s0 + $0x698] sm:$0xff] }
 0x198   :  { %v935_v20 = vpop.xlane.xlu1 %934  ;;  %v932_v21 = vpop.xlane.xlu0 %931 }
 0x199   :  { %v4038_v24 = vsel %vm3383_vm4, %v4037_v18, %v4033_v15  ;;  %v2199_v25 = vmul.f32 0.0625, %v935_v20  ;;  %v2198_v26 = vmul.f32 0.0625, %v932_v21  ;;  %v1158_v18 = vsel %vm527_vm0, %v225_v13, 0.0 }
 0x19a   :  { %v4043_v33 = vsel %vm3390_vm5, %v4042_v17, %v4038_v24  ;;  %v1161_v17 = vsel %vm527_vm0, %v226_v5, 0.0  ;;  %v227_v24 = vld [vmem:[%s11124_s0 + $0x6a0] sm:$0xff] }
 0x19b   :  { %v4052_v34 = vrot.slane %v2199_v25, %v7192_v60  ;;  %v4047_v36 = vrot.slane %v2198_v26, %v7195_v61  ;;  %1144 = vadd.xlane.f32.xlu1 %v1143_v16  ;;  %1141 = vadd.xlane.f32.xlu0 %v1140_v23  ;;  %v228_v23 = vld [vmem:[%s11124_s0 + $0x6a8] sm:$0xff] }
 0x19c   :  { %v941_v37 = vpop.xlane.xlu1 %940  ;;  %v938_v38 = vpop.xlane.xlu0 %937 }
 0x19d   :  { %v4048_v48 = vsel %vm11136_vm6, %v4047_v36, %v4043_v33  ;;  %v2201_v49 = vmul.f32 0.0625, %v941_v37  ;;  %v2200_v50 = vmul.f32 0.0625, %v938_v38  ;;  %v1164_v36 = vsel %vm527_vm0, %v227_v24, 0.0 }
 0x19e   :  { %v4053_v55 = vsel %vm3404_vm7, %v4052_v34, %v4048_v48  ;;  %v1167_v34 = vsel %vm527_vm0, %v228_v23, 0.0  ;;  %v229_v48 = vld [vmem:[%s11124_s0 + $0x6b0] sm:$0xff] }
 0x19f   :  { %v4062_v56 = vrot.slane %v2201_v49, %v7213_v14  ;;  %v4057_v58 = vrot.slane %v2200_v50, %v7219_v19  ;;  %1150 = vadd.xlane.f32.xlu1 %v1149_v44  ;;  %1147 = vadd.xlane.f32.xlu0 %v1146_v47  ;;  %v230_v47 = vld [vmem:[%s11124_s0 + $0x6b8] sm:$0xff] }
 0x1a0   :  { %v947_v59 = vpop.xlane.xlu1 %946  ;;  %v944_v63 = vpop.xlane.xlu0 %943 }
 0x1a1   :  { %v4058_v2 = vsel %vm11129_vm8, %v4057_v58, %v4053_v55  ;;  %v2203_v3 = vmul.f32 0.0625, %v947_v59  ;;  %v2202_v4 = vmul.f32 0.0625, %v944_v63  ;;  %v1170_v58 = vsel %vm527_vm0, %v229_v48, 0.0 }
 0x1a2   :  { %v4063_v8 = vsel %vm3418_vm9, %v4062_v56, %v4058_v2  ;;  %v1173_v56 = vsel %vm527_vm0, %v230_v47, 0.0 }
 0x1a3   :  { %v4072_v10 = vrot.slane %v2203_v3, %v7233_v35  ;;  %v4067_v11 = vrot.slane %v2202_v4, %v7239_v39  ;;  %1156 = vadd.xlane.f32.xlu1 %v1155_v0  ;;  %1153 = vadd.xlane.f32.xlu0 %v1152_v1  ;;  %v232_v0 = vld [vmem:[%s11124_s0 + $0x6c8] sm:$0xff]  ;;  %v231_v1 = vld [vmem:[%s11124_s0 + $0x6c0] sm:$0xff] }
 0x1a4   :  { %v953_v12 = vpop.xlane.xlu1 %952  ;;  %v950_v15 = vpop.xlane.xlu0 %949 }
 0x1a5   :  { %v4068_v20 = vsel %vm3425_vm10, %v4067_v11, %v4063_v8  ;;  %v2205_v21 = vmul.f32 0.0625, %v953_v12  ;;  %v2204_v16 = vmul.f32 0.0625, %v950_v15  ;;  %v1176_v11 = vsel %vm527_vm0, %v231_v1, 0.0 }
 0x1a6   :  { %v4073_v25 = vsel %vm3432_vm11, %v4072_v10, %v4068_v20  ;;  %v1179_v10 = vsel %vm527_vm0, %v232_v0, 0.0  ;;  %v233_v20 = vld [vmem:[%s11124_s0 + $0x6d0] sm:$0xff] }
 0x1a7   :  { %v4082_v26 = vrot.slane %v2205_v21, %v7253_v53  ;;  %v4077_v27 = vrot.slane %v2204_v16, %v7259_v57  ;;  %1162 = vadd.xlane.f32.xlu1 %v1161_v17  ;;  %1159 = vadd.xlane.f32.xlu0 %v1158_v18  ;;  %v234_v18 = vld [vmem:[%s11124_s0 + $0x6d8] sm:$0xff] }
 0x1a8   :  { %v959_v29 = vpop.xlane.xlu1 %958  ;;  %v956_v33 = vpop.xlane.xlu0 %955 }
 0x1a9   :  { %v4078_v37 = vsel %vm11128_vm12, %v4077_v27, %v4073_v25  ;;  %v2207_v38 = vmul.f32 0.0625, %v959_v29  ;;  %v2206_v44 = vmul.f32 0.0625, %v956_v33  ;;  %v1185_v25 = vsel %vm527_vm0, %v234_v18, 0.0 }
 0x1aa   :  { %v4083_v49 = vsel %vm3446_vm13, %v4082_v26, %v4078_v37  ;;  %v1182_v26 = vsel %vm527_vm0, %v233_v20, 0.0 }
 0x1ab   :  { %v4092_v50 = vrot.slane %v2207_v38, %v7278_v9  ;;  %v4087_v52 = vrot.slane %v2206_v44, %v7273_v6  ;;  %1168 = vadd.xlane.f32.xlu1 %v1167_v34  ;;  %1165 = vadd.xlane.f32.xlu0 %v1164_v36  ;;  %v236_v34 = vld [vmem:[%s11124_s0 + $0x6e8] sm:$0xff]  ;;  %v235_v36 = vld [vmem:[%s11124_s0 + $0x6e0] sm:$0xff] }
 0x1ac   :  { %v965_v54 = vpop.xlane.xlu1 %964  ;;  %v962_v55 = vpop.xlane.xlu0 %961 }
 0x1ad   :  { %v2209_v59 = vmul.f32 0.0625, %v965_v54  ;;  %v2208_v63 = vmul.f32 0.0625, %v962_v55  ;;  %v4088_v2 = vsel %vm3453_vm14, %v4087_v52, %v4083_v49  ;;  %v1191_v49 = vsel %vm527_vm0, %v236_v34, 0.0 }
 0x1ae   :  { %v8078_v3 = vsel %vm3460_vm15, %v4092_v50, %v4088_v2  ;;  %v1188_v50 = vsel %vm527_vm0, %v235_v36, 0.0 }
 0x1af   :  { %11146 = vst [vmem:[#allocation12_spill] sm:$0xff] %v8078_v3  ;;  %v4101_v4 = vrot.slane %v2209_v59, %v7156_v31  ;;  %v4097_v5 = vrot.slane %v2208_v63, %v7150_v28  ;;  %1174 = vadd.xlane.f32.xlu1 %v1173_v56  ;;  %1171 = vadd.xlane.f32.xlu0 %v1170_v58  ;;  %v238_v56 = vld [vmem:[%s11124_s0 + $0x6f8] sm:$0xff]  ;;  %v237_v58 = vld [vmem:[%s11124_s0 + $0x6f0] sm:$0xff] }
 0x1b0   :  { %v971_v13 = vpop.xlane.xlu1 %970  ;;  %v968_v8 = vpop.xlane.xlu0 %967 }
 0x1b1   :  { %v4102_v12 = vsel %vm3362_vm1, %v4101_v4, %v4097_v5  ;;  %v2211_v15 = vmul.f32 0.0625, %v971_v13  ;;  %v2210_v17 = vmul.f32 0.0625, %v968_v8  ;;  %v1197_v4 = vsel %vm527_vm0, %v238_v56, 0.0 }
 0x1b2   :  { %v1194_v5 = vsel %vm527_vm0, %v237_v58, 0.0 }
 0x1b3   :  { %v4111_v21 = vrot.slane %v2211_v15, %v7153_v30  ;;  %v4106_v16 = vrot.slane %v2210_v17, %v7159_v32  ;;  %1180 = vadd.xlane.f32.xlu1 %v1179_v10  ;;  %1177 = vadd.xlane.f32.xlu0 %v1176_v11  ;;  %v240_v11 = vld [vmem:[%s11124_s0 + $0x708] sm:$0xff] }
 0x1b4   :  { %v977_v23 = vpop.xlane.xlu1 %976  ;;  %v974_v24 = vpop.xlane.xlu0 %973 }
 0x1b5   :  { %v4107_v27 = vsel %vm3369_vm2, %v4106_v16, %v4102_v12  ;;  %v2213_v29 = vmul.f32 0.0625, %v977_v23  ;;  %v2212_v33 = vmul.f32 0.0625, %v974_v24  ;;  %v239_v12 = vld [vmem:[%s11124_s0 + $0x700] sm:$0xff]  ;;  %v1203_v16 = vsel %vm527_vm0, %v240_v11, 0.0 }
 0x1b6   :  { %v4112_v37 = vsel %vm3376_vm3, %v4111_v21, %v4107_v27  ;;  %v1200_v23 = vsel %vm527_vm0, %v239_v12, 0.0  ;;  %v242_v27 = vld [vmem:[%s11124_s0 + $0x718] sm:$0xff] }
 0x1b7   :  { %v4121_v38 = vrot.slane %v2213_v29, %v7170_v42  ;;  %v4116_v44 = vrot.slane %v2212_v33, %v7173_v43  ;;  %1186 = vadd.xlane.f32.xlu1 %v1185_v25  ;;  %1183 = vadd.xlane.f32.xlu0 %v1182_v26  ;;  %v241_v29 = vld [vmem:[%s11124_s0 + $0x710] sm:$0xff] }
 0x1b8   :  { %v983_v47 = vpop.xlane.xlu1 %982  ;;  %v980_v48 = vpop.xlane.xlu0 %979 }
 0x1b9   :  { %v4117_v52 = vsel %vm3383_vm4, %v4116_v44, %v4112_v37  ;;  %v2215_v54 = vmul.f32 0.0625, %v983_v47  ;;  %v2214_v55 = vmul.f32 0.0625, %v980_v48  ;;  %v1209_v44 = vsel %vm527_vm0, %v242_v27, 0.0 }
 0x1ba   :  { %v4122_v59 = vsel %vm3390_vm5, %v4121_v38, %v4117_v52  ;;  %v1206_v47 = vsel %vm527_vm0, %v241_v29, 0.0  ;;  %v244_v52 = vld [vmem:[%s11124_s0 + $0x728] sm:$0xff] }
 0x1bb   :  { %v4131_v63 = vrot.slane %v2215_v54, %v7192_v60  ;;  %v4126_v0 = vrot.slane %v2214_v55, %v7195_v61  ;;  %1192 = vadd.xlane.f32.xlu1 %v1191_v49  ;;  %1189 = vadd.xlane.f32.xlu0 %v1188_v50  ;;  %v243_v54 = vld [vmem:[%s11124_s0 + $0x720] sm:$0xff] }
 0x1bc   :  { %v989_v1 = vpop.xlane.xlu1 %988  ;;  %v986_v2 = vpop.xlane.xlu0 %985 }
 0x1bd   :  { %v4127_v13 = vsel %vm11136_vm6, %v4126_v0, %v4122_v59  ;;  %v2217_v8 = vmul.f32 0.0625, %v989_v1  ;;  %v2216_v10 = vmul.f32 0.0625, %v986_v2  ;;  %v1215_v0 = vsel %vm527_vm0, %v244_v52, 0.0 }
 0x1be   :  { %v4132_v15 = vsel %vm3404_vm7, %v4131_v63, %v4127_v13  ;;  %v1212_v1 = vsel %vm527_vm0, %v243_v54, 0.0  ;;  %v246_v13 = vld [vmem:[%s11124_s0 + $0x738] sm:$0xff] }
 0x1bf   :  { %v4141_v17 = vrot.slane %v2217_v8, %v7213_v14  ;;  %v4136_v18 = vrot.slane %v2216_v10, %v7219_v19  ;;  %1198 = vadd.xlane.f32.xlu1 %v1197_v4  ;;  %1195 = vadd.xlane.f32.xlu0 %v1194_v5  ;;  %v245_v8 = vld [vmem:[%s11124_s0 + $0x730] sm:$0xff] }
 0x1c0   :  { %v995_v20 = vpop.xlane.xlu1 %994  ;;  %v992_v21 = vpop.xlane.xlu0 %991 }
 0x1c1   :  { %v4137_v24 = vsel %vm11129_vm8, %v4136_v18, %v4132_v15  ;;  %v2219_v25 = vmul.f32 0.0625, %v995_v20  ;;  %v2218_v26 = vmul.f32 0.0625, %v992_v21  ;;  %v1221_v18 = vsel %vm527_vm0, %v246_v13, 0.0 }
 0x1c2   :  { %v4142_v33 = vsel %vm3418_vm9, %v4141_v17, %v4137_v24  ;;  %v1218_v20 = vsel %vm527_vm0, %v245_v8, 0.0  ;;  %v247_v24 = vld [vmem:[%s11124_s0 + $0x740] sm:$0xff] }
 0x1c3   :  { %v4151_v34 = vrot.slane %v2219_v25, %v7233_v35  ;;  %v4146_v36 = vrot.slane %v2218_v26, %v7239_v39  ;;  %1204 = vadd.xlane.f32.xlu1 %v1203_v16  ;;  %1201 = vadd.xlane.f32.xlu0 %v1200_v23  ;;  %v248_v23 = vld [vmem:[%s11124_s0 + $0x748] sm:$0xff] }
 0x1c4   :  { %v1001_v37 = vpop.xlane.xlu1 %1000  ;;  %v998_v38 = vpop.xlane.xlu0 %997 }
 0x1c5   :  { %v4147_v48 = vsel %vm3425_vm10, %v4146_v36, %v4142_v33  ;;  %v2221_v49 = vmul.f32 0.0625, %v1001_v37  ;;  %v2220_v50 = vmul.f32 0.0625, %v998_v38  ;;  %v1227_v36 = vsel %vm527_vm0, %v248_v23, 0.0 }
 0x1c6   :  { %v4152_v55 = vsel %vm3432_vm11, %v4151_v34, %v4147_v48  ;;  %v1224_v37 = vsel %vm527_vm0, %v247_v24, 0.0  ;;  %v250_v48 = vld [vmem:[%s11124_s0 + $0x758] sm:$0xff] }
 0x1c7   :  { %v4161_v56 = vrot.slane %v2221_v49, %v7253_v53  ;;  %v4156_v58 = vrot.slane %v2220_v50, %v7259_v57  ;;  %1210 = vadd.xlane.f32.xlu1 %v1209_v44  ;;  %1207 = vadd.xlane.f32.xlu0 %v1206_v47  ;;  %v249_v49 = vld [vmem:[%s11124_s0 + $0x750] sm:$0xff] }
 0x1c8   :  { %v1007_v59 = vpop.xlane.xlu1 %1006  ;;  %v1004_v63 = vpop.xlane.xlu0 %1003 }
 0x1c9   :  { %v4157_v2 = vsel %vm11128_vm12, %v4156_v58, %v4152_v55  ;;  %v2223_v4 = vmul.f32 0.0625, %v1007_v59  ;;  %v2222_v5 = vmul.f32 0.0625, %v1004_v63  ;;  %v1230_v58 = vsel %vm527_vm0, %v249_v49, 0.0 }
 0x1ca   :  { %v4162_v10 = vsel %vm3446_vm13, %v4161_v56, %v4157_v2  ;;  %v1233_v56 = vsel %vm527_vm0, %v250_v48, 0.0  ;;  %v251_v2 = vld [vmem:[%s11124_s0 + $0x760] sm:$0xff] }
 0x1cb   :  { %v4171_v11 = vrot.slane %v2223_v4, %v7278_v9  ;;  %v4166_v12 = vrot.slane %v2222_v5, %v7273_v6  ;;  %1216 = vadd.xlane.f32.xlu1 %v1215_v0  ;;  %1213 = vadd.xlane.f32.xlu0 %v1212_v1  ;;  %v252_v1 = vld [vmem:[%s11124_s0 + $0x768] sm:$0xff] }
 0x1cc   :  { %v1013_v15 = vpop.xlane.xlu1 %1012  ;;  %v1010_v17 = vpop.xlane.xlu0 %1009 }
 0x1cd   :  { %v2225_v21 = vmul.f32 0.0625, %v1013_v15  ;;  %v2224_v16 = vmul.f32 0.0625, %v1010_v17  ;;  %v4167_v25 = vsel %vm3453_vm14, %v4166_v12, %v4162_v10  ;;  %v1236_v12 = vsel %vm527_vm0, %v251_v2, 0.0 }
 0x1ce   :  { %v8175_v26 = vsel %vm3460_vm15, %v4171_v11, %v4167_v25  ;;  %v1239_v11 = vsel %vm527_vm0, %v252_v1, 0.0 }
 0x1cf   :  { %11147 = vst [vmem:[#allocation13_spill] sm:$0xff] %v8175_v26  ;;  %v4180_v27 = vrot.slane %v2225_v21, %v7156_v31  ;;  %v4176_v29 = vrot.slane %v2224_v16, %v7150_v28  ;;  %1222 = vadd.xlane.f32.xlu1 %v1221_v18  ;;  %1219 = vadd.xlane.f32.xlu0 %v1218_v20  ;;  %v254_v20 = vld [vmem:[%s11124_s0 + $0x778] sm:$0xff]  ;;  %v253_v21 = vld [vmem:[%s11124_s0 + $0x770] sm:$0xff] }
 0x1d0   :  { %v1019_v33 = vpop.xlane.xlu1 %1018  ;;  %v1016_v34 = vpop.xlane.xlu0 %1015 }
 0x1d1   :  { %v4181_v38 = vsel %vm3362_vm1, %v4180_v27, %v4176_v29  ;;  %v2227_v44 = vmul.f32 0.0625, %v1019_v33  ;;  %v2226_v47 = vmul.f32 0.0625, %v1016_v34  ;;  %v1245_v29 = vsel %vm527_vm0, %v254_v20, 0.0 }
 0x1d2   :  { %v1242_v33 = vsel %vm527_vm0, %v253_v21, 0.0 }
 0x1d3   :  { %v4190_v50 = vrot.slane %v2227_v44, %v7153_v30  ;;  %v4185_v52 = vrot.slane %v2226_v47, %v7159_v32  ;;  %1228 = vadd.xlane.f32.xlu1 %v1227_v36  ;;  %1225 = vadd.xlane.f32.xlu0 %v1224_v37  ;;  %v255_v44 = vld [vmem:[%s11124_s0 + $0x780] sm:$0xff] }
 0x1d4   :  { %v1025_v54 = vpop.xlane.xlu1 %1024  ;;  %v1022_v55 = vpop.xlane.xlu0 %1021 }
 0x1d5   :  { %v4186_v59 = vsel %vm3369_vm2, %v4185_v52, %v4181_v38  ;;  %v2229_v63 = vmul.f32 0.0625, %v1025_v54  ;;  %v2228_v0 = vmul.f32 0.0625, %v1022_v55  ;;  %v256_v38 = vld [vmem:[%s11124_s0 + $0x788] sm:$0xff]  ;;  %v1248_v55 = vsel %vm527_vm0, %v255_v44, 0.0 }
 0x1d6   :  { %v4191_v4 = vsel %vm3376_vm3, %v4190_v50, %v4186_v59  ;;  %v1251_v54 = vsel %vm527_vm0, %v256_v38, 0.0 }
 0x1d7   :  { %v4200_v5 = vrot.slane %v2229_v63, %v7170_v42  ;;  %v4195_v13 = vrot.slane %v2228_v0, %v7173_v43  ;;  %1234 = vadd.xlane.f32.xlu1 %v1233_v56  ;;  %1231 = vadd.xlane.f32.xlu0 %v1230_v58  ;;  %v258_v63 = vld [vmem:[%s11124_s0 + $0x798] sm:$0xff]  ;;  %v257_v0 = vld [vmem:[%s11124_s0 + $0x790] sm:$0xff] }
 0x1d8   :  { %v1031_v8 = vpop.xlane.xlu1 %1030  ;;  %v1028_v10 = vpop.xlane.xlu0 %1027 }
 0x1d9   :  { %v4196_v15 = vsel %vm3383_vm4, %v4195_v13, %v4191_v4  ;;  %v2231_v17 = vmul.f32 0.0625, %v1031_v8  ;;  %v2230_v18 = vmul.f32 0.0625, %v1028_v10  ;;  %v1257_v8 = vsel %vm527_vm0, %v258_v63, 0.0 }
 0x1da   :  { %v4201_v16 = vsel %vm3390_vm5, %v4200_v5, %v4196_v15  ;;  %v1254_v10 = vsel %vm527_vm0, %v257_v0, 0.0 }
 0x1db   :  { %v4210_v23 = vrot.slane %v2231_v17, %v7192_v60  ;;  %v4205_v24 = vrot.slane %v2230_v18, %v7195_v61  ;;  %1240 = vadd.xlane.f32.xlu1 %v1239_v11  ;;  %1237 = vadd.xlane.f32.xlu0 %v1236_v12  ;;  %v260_v17 = vld [vmem:[%s11124_s0 + $0x7a8] sm:$0xff]  ;;  %v259_v18 = vld [vmem:[%s11124_s0 + $0x7a0] sm:$0xff] }
 0x1dc   :  { %v1037_v25 = vpop.xlane.xlu1 %1036  ;;  %v1034_v27 = vpop.xlane.xlu0 %1033 }
 0x1dd   :  { %v4206_v34 = vsel %vm11136_vm6, %v4205_v24, %v4201_v16  ;;  %v2233_v36 = vmul.f32 0.0625, %v1037_v25  ;;  %v2232_v37 = vmul.f32 0.0625, %v1034_v27  ;;  %v1263_v25 = vsel %vm527_vm0, %v260_v17, 0.0 }
 0x1de   :  { %v4211_v47 = vsel %vm3404_vm7, %v4210_v23, %v4206_v34  ;;  %v1260_v27 = vsel %vm527_vm0, %v259_v18, 0.0 }
 0x1df   :  { %v4220_v48 = vrot.slane %v2233_v36, %v7213_v14  ;;  %v4215_v49 = vrot.slane %v2232_v37, %v7219_v19  ;;  %1246 = vadd.xlane.f32.xlu1 %v1245_v29  ;;  %1243 = vadd.xlane.f32.xlu0 %v1242_v33  ;;  %v262_v36 = vld [vmem:[%s11124_s0 + $0x7b8] sm:$0xff]  ;;  %v261_v37 = vld [vmem:[%s11124_s0 + $0x7b0] sm:$0xff] }
 0x1e0   :  { %v1043_v50 = vpop.xlane.xlu1 %1042  ;;  %v1040_v52 = vpop.xlane.xlu0 %1039 }
 0x1e1   :  { %v4216_v56 = vsel %vm11129_vm8, %v4215_v49, %v4211_v47  ;;  %v2235_v58 = vmul.f32 0.0625, %v1043_v50  ;;  %v2234_v59 = vmul.f32 0.0625, %v1040_v52  ;;  %v1269_v50 = vsel %vm527_vm0, %v262_v36, 0.0 }
 0x1e2   :  { %v4221_v1 = vsel %vm3418_vm9, %v4220_v48, %v4216_v56  ;;  %v1266_v52 = vsel %vm527_vm0, %v261_v37, 0.0  ;;  %v264_v56 = vld [vmem:[%s11124_s0 + $0x7c8] sm:$0xff] }
 0x1e3   :  { %v4230_v2 = vrot.slane %v2235_v58, %v7233_v35  ;;  %v4225_v4 = vrot.slane %v2234_v59, %v7239_v39  ;;  %1252 = vadd.xlane.f32.xlu1 %v1251_v54  ;;  %1249 = vadd.xlane.f32.xlu0 %v1248_v55  ;;  %v263_v58 = vld [vmem:[%s11124_s0 + $0x7c0] sm:$0xff] }
 0x1e4   :  { %v1049_v5 = vpop.xlane.xlu1 %1048  ;;  %v1046_v13 = vpop.xlane.xlu0 %1045 }
 0x1e5   :  { %v4226_v11 = vsel %vm3425_vm10, %v4225_v4, %v4221_v1  ;;  %v2237_v12 = vmul.f32 0.0625, %v1049_v5  ;;  %v2236_v15 = vmul.f32 0.0625, %v1046_v13  ;;  %v1275_v5 = vsel %vm527_vm0, %v264_v56, 0.0 }
 0x1e6   :  { %v4231_v20 = vsel %vm3432_vm11, %v4230_v2, %v4226_v11  ;;  %v1272_v13 = vsel %vm527_vm0, %v263_v58, 0.0 }
 0x1e7   :  { %v4240_v21 = vrot.slane %v2237_v12, %v7253_v53  ;;  %v4235_v16 = vrot.slane %v2236_v15, %v7259_v57  ;;  %1258 = vadd.xlane.f32.xlu1 %v1257_v8  ;;  %1255 = vadd.xlane.f32.xlu0 %v1254_v10  ;;  %v266_v12 = vld [vmem:[%s11124_s0 + $0x7d8] sm:$0xff]  ;;  %v265_v15 = vld [vmem:[%s11124_s0 + $0x7d0] sm:$0xff] }
 0x1e8   :  { %v1055_v23 = vpop.xlane.xlu1 %1054  ;;  %v1052_v24 = vpop.xlane.xlu0 %1051 }
 0x1e9   :  { %v4236_v29 = vsel %vm11128_vm12, %v4235_v16, %v4231_v20  ;;  %v2239_v33 = vmul.f32 0.0625, %v1055_v23  ;;  %v2238_v34 = vmul.f32 0.0625, %v1052_v24  ;;  %v1281_v16 = vsel %vm527_vm0, %v266_v12, 0.0 }
 0x1ea   :  { %v4241_v38 = vsel %vm3446_vm13, %v4240_v21, %v4236_v29  ;;  %v1278_v23 = vsel %vm527_vm0, %v265_v15, 0.0  ;;  %v268_v29 = vld [vmem:[%s11124_s0 + $0x7e8] sm:$0xff] }
 0x1eb   :  { %v4250_v44 = vrot.slane %v2239_v33, %v7278_v9  ;;  %v4245_v47 = vrot.slane %v2238_v34, %v7273_v6  ;;  %1264 = vadd.xlane.f32.xlu1 %v1263_v25  ;;  %1261 = vadd.xlane.f32.xlu0 %v1260_v27  ;;  %v267_v33 = vld [vmem:[%s11124_s0 + $0x7e0] sm:$0xff] }
 0x1ec   :  { %v1061_v48 = vpop.xlane.xlu1 %1060  ;;  %v1058_v49 = vpop.xlane.xlu0 %1057 }
 0x1ed   :  { %v2241_v54 = vmul.f32 0.0625, %v1061_v48  ;;  %v2240_v55 = vmul.f32 0.0625, %v1058_v49  ;;  %v4246_v59 = vsel %vm3453_vm14, %v4245_v47, %v4241_v38  ;;  %v1287_v47 = vsel %vm527_vm0, %v268_v29, 0.0  ;;  %v273_v29 = vld [vmem:[%s11124_s0 + $0x810] sm:$0xff] }
 0x1ee   :  { %v8272_v63 = vsel %vm3460_vm15, %v4250_v44, %v4246_v59  ;;  %v1284_v48 = vsel %vm527_vm0, %v267_v33, 0.0 }
 0x1ef   :  { %11148 = vst [vmem:[#allocation14_spill] sm:$0xff] %v8272_v63  ;;  %v4259_v0 = vrot.slane %v2241_v54, %v7156_v31  ;;  %v4255_v1 = vrot.slane %v2240_v55, %v7150_v28  ;;  %1270 = vadd.xlane.f32.xlu1 %v1269_v50  ;;  %1267 = vadd.xlane.f32.xlu0 %v1266_v52  ;;  %v270_v54 = vld [vmem:[%s11124_s0 + $0x7f8] sm:$0xff]  ;;  %v269_v55 = vld [vmem:[%s11124_s0 + $0x7f0] sm:$0xff] }
 0x1f0   :  { %v1067_v2 = vpop.xlane.xlu1 %1066  ;;  %v1064_v4 = vpop.xlane.xlu0 %1063 }
 0x1f1   :  { %v4260_v8 = vsel %vm3362_vm1, %v4259_v0, %v4255_v1  ;;  %v2243_v10 = vmul.f32 0.0625, %v1067_v2  ;;  %v2242_v11 = vmul.f32 0.0625, %v1064_v4  ;;  %v1293_v2 = vsel %vm527_vm0, %v270_v54, 0.0  ;;  %v275_v54 = vld [vmem:[%s11124_s0 + $0x820] sm:$0xff] }
 0x1f2   :  { %v1290_v4 = vsel %vm527_vm0, %v269_v55, 0.0 }
 0x1f3   :  { %v4269_v17 = vrot.slane %v2243_v10, %v7153_v30  ;;  %v4264_v18 = vrot.slane %v2242_v11, %v7159_v32  ;;  %1276 = vadd.xlane.f32.xlu1 %v1275_v5  ;;  %1273 = vadd.xlane.f32.xlu0 %v1272_v13  ;;  %v272_v10 = vld [vmem:[%s11124_s0 + $0x808] sm:$0xff]  ;;  %v271_v11 = vld [vmem:[%s11124_s0 + $0x800] sm:$0xff] }
 0x1f4   :  { %v1073_v20 = vpop.xlane.xlu1 %1072  ;;  %v1070_v21 = vpop.xlane.xlu0 %1069 }
 0x1f5   :  { %v4265_v24 = vsel %vm3369_vm2, %v4264_v18, %v4260_v8  ;;  %v2245_v25 = vmul.f32 0.0625, %v1073_v20  ;;  %v2244_v27 = vmul.f32 0.0625, %v1070_v21  ;;  %v1299_v21 = vsel %vm527_vm0, %v272_v10, 0.0  ;;  %v277_v10 = vld [vmem:[%s11124_s0 + $0x830] sm:$0xff] }
 0x1f6   :  { %v4270_v34 = vsel %vm3376_vm3, %v4269_v17, %v4265_v24 }
 0x1f7   :  { %v4279_v36 = vrot.slane %v2245_v25, %v7170_v42  ;;  %v4274_v37 = vrot.slane %v2244_v27, %v7173_v43  ;;  %1282 = vadd.xlane.f32.xlu1 %v1281_v16  ;;  %1279 = vadd.xlane.f32.xlu0 %v1278_v23  ;;  %v1296_v16 = vsel %vm527_vm0, %v271_v11, 0.0  ;;  %v274_v27 = vld [vmem:[%s11124_s0 + $0x818] sm:$0xff] }
 0x1f8   :  { %v1079_v38 = vpop.xlane.xlu1 %1078  ;;  %v1076_v44 = vpop.xlane.xlu0 %1075 }
 0x1f9   :  { %v4275_v49 = vsel %vm3383_vm4, %v4274_v37, %v4270_v34  ;;  %v2247_v50 = vmul.f32 0.0625, %v1079_v38  ;;  %v2246_v52 = vmul.f32 0.0625, %v1076_v44  ;;  %v1305_v44 = vsel %vm527_vm0, %v274_v27, 0.0 }
 0x1fa   :  { %v4280_v56 = vsel %vm3390_vm5, %v4279_v36, %v4275_v49 }
 0x1fb   :  { %v4289_v58 = vrot.slane %v2247_v50, %v7192_v60  ;;  %v4284_v59 = vrot.slane %v2246_v52, %v7195_v61  ;;  %1288 = vadd.xlane.f32.xlu1 %v1287_v47  ;;  %1285 = vadd.xlane.f32.xlu0 %v1284_v48  ;;  %v1302_v47 = vsel %vm527_vm0, %v273_v29, 0.0  ;;  %v276_v52 = vld [vmem:[%s11124_s0 + $0x828] sm:$0xff] }
 0x1fc   :  { %v1085_v0 = vpop.xlane.xlu1 %1084  ;;  %v1082_v1 = vpop.xlane.xlu0 %1081 }
 0x1fd   :  { %v4285_v5 = vsel %vm11136_vm6, %v4284_v59, %v4280_v56  ;;  %v2249_v13 = vmul.f32 0.0625, %v1085_v0  ;;  %v2248_v8 = vmul.f32 0.0625, %v1082_v1  ;;  %v1311_v1 = vsel %vm527_vm0, %v276_v52, 0.0  ;;  %v281_v52 = vld [vmem:[%s11124_s0 + $0x850] sm:$0xff] }
 0x1fe   :  { %v4290_v12 = vsel %vm3404_vm7, %v4289_v58, %v4285_v5 }
 0x1ff   :  { %v4299_v15 = vrot.slane %v2249_v13, %v7213_v14  ;;  %v4294_v17 = vrot.slane %v2248_v8, %v7219_v19  ;;  %1294 = vadd.xlane.f32.xlu1 %v1293_v2  ;;  %1291 = vadd.xlane.f32.xlu0 %v1290_v4  ;;  %v1308_v2 = vsel %vm527_vm0, %v275_v54, 0.0  ;;  %v278_v8 = vld [vmem:[%s11124_s0 + $0x838] sm:$0xff] }
 0x200   :  { %v1091_v18 = vpop.xlane.xlu1 %1090  ;;  %v1088_v20 = vpop.xlane.xlu0 %1087 }
 0x201   :  { %v4295_v23 = vsel %vm11129_vm8, %v4294_v17, %v4290_v12  ;;  %v2251_v24 = vmul.f32 0.0625, %v1091_v18  ;;  %v2250_v25 = vmul.f32 0.0625, %v1088_v20  ;;  %v1317_v20 = vsel %vm527_vm0, %v278_v8, 0.0 }
 0x202   :  { %v4300_v33 = vsel %vm3418_vm9, %v4299_v15, %v4295_v23 }
 0x203   :  { %v4309_v34 = vrot.slane %v2251_v24, %v7233_v35  ;;  %v4304_v36 = vrot.slane %v2250_v25, %v7239_v39  ;;  %1300 = vadd.xlane.f32.xlu1 %v1299_v21  ;;  %1297 = vadd.xlane.f32.xlu0 %v1296_v16  ;;  %v1314_v21 = vsel %vm527_vm0, %v277_v10, 0.0  ;;  %v280_v24 = vld [vmem:[%s11124_s0 + $0x848] sm:$0xff]  ;;  %v279_v25 = vld [vmem:[%s11124_s0 + $0x840] sm:$0xff] }
 0x204   :  { %v1097_v37 = vpop.xlane.xlu1 %1096  ;;  %v1094_v38 = vpop.xlane.xlu0 %1093 }
 0x205   :  { %v4305_v48 = vsel %vm3425_vm10, %v4304_v36, %v4300_v33  ;;  %v2253_v49 = vmul.f32 0.0625, %v1097_v37  ;;  %v2252_v50 = vmul.f32 0.0625, %v1094_v38  ;;  %v1323_v38 = vsel %vm527_vm0, %v280_v24, 0.0  ;;  %v285_v24 = vld [vmem:[%s11124_s0 + $0x870] sm:$0xff] }
 0x206   :  { %v4310_v55 = vsel %vm3432_vm11, %v4309_v34, %v4305_v48 }
 0x207   :  { %v4319_v56 = vrot.slane %v2253_v49, %v7253_v53  ;;  %v4314_v58 = vrot.slane %v2252_v50, %v7259_v57  ;;  %1306 = vadd.xlane.f32.xlu1 %v1305_v44  ;;  %1303 = vadd.xlane.f32.xlu0 %v1302_v47  ;;  %v1320_v44 = vsel %vm527_vm0, %v279_v25, 0.0  ;;  %v282_v50 = vld [vmem:[%s11124_s0 + $0x858] sm:$0xff] }
 0x208   :  { %v1103_v59 = vpop.xlane.xlu1 %1102  ;;  %v1100_v0 = vpop.xlane.xlu0 %1099 }
 0x209   :  { %v4315_v4 = vsel %vm11128_vm12, %v4314_v58, %v4310_v55  ;;  %v2255_v5 = vmul.f32 0.0625, %v1103_v59  ;;  %v2254_v13 = vmul.f32 0.0625, %v1100_v0  ;;  %v1329_v59 = vsel %vm527_vm0, %v282_v50, 0.0  ;;  %v287_v50 = vld [vmem:[%s11124_s0 + $0x880] sm:$0xff] }
 0x20a   :  { %v4320_v11 = vsel %vm3446_vm13, %v4319_v56, %v4315_v4  ;;  %v1326_v0 = vsel %vm527_vm0, %v281_v52, 0.0 }
 0x20b   :  { %v4329_v12 = vrot.slane %v2255_v5, %v7278_v9  ;;  %v4324_v15 = vrot.slane %v2254_v13, %v7273_v6  ;;  %1312 = vadd.xlane.f32.xlu1 %v1311_v1  ;;  %1309 = vadd.xlane.f32.xlu0 %v1308_v2  ;;  %v284_v5 = vld [vmem:[%s11124_s0 + $0x868] sm:$0xff]  ;;  %v283_v13 = vld [vmem:[%s11124_s0 + $0x860] sm:$0xff] }
 0x20c   :  { %v1109_v17 = vpop.xlane.xlu1 %1108  ;;  %v1106_v18 = vpop.xlane.xlu0 %1105 }
 0x20d   :  { %v2257_v16 = vmul.f32 0.0625, %v1109_v17  ;;  %v2256_v23 = vmul.f32 0.0625, %v1106_v18  ;;  %v4325_v27 = vsel %vm3453_vm14, %v4324_v15, %v4320_v11  ;;  %v1335_v17 = vsel %vm527_vm0, %v284_v5, 0.0  ;;  %v290_v5 = vld [vmem:[%s11124_s0 + $0x898] sm:$0xff] }
 0x20e   :  { %v8369_v29 = vsel %vm3460_vm15, %v4329_v12, %v4325_v27  ;;  %v1332_v18 = vsel %vm527_vm0, %v283_v13, 0.0  ;;  %v289_v13 = vld [vmem:[%s11124_s0 + $0x890] sm:$0xff] }
 0x20f   :  { %11149 = vst [vmem:[#allocation15_spill] sm:$0xff] %v8369_v29  ;;  %v4338_v33 = vrot.slane %v2257_v16, %v7156_v31  ;;  %v4334_v34 = vrot.slane %v2256_v23, %v7150_v28  ;;  %1318 = vadd.xlane.f32.xlu1 %v1317_v20  ;;  %1315 = vadd.xlane.f32.xlu0 %v1314_v21  ;;  %v286_v23 = vld [vmem:[%s11124_s0 + $0x878] sm:$0xff] }
 0x210   :  { %v1115_v36 = vpop.xlane.xlu1 %1114  ;;  %v1112_v37 = vpop.xlane.xlu0 %1111 }
 0x211   :  { %v4339_v47 = vsel %vm3362_vm1, %v4338_v33, %v4334_v34  ;;  %v2259_v48 = vmul.f32 0.0625, %v1115_v36  ;;  %v2258_v49 = vmul.f32 0.0625, %v1112_v37  ;;  %v1341_v37 = vsel %vm527_vm0, %v286_v23, 0.0  ;;  %v292_v23 = vld [vmem:[%s11124_s0 + $0x8a8] sm:$0xff] }
 0x213   :  { %v4348_v54 = vrot.slane %v2259_v48, %v7153_v30  ;;  %v4343_v55 = vrot.slane %v2258_v49, %v7159_v32  ;;  %1324 = vadd.xlane.f32.xlu1 %v1323_v38  ;;  %1321 = vadd.xlane.f32.xlu0 %v1320_v44  ;;  %v1338_v38 = vsel %vm527_vm0, %v285_v24, 0.0  ;;  %v288_v49 = vld [vmem:[%s11124_s0 + $0x888] sm:$0xff]  ;;  %v291_v24 = vld [vmem:[%s11124_s0 + $0x8a0] sm:$0xff] }
 0x214   :  { %v1121_v56 = vpop.xlane.xlu1 %1120  ;;  %v1118_v58 = vpop.xlane.xlu0 %1117 }
 0x215   :  { %v4344_v1 = vsel %vm3369_vm2, %v4343_v55, %v4339_v47  ;;  %v2261_v2 = vmul.f32 0.0625, %v1121_v56  ;;  %v2260_v4 = vmul.f32 0.0625, %v1118_v58 }
 0x216   :  { %v4349_v8 = vsel %vm3376_vm3, %v4348_v54, %v4344_v1 }
 0x217   :  { %v4358_v10 = vrot.slane %v2261_v2, %v7170_v42  ;;  %v4353_v11 = vrot.slane %v2260_v4, %v7173_v43  ;;  %1330 = vadd.xlane.f32.xlu1 %v1329_v59  ;;  %1327 = vadd.xlane.f32.xlu0 %v1326_v0  ;;  %v1347_v59 = vsel %vm527_vm0, %v288_v49, 0.0  ;;  %v1344_v0 = vsel %vm527_vm0, %v287_v50, 0.0  ;;  %v294_v49 = vld [vmem:[%s11124_s0 + $0x8b8] sm:$0xff]  ;;  %v293_v50 = vld [vmem:[%s11124_s0 + $0x8b0] sm:$0xff] }
 0x218   :  { %v1127_v12 = vpop.xlane.xlu1 %1126  ;;  %v1124_v15 = vpop.xlane.xlu0 %1123 }
 0x219   :  { %v4354_v20 = vsel %vm3383_vm4, %v4353_v11, %v4349_v8  ;;  %v2263_v21 = vmul.f32 0.0625, %v1127_v12  ;;  %v2262_v16 = vmul.f32 0.0625, %v1124_v15 }
 0x21a   :  { %v4359_v25 = vsel %vm3390_vm5, %v4358_v10, %v4354_v20 }
 0x21b   :  { %v4368_v27 = vrot.slane %v2263_v21, %v7192_v60  ;;  %v4363_v33 = vrot.slane %v2262_v16, %v7195_v61  ;;  %1336 = vadd.xlane.f32.xlu1 %v1335_v17  ;;  %1333 = vadd.xlane.f32.xlu0 %v1332_v18  ;;  %v1353_v17 = vsel %vm527_vm0, %v290_v5, 0.0  ;;  %v1350_v18 = vsel %vm527_vm0, %v289_v13, 0.0  ;;  %v295_v5 = vld [vmem:[%s11124_s0 + $0x8c0] sm:$0xff] }
 0x21c   :  { %v1133_v34 = vpop.xlane.xlu1 %1132  ;;  %v1130_v36 = vpop.xlane.xlu0 %1129 }
 0x21d   :  { %v4364_v44 = vsel %vm11136_vm6, %v4363_v33, %v4359_v25  ;;  %v2265_v47 = vmul.f32 0.0625, %v1133_v34  ;;  %v2264_v48 = vmul.f32 0.0625, %v1130_v36 }
 0x21e   :  { %v4369_v52 = vsel %vm3404_vm7, %v4368_v27, %v4364_v44 }
 0x21f   :  { %v4378_v54 = vrot.slane %v2265_v47, %v7213_v14  ;;  %v4373_v55 = vrot.slane %v2264_v48, %v7219_v19  ;;  %1342 = vadd.xlane.f32.xlu1 %v1341_v37  ;;  %1339 = vadd.xlane.f32.xlu0 %v1338_v38  ;;  %v1359_v37 = vsel %vm527_vm0, %v292_v23, 0.0  ;;  %v1356_v38 = vsel %vm527_vm0, %v291_v24, 0.0  ;;  %v298_v24 = vld [vmem:[%s11124_s0 + $0x8d8] sm:$0xff] }
 0x220   :  { %v1139_v56 = vpop.xlane.xlu1 %1138  ;;  %v1136_v58 = vpop.xlane.xlu0 %1135 }
 0x221   :  { %v4374_v1 = vsel %vm11129_vm8, %v4373_v55, %v4369_v52  ;;  %v2267_v2 = vmul.f32 0.0625, %v1139_v56  ;;  %v2266_v4 = vmul.f32 0.0625, %v1136_v58 }
 0x222   :  { %v4379_v8 = vsel %vm3418_vm9, %v4378_v54, %v4374_v1 }
 0x223   :  { %v4388_v10 = vrot.slane %v2267_v2, %v7233_v35  ;;  %v4383_v11 = vrot.slane %v2266_v4, %v7239_v39  ;;  %1348 = vadd.xlane.f32.xlu1 %v1347_v59  ;;  %1345 = vadd.xlane.f32.xlu0 %v1344_v0  ;;  %v1365_v59 = vsel %vm527_vm0, %v294_v49, 0.0  ;;  %v1362_v0 = vsel %vm527_vm0, %v293_v50, 0.0  ;;  %v296_v4 = vld [vmem:[%s11124_s0 + $0x8c8] sm:$0xff] }
 0x224   :  { %v1145_v12 = vpop.xlane.xlu1 %1144  ;;  %v1142_v15 = vpop.xlane.xlu0 %1141  ;;  %v2605_v49 = vld [vmem:[%s11125_s1 + $0xe8] sm:$0xff] }
 0x225   :  { %v4384_v20 = vsel %vm3425_vm10, %v4383_v11, %v4379_v8  ;;  %v2269_v21 = vmul.f32 0.0625, %v1145_v12  ;;  %v2268_v16 = vmul.f32 0.0625, %v1142_v15 }
 0x226   :  { %v4389_v25 = vsel %vm3432_vm11, %v4388_v10, %v4384_v20  ;;  %v2607_v20 = vld [vmem:[%s11125_s1 + $0xf8] sm:$0xff] }
 0x227   :  { %v4398_v27 = vrot.slane %v2269_v21, %v7253_v53  ;;  %v4393_v33 = vrot.slane %v2268_v16, %v7259_v57  ;;  %1354 = vadd.xlane.f32.xlu1 %v1353_v17  ;;  %1351 = vadd.xlane.f32.xlu0 %v1350_v18  ;;  %v1371_v17 = vsel %vm527_vm0, %v296_v4, 0.0  ;;  %v1368_v18 = vsel %vm527_vm0, %v295_v5, 0.0  ;;  %v2588_v4 = vld [vmem:[%s11125_s1 + $0x60] sm:$0xff] }
 0x228   :  { %v1151_v34 = vpop.xlane.xlu1 %1150  ;;  %v1148_v36 = vpop.xlane.xlu0 %1147  ;;  %6521 = vmatprep.subr.mxu0 %v2607_v20  ;;  %v301_v20 = vld [vmem:[%s11124_s0 + $0x8f0] sm:$0xff] }
 0x229   :  { %v4394_v44 = vsel %vm11128_vm12, %v4393_v33, %v4389_v25  ;;  %v2271_v47 = vmul.f32 0.0625, %v1151_v34  ;;  %v2270_v48 = vmul.f32 0.0625, %v1148_v36  ;;  %v297_v25 = vld [vmem:[%s11124_s0 + $0x8d0] sm:$0xff] }
 0x22a   :  { %v4399_v52 = vsel %vm3446_vm13, %v4398_v27, %v4394_v44  ;;  %v2591_v27 = vld [vmem:[%s11125_s1 + $0x78] sm:$0xff]  ;;  %v2606_v33 = vld [vmem:[%s11125_s1 + $0xf0] sm:$0xff] }
 0x22b   :  { %v4408_v54 = vrot.slane %v2271_v47, %v7278_v9  ;;  %v4403_v55 = vrot.slane %v2270_v48, %v7273_v6  ;;  %1360 = vadd.xlane.f32.xlu1 %v1359_v37  ;;  %1357 = vadd.xlane.f32.xlu0 %v1356_v38  ;;  %v2590_v37 = vld [vmem:[%s11125_s1 + $0x70] sm:$0xff]  ;;  %v1377_v47 = vsel %vm527_vm0, %v298_v24, 0.0  ;;  %v1374_v48 = vsel %vm527_vm0, %v297_v25, 0.0 }
 0x22c   :  { %v1157_v56 = vpop.xlane.xlu1 %1156  ;;  %v1154_v58 = vpop.xlane.xlu0 %1153  ;;  %6522 = vmatpush3.msra.mxu0 %v2591_v27  ;;  %v2602_v27 = vld [vmem:[%s11125_s1 + $0xd0] sm:$0xff] }
 0x22d   :  { %v2273_v1 = vmul.f32 0.0625, %v1157_v56  ;;  %v2272_v2 = vmul.f32 0.0625, %v1154_v58  ;;  %v4404_v13 = vsel %vm3453_vm14, %v4403_v55, %v4399_v52  ;;  %6523 = vmatprep.subr.mxu0 %v2606_v33  ;;  %v300_v55 = vld [vmem:[%s11124_s0 + $0x8e8] sm:$0xff]  ;;  %v299_v56 = vld [vmem:[%s11124_s0 + $0x8e0] sm:$0xff] }
 0x22e   :  { %v8466_v8 = vsel %vm3460_vm15, %v4408_v54, %v4404_v13  ;;  %6524 = vmatpush3.msra.mxu0 %v2590_v37  ;;  %v2589_v58 = vld [vmem:[%s11125_s1 + $0x68] sm:$0xff]  ;;  %v1386_v37 = vsel %vm527_vm0, %v301_v20, 0.0 }
 0x22f   :  { %11150 = vst [vmem:[#allocation16_spill] sm:$0xff] %v8466_v8  ;;  %v4417_v10 = vrot.slane %v2273_v1, %v7156_v31  ;;  %v4413_v11 = vrot.slane %v2272_v2, %v7150_v28  ;;  %1366 = vadd.xlane.f32.xlu1 %v1365_v59  ;;  %1363 = vadd.xlane.f32.xlu0 %v1362_v0  ;;  %v2604_v0 = vld [vmem:[%s11125_s1 + $0xe0] sm:$0xff]  ;;  %v414_v8 = vld [vmem:[%s11124_s0 + $0xc78] sm:$0xff] }
 0x230   :  { %v1163_v12 = vpop.xlane.xlu1 %1162  ;;  %v1160_v15 = vpop.xlane.xlu0 %1159  ;;  %6525 = vmatprep.subr.mxu0 %v2605_v49  ;;  %v303_v49 = vld [vmem:[%s11124_s0 + $0x900] sm:$0xff] }
 0x231   :  { %v4418_v21 = vsel %vm3362_vm1, %v4417_v10, %v4413_v11  ;;  %v2275_v16 = vmul.f32 0.0625, %v1163_v12  ;;  %v2274_v23 = vmul.f32 0.0625, %v1160_v15  ;;  %v1383_v10 = vsel %vm527_vm0, %v300_v55, 0.0  ;;  %6526 = vmatpush3.msra.mxu0 %v2589_v58  ;;  %v2585_v58 = vld [vmem:[%s11125_s1 + $0x48] sm:$0xff] }
 0x232   :  { %v1380_v11 = vsel %vm527_vm0, %v299_v56, 0.0  ;;  %6527 = vmatprep.subr.mxu0 %v2604_v0 }
 0x233   :  { %v4427_v34 = vrot.slane %v2275_v16, %v7153_v30  ;;  %v4422_v36 = vrot.slane %v2274_v23, %v7159_v32  ;;  %1372 = vadd.xlane.f32.xlu1 %v1371_v17  ;;  %1369 = vadd.xlane.f32.xlu0 %v1368_v18  ;;  %v302_v18 = vld [vmem:[%s11124_s0 + $0x8f8] sm:$0xff] }
 0x234   :  { %v1169_v38 = vpop.xlane.xlu1 %1168  ;;  %v1166_v44 = vpop.xlane.xlu0 %1165  ;;  %6528 = vmatpush3.msra.mxu0 %v2588_v4  ;;  %v2587_v23 = vld [vmem:[%s11125_s1 + $0x58] sm:$0xff] }
 0x235   :  { %v4423_v50 = vsel %vm3369_vm2, %v4422_v36, %v4418_v21  ;;  %v2277_v52 = vmul.f32 0.0625, %v1169_v38  ;;  %v2276_v54 = vmul.f32 0.0625, %v1166_v44  ;;  %v2603_v21 = vld [vmem:[%s11125_s1 + $0xd8] sm:$0xff]  ;;  %v1389_v36 = vsel %vm527_vm0, %v302_v18, 0.0 }
 0x236   :  { %v4428_v59 = vsel %vm3376_vm3, %v4427_v34, %v4423_v50  ;;  %6529 = vmatprep.subr.mxu0 %v2603_v21  ;;  %v2586_v50 = vld [vmem:[%s11125_s1 + $0x50] sm:$0xff]  ;;  %v2599_v21 = vld [vmem:[%s11125_s1 + $0xb8] sm:$0xff] }
 0x237   :  { %v4437_v1 = vrot.slane %v2277_v52, %v7170_v42  ;;  %v4432_v2 = vrot.slane %v2276_v54, %v7173_v43  ;;  %1378 = vadd.xlane.f32.xlu1 %v1377_v47  ;;  %1375 = vadd.xlane.f32.xlu0 %v1374_v48  ;;  %v304_v48 = vld [vmem:[%s11124_s0 + $0x908] sm:$0xff] }
 0x238   :  { %v1175_v5 = vpop.xlane.xlu1 %1174  ;;  %v1172_v13 = vpop.xlane.xlu0 %1171  ;;  %6530 = vmatpush3.msra.mxu0 %v2587_v23  ;;  %v2601_v54 = vld [vmem:[%s11125_s1 + $0xc8] sm:$0xff] }
 0x239   :  { %v4433_v12 = vsel %vm3383_vm4, %v4432_v2, %v4428_v59  ;;  %v2279_v15 = vmul.f32 0.0625, %v1175_v5  ;;  %v2278_v17 = vmul.f32 0.0625, %v1172_v13  ;;  %6531 = vmatprep.subr.mxu0 %v2602_v27  ;;  %v1392_v2 = vsel %vm527_vm0, %v303_v49, 0.0 }
 0x23a   :  { %v4438_v16 = vsel %vm3390_vm5, %v4437_v1, %v4433_v12  ;;  %v1395_v1 = vsel %vm527_vm0, %v304_v48, 0.0  ;;  %6532 = vmatpush3.msra.mxu0 %v2586_v50  ;;  %v2600_v12 = vld [vmem:[%s11125_s1 + $0xc0] sm:$0xff]  ;;  %v2582_v50 = vld [vmem:[%s11125_s1 + $0x30] sm:$0xff] }
 0x23b   :  { %v4447_v24 = vrot.slane %v2279_v15, %v7192_v60  ;;  %v4442_v25 = vrot.slane %v2278_v17, %v7195_v61  ;;  %1384 = vadd.xlane.f32.xlu1 %v1383_v10  ;;  %1381 = vadd.xlane.f32.xlu0 %v1380_v11  ;;  %v306_v10 = vld [vmem:[%s11124_s0 + $0x918] sm:$0xff]  ;;  %v305_v11 = vld [vmem:[%s11124_s0 + $0x910] sm:$0xff]  ;;  %v2584_v17 = vld [vmem:[%s11125_s1 + $0x40] sm:$0xff] }
 0x23c   :  { %v1181_v33 = vpop.xlane.xlu1 %1180  ;;  %v1178_v34 = vpop.xlane.xlu0 %1177  ;;  %6533 = vmatprep.subr.mxu0 %v2601_v54 }
 0x23d   :  { %v4443_v38 = vsel %vm11136_vm6, %v4442_v25, %v4438_v16  ;;  %v2281_v44 = vmul.f32 0.0625, %v1181_v33  ;;  %v2280_v47 = vmul.f32 0.0625, %v1178_v34  ;;  %6534 = vmatpush3.msra.mxu0 %v2585_v58  ;;  %v1398_v25 = vsel %vm527_vm0, %v305_v11, 0.0 }
 0x23e   :  { %v4448_v52 = vsel %vm3404_vm7, %v4447_v24, %v4443_v38  ;;  %v1401_v24 = vsel %vm527_vm0, %v306_v10, 0.0  ;;  %6535 = vmatprep.subr.mxu0 %v2600_v12  ;;  %v2583_v38 = vld [vmem:[%s11125_s1 + $0x38] sm:$0xff]  ;;  %v2596_v12 = vld [vmem:[%s11125_s1 + $0xa0] sm:$0xff] }
 0x23f   :  { %v4457_v55 = vrot.slane %v2281_v44, %v7213_v14  ;;  %v4452_v56 = vrot.slane %v2280_v47, %v7219_v19  ;;  %1390 = vadd.xlane.f32.xlu1 %v1389_v36  ;;  %1387 = vadd.xlane.f32.xlu0 %v1386_v37  ;;  %v308_v36 = vld [vmem:[%s11124_s0 + $0x928] sm:$0xff]  ;;  %v307_v37 = vld [vmem:[%s11124_s0 + $0x920] sm:$0xff]  ;;  %v2598_v47 = vld [vmem:[%s11125_s1 + $0xb0] sm:$0xff] }
 0x240   :  { %v1187_v59 = vpop.xlane.xlu1 %1186  ;;  %v1184_v0 = vpop.xlane.xlu0 %1183  ;;  %6536 = vmatpush3.msra.mxu0 %v2584_v17 }
 0x241   :  { %v4453_v4 = vsel %vm11129_vm8, %v4452_v56, %v4448_v52  ;;  %v2283_v5 = vmul.f32 0.0625, %v1187_v59  ;;  %v2282_v13 = vmul.f32 0.0625, %v1184_v0  ;;  %6537 = vmatprep.subr.mxu0 %v2599_v21  ;;  %v1404_v56 = vsel %vm527_vm0, %v307_v37, 0.0 }
 0x242   :  { %v4458_v15 = vsel %vm3418_vm9, %v4457_v55, %v4453_v4  ;;  %v1407_v55 = vsel %vm527_vm0, %v308_v36, 0.0  ;;  %6538 = vmatpush3.msra.mxu0 %v2583_v38  ;;  %v2597_v4 = vld [vmem:[%s11125_s1 + $0xa8] sm:$0xff]  ;;  %v2579_v38 = vld [vmem:[%s11125_s1 + $0x18] sm:$0xff] }
 0x243   :  { %v4467_v18 = vrot.slane %v2283_v5, %v7233_v35  ;;  %v4462_v20 = vrot.slane %v2282_v13, %v7239_v39  ;;  %1396 = vadd.xlane.f32.xlu1 %v1395_v1  ;;  %1393 = vadd.xlane.f32.xlu0 %v1392_v2  ;;  %v310_v1 = vld [vmem:[%s11124_s0 + $0x938] sm:$0xff]  ;;  %v309_v2 = vld [vmem:[%s11124_s0 + $0x930] sm:$0xff]  ;;  %v2581_v5 = vld [vmem:[%s11125_s1 + $0x28] sm:$0xff] }
 0x244   :  { %v1193_v16 = vpop.xlane.xlu1 %1192  ;;  %v1190_v23 = vpop.xlane.xlu0 %1189  ;;  %6539 = vmatprep.subr.mxu0 %v2598_v47 }
 0x245   :  { %v4463_v27 = vsel %vm3425_vm10, %v4462_v20, %v4458_v15  ;;  %v2285_v33 = vmul.f32 0.0625, %v1193_v16  ;;  %v2284_v34 = vmul.f32 0.0625, %v1190_v23  ;;  %6540 = vmatpush3.msra.mxu0 %v2582_v50  ;;  %v1410_v20 = vsel %vm527_vm0, %v309_v2, 0.0  ;;  %v312_v23 = vld [vmem:[%s11124_s0 + $0x948] sm:$0xff] }
 0x246   :  { %v4468_v44 = vsel %vm3432_vm11, %v4467_v18, %v4463_v27  ;;  %v1413_v18 = vsel %vm527_vm0, %v310_v1, 0.0  ;;  %6541 = vmatprep.subr.mxu0 %v2597_v4  ;;  %v2593_v2 = vld [vmem:[%s11125_s1 + $0x88] sm:$0xff] }
 0x247   :  { %v4477_v48 = vrot.slane %v2285_v33, %v7253_v53  ;;  %v4472_v49 = vrot.slane %v2284_v34, %v7259_v57  ;;  %1402 = vadd.xlane.f32.xlu1 %v1401_v24  ;;  %1399 = vadd.xlane.f32.xlu0 %v1398_v25  ;;  %v311_v24 = vld [vmem:[%s11124_s0 + $0x940] sm:$0xff]  ;;  %v2595_v33 = vld [vmem:[%s11125_s1 + $0x98] sm:$0xff] }
 0x248   :  { %v1199_v52 = vpop.xlane.xlu1 %1198  ;;  %v1196_v54 = vpop.xlane.xlu0 %1195  ;;  %6542 = vmatpush3.msra.mxu0 %v2581_v5  ;;  %v2580_v25 = vld [vmem:[%s11125_s1 + $0x20] sm:$0xff] }
 0x249   :  { %v4473_v58 = vsel %vm11128_vm12, %v4472_v49, %v4468_v44  ;;  %v2287_v59 = vmul.f32 0.0625, %v1199_v52  ;;  %v2286_v0 = vmul.f32 0.0625, %v1196_v54  ;;  %6543 = vmatprep.subr.mxu0 %v2596_v12  ;;  %v1416_v49 = vsel %vm527_vm0, %v311_v24, 0.0 }
 0x24a   :  { %v4478_v13 = vsel %vm3446_vm13, %v4477_v48, %v4473_v58  ;;  %v1419_v48 = vsel %vm527_vm0, %v312_v23, 0.0  ;;  %6544 = vmatpush3.msra.mxu0 %v2580_v25  ;;  %v2594_v58 = vld [vmem:[%s11125_s1 + $0x90] sm:$0xff]  ;;  %v2576_v25 = vld [vmem:[%s11125_s1] sm:$0xff] }
 0x24b   :  { %v4487_v10 = vrot.slane %v2287_v59, %v7278_v9  ;;  %v4482_v11 = vrot.slane %v2286_v0, %v7273_v6  ;;  %1408 = vadd.xlane.f32.xlu1 %v1407_v55  ;;  %1405 = vadd.xlane.f32.xlu0 %v1404_v56  ;;  %v314_v55 = vld [vmem:[%s11124_s0 + $0x958] sm:$0xff]  ;;  %v313_v56 = vld [vmem:[%s11124_s0 + $0x950] sm:$0xff] }
 0x24c   :  { %v1205_v15 = vpop.xlane.xlu1 %1204  ;;  %v1202_v17 = vpop.xlane.xlu0 %1201  ;;  %6545 = vmatprep.subr.mxu0 %v2595_v33  ;;  %v2578_v59 = vld [vmem:[%s11125_s1 + $0x10] sm:$0xff] }
 0x24d   :  { %v2289_v21 = vmul.f32 0.0625, %v1205_v15  ;;  %v2288_v16 = vmul.f32 0.0625, %v1202_v17  ;;  %v4483_v27 = vsel %vm3453_vm14, %v4482_v11, %v4478_v13  ;;  %6546 = vmatpush3.msra.mxu0 %v2579_v38  ;;  %v1425_v13 = vsel %vm527_vm0, %v314_v55, 0.0  ;;  %v316_v17 = vld [vmem:[%s11124_s0 + $0x968] sm:$0xff] }
 0x24e   :  { %v8638_v34 = vsel %vm3460_vm15, %v4487_v10, %v4483_v27  ;;  %v1422_v10 = vsel %vm527_vm0, %v313_v56, 0.0  ;;  %6547 = vmatprep.subr.mxu0 %v2594_v58 }
 0x24f   :  { %11151 = vst [vmem:[#allocation17_spill] sm:$0xff] %v8638_v34  ;;  %v4496_v36 = vrot.slane %v2289_v21, %v7156_v31  ;;  %v4492_v37 = vrot.slane %v2288_v16, %v7150_v28  ;;  %1414 = vadd.xlane.f32.xlu1 %v1413_v18  ;;  %1411 = vadd.xlane.f32.xlu0 %v1410_v20  ;;  %v315_v18 = vld [vmem:[%s11124_s0 + $0x960] sm:$0xff]  ;;  %v2577_v20 = vld [vmem:[%s11125_s1 + $0x8] sm:$0xff] }
 0x250   :  { %v1211_v44 = vpop.xlane.xlu1 %1210  ;;  %v1208_v47 = vpop.xlane.xlu0 %1207  ;;  %6548 = vmatpush3.msra.mxu0 %v2578_v59  ;;  %v2592_v16 = vld [vmem:[%s11125_s1 + $0x80] sm:$0xff] }
 0x251   :  { %v4497_v50 = vsel %vm3362_vm1, %v4496_v36, %v4492_v37  ;;  %v2291_v52 = vmul.f32 0.0625, %v1211_v44  ;;  %v2290_v54 = vmul.f32 0.0625, %v1208_v47  ;;  %6549 = vmatprep.subr.mxu0 %v2593_v2  ;;  %v1431_v36 = vsel %vm527_vm0, %v316_v17, 0.0 }
 0x252   :  { %v1428_v37 = vsel %vm527_vm0, %v315_v18, 0.0  ;;  %6550 = vmatpush3.msra.mxu0 %v2577_v20 }
 0x253   :  { %v4506_v0 = vrot.slane %v2291_v52, %v7153_v30  ;;  %v4501_v1 = vrot.slane %v2290_v54, %v7159_v32  ;;  %1420 = vadd.xlane.f32.xlu1 %v1419_v48  ;;  %1417 = vadd.xlane.f32.xlu0 %v1416_v49  ;;  %v318_v48 = vld [vmem:[%s11124_s0 + $0x978] sm:$0xff]  ;;  %v317_v49 = vld [vmem:[%s11124_s0 + $0x970] sm:$0xff] }
 0x254   :  { %v1217_v4 = vpop.xlane.xlu1 %1216  ;;  %v1214_v5 = vpop.xlane.xlu0 %1213  ;;  %6551 = vmatprep.subr.mxu0 %v2592_v16  ;;  %v1437_v58 = vsel %vm527_vm0, %v318_v48, 0.0  ;;  %v1434_v59 = vsel %vm527_vm0, %v317_v49, 0.0 }
 0x255   :  { %v4502_v11 = vsel %vm3369_vm2, %v4501_v1, %v4497_v50  ;;  %v2293_v12 = vmul.f32 0.0625, %v1217_v4  ;;  %v2292_v15 = vmul.f32 0.0625, %v1214_v5  ;;  %6552 = vmatpush3.msra.mxu0 %v2576_v25  ;;  %v320_v4 = vld [vmem:[%s11124_s0 + $0x988] sm:$0xff]  ;;  %v319_v5 = vld [vmem:[%s11124_s0 + $0x980] sm:$0xff] }
 0x256   :  { %v4507_v21 = vsel %vm3376_vm3, %v4506_v0, %v4502_v11  ;;  %v1443_v17 = vsel %vm527_vm0, %v320_v4, 0.0  ;;  %v1440_v18 = vsel %vm527_vm0, %v319_v5, 0.0 }
 0x257   :  { %v4516_v23 = vrot.slane %v2293_v12, %v7170_v42  ;;  %v4511_v24 = vrot.slane %v2292_v15, %v7173_v43  ;;  %1426 = vadd.xlane.f32.xlu1 %v1425_v13  ;;  %1423 = vadd.xlane.f32.xlu0 %v1422_v10 }
 0x258   :  { %v1223_v27 = vpop.xlane.xlu1 %1222  ;;  %v1220_v33 = vpop.xlane.xlu0 %1219 }
 0x259   :  { %v4512_v38 = vsel %vm3383_vm4, %v4511_v24, %v4507_v21  ;;  %v2295_v44 = vmul.f32 0.0625, %v1223_v27  ;;  %v2294_v47 = vmul.f32 0.0625, %v1220_v33  ;;  %v321_v24 = vld [vmem:[%s11124_s0 + $0x990] sm:$0xff] }
 0x25a   :  { %v4517_v50 = vsel %vm3390_vm5, %v4516_v23, %v4512_v38  ;;  %v322_v23 = vld [vmem:[%s11124_s0 + $0x998] sm:$0xff] }
 0x25b   :  { %v4526_v52 = vrot.slane %v2295_v44, %v7192_v60  ;;  %v4521_v54 = vrot.slane %v2294_v47, %v7195_v61  ;;  %1432 = vadd.xlane.f32.xlu1 %v1431_v36  ;;  %1429 = vadd.xlane.f32.xlu0 %v1428_v37  ;;  %v1449_v38 = vsel %vm527_vm0, %v322_v23, 0.0  ;;  %v1446_v44 = vsel %vm527_vm0, %v321_v24, 0.0  ;;  %v328_v24 = vld [vmem:[%s11124_s0 + $0x9c8] sm:$0xff] }
 0x25c   :  { %v1229_v55 = vpop.xlane.xlu1 %1228  ;;  %v1226_v56 = vpop.xlane.xlu0 %1225 }
 0x25d   :  { %v4522_v0 = vsel %vm11136_vm6, %v4521_v54, %v4517_v50  ;;  %v2297_v1 = vmul.f32 0.0625, %v1229_v55  ;;  %v2296_v2 = vmul.f32 0.0625, %v1226_v56  ;;  %v324_v50 = vld [vmem:[%s11124_s0 + $0x9a8] sm:$0xff] }
 0x25e   :  { %v4527_v13 = vsel %vm3404_vm7, %v4526_v52, %v4522_v0  ;;  %v323_v52 = vld [vmem:[%s11124_s0 + $0x9a0] sm:$0xff]  ;;  %v1455_v0 = vsel %vm527_vm0, %v324_v50, 0.0 }
 0x25f   :  { %v4536_v10 = vrot.slane %v2297_v1, %v7213_v14  ;;  %v4531_v11 = vrot.slane %v2296_v2, %v7219_v19  ;;  %1438 = vadd.xlane.f32.xlu1 %v1437_v58  ;;  %1435 = vadd.xlane.f32.xlu0 %v1434_v59  ;;  %v1452_v1 = vsel %vm527_vm0, %v323_v52, 0.0 }
 0x260   :  { %v1235_v12 = vpop.xlane.xlu1 %1234  ;;  %v1232_v15 = vpop.xlane.xlu0 %1231 }
 0x261   :  { %v4532_v20 = vsel %vm11129_vm8, %v4531_v11, %v4527_v13  ;;  %v2299_v21 = vmul.f32 0.0625, %v1235_v12  ;;  %v2298_v16 = vmul.f32 0.0625, %v1232_v15  ;;  %v326_v13 = vld [vmem:[%s11124_s0 + $0x9b8] sm:$0xff] }
 0x262   :  { %v4537_v25 = vsel %vm3418_vm9, %v4536_v10, %v4532_v20  ;;  %v325_v10 = vld [vmem:[%s11124_s0 + $0x9b0] sm:$0xff]  ;;  %v1461_v20 = vsel %vm527_vm0, %v326_v13, 0.0 }
 0x263   :  { %v4546_v27 = vrot.slane %v2299_v21, %v7233_v35  ;;  %v4541_v33 = vrot.slane %v2298_v16, %v7239_v39  ;;  %1444 = vadd.xlane.f32.xlu1 %v1443_v17  ;;  %1441 = vadd.xlane.f32.xlu0 %v1440_v18  ;;  %v1458_v21 = vsel %vm527_vm0, %v325_v10, 0.0 }
 0x264   :  { %v1241_v36 = vpop.xlane.xlu1 %1240  ;;  %v1238_v37 = vpop.xlane.xlu0 %1237 }
 0x265   :  { %v4542_v47 = vsel %vm3425_vm10, %v4541_v33, %v4537_v25  ;;  %v2301_v48 = vmul.f32 0.0625, %v1241_v36  ;;  %v2300_v49 = vmul.f32 0.0625, %v1238_v37  ;;  %v327_v25 = vld [vmem:[%s11124_s0 + $0x9c0] sm:$0xff] }
 0x266   :  { %v4547_v54 = vsel %vm3432_vm11, %v4546_v27, %v4542_v47  ;;  %v1467_v47 = vsel %vm527_vm0, %v328_v24, 0.0 }
 0x267   :  { %v4556_v55 = vrot.slane %v2301_v48, %v7253_v53  ;;  %v4551_v56 = vrot.slane %v2300_v49, %v7259_v57  ;;  %1450 = vadd.xlane.f32.xlu1 %v1449_v38  ;;  %1447 = vadd.xlane.f32.xlu0 %v1446_v44  ;;  %v1464_v48 = vsel %vm527_vm0, %v327_v25, 0.0  ;;  %v2639_v49 = vld [vmem:[%s11125_s1 + $0x1f8] sm:$0xff] }
 0x268   :  { %v1247_v58 = vpop.xlane.xlu1 %1246  ;;  %v1244_v59 = vpop.xlane.xlu0 %1243  ;;  %6556 = vmatprep.subr.mxu1 %v2639_v49 }
 0x269   :  { %v4552_v2 = vsel %vm11128_vm12, %v4551_v56, %v4547_v54  ;;  %v2303_v4 = vmul.f32 0.0625, %v1247_v58  ;;  %v2302_v5 = vmul.f32 0.0625, %v1244_v59  ;;  %v329_v56 = vld [vmem:[%s11124_s0 + $0x9d0] sm:$0xff]  ;;  %v2623_v58 = vld [vmem:[%s11125_s1 + $0x178] sm:$0xff] }
 0x26a   :  { %v4557_v11 = vsel %vm3446_vm13, %v4556_v55, %v4552_v2  ;;  %v330_v55 = vld [vmem:[%s11124_s0 + $0x9d8] sm:$0xff]  ;;  %6557 = vmatpush3.msra.mxu1 %v2623_v58  ;;  %v2638_v59 = vld [vmem:[%s11125_s1 + $0x1f0] sm:$0xff]  ;;  %v1470_v10 = vsel %vm527_vm0, %v329_v56, 0.0 }
 0x26b   :  { %v4566_v12 = vrot.slane %v2303_v4, %v7278_v9  ;;  %v4561_v15 = vrot.slane %v2302_v5, %v7273_v6  ;;  %1456 = vadd.xlane.f32.xlu1 %v1455_v0  ;;  %1453 = vadd.xlane.f32.xlu0 %v1452_v1  ;;  %v2622_v2 = vld [vmem:[%s11125_s1 + $0x170] sm:$0xff]  ;;  %v1473_v13 = vsel %vm527_vm0, %v330_v55, 0.0  ;;  %v2619_v56 = vld [vmem:[%s11125_s1 + $0x158] sm:$0xff] }
 0x26c   :  { %v1253_v17 = vpop.xlane.xlu1 %1252  ;;  %v1250_v18 = vpop.xlane.xlu0 %1249  ;;  %6558 = vmatprep.subr.mxu1 %v2638_v59 }
 0x26d   :  { %v2305_v16 = vmul.f32 0.0625, %v1253_v17  ;;  %v2304_v23 = vmul.f32 0.0625, %v1250_v18  ;;  %v4562_v27 = vsel %vm3453_vm14, %v4561_v15, %v4557_v11  ;;  %v2637_v11 = vld [vmem:[%s11125_s1 + $0x1e8] sm:$0xff]  ;;  %6559 = vmatpush3.msra.mxu1 %v2622_v2 }
 0x26e   :  { %v8756_v33 = vsel %vm3460_vm15, %v4566_v12, %v4562_v27  ;;  %v332_v18 = vld [vmem:[%s11124_s0 + $0x9e8] sm:$0xff]  ;;  %6560 = vmatprep.subr.mxu1 %v2637_v11  ;;  %v2620_v27 = vld [vmem:[%s11125_s1 + $0x160] sm:$0xff] }
 0x26f   :  { %11152 = vst [vmem:[#allocation18_spill] sm:$0xff] %v8756_v33  ;;  %v4575_v36 = vrot.slane %v2305_v16, %v7156_v31  ;;  %v4571_v37 = vrot.slane %v2304_v23, %v7150_v28  ;;  %1462 = vadd.xlane.f32.xlu1 %v1461_v20  ;;  %1459 = vadd.xlane.f32.xlu0 %v1458_v21  ;;  %v331_v20 = vld [vmem:[%s11124_s0 + $0x9e0] sm:$0xff]  ;;  %v2621_v21 = vld [vmem:[%s11125_s1 + $0x168] sm:$0xff] }
 0x270   :  { %v1259_v38 = vpop.xlane.xlu1 %1258  ;;  %v1256_v44 = vpop.xlane.xlu0 %1255  ;;  %v2636_v23 = vld [vmem:[%s11125_s1 + $0x1e0] sm:$0xff]  ;;  %6561 = vmatpush3.msra.mxu1 %v2621_v21 }
 0x271   :  { %v4576_v50 = vsel %vm3362_vm1, %v4575_v36, %v4571_v37  ;;  %v2307_v52 = vmul.f32 0.0625, %v1259_v38  ;;  %v2306_v54 = vmul.f32 0.0625, %v1256_v44  ;;  %v1479_v38 = vsel %vm527_vm0, %v332_v18, 0.0  ;;  %6562 = vmatprep.subr.mxu1 %v2636_v23  ;;  %v2617_v23 = vld [vmem:[%s11125_s1 + $0x148] sm:$0xff]  ;;  %v443_v33 = vld [vmem:[%s11124_s0 + $0xd60] sm:$0xff] }
 0x272   :  { %v1476_v44 = vsel %vm527_vm0, %v331_v20, 0.0  ;;  %6563 = vmatpush3.msra.mxu1 %v2620_v27  ;;  %v2633_v20 = vld [vmem:[%s11125_s1 + $0x1c8] sm:$0xff] }
 0x273   :  { %v4585_v0 = vrot.slane %v2307_v52, %v7153_v30  ;;  %v4580_v1 = vrot.slane %v2306_v54, %v7159_v32  ;;  %1468 = vadd.xlane.f32.xlu1 %v1467_v47  ;;  %1465 = vadd.xlane.f32.xlu0 %v1464_v48  ;;  %v333_v52 = vld [vmem:[%s11124_s0 + $0x9f0] sm:$0xff]  ;;  %v2635_v54 = vld [vmem:[%s11125_s1 + $0x1d8] sm:$0xff] }
 0x274   :  { %v1265_v4 = vpop.xlane.xlu1 %1264  ;;  %v1262_v5 = vpop.xlane.xlu0 %1261  ;;  %6564 = vmatprep.subr.mxu1 %v2635_v54 }
 0x275   :  { %v4581_v12 = vsel %vm3369_vm2, %v4580_v1, %v4576_v50  ;;  %v2309_v15 = vmul.f32 0.0625, %v1265_v4  ;;  %v2308_v17 = vmul.f32 0.0625, %v1262_v5  ;;  %v334_v50 = vld [vmem:[%s11124_s0 + $0x9f8] sm:$0xff]  ;;  %v1482_v5 = vsel %vm527_vm0, %v333_v52, 0.0  ;;  %6565 = vmatpush3.msra.mxu1 %v2619_v56  ;;  %v2616_v52 = vld [vmem:[%s11125_s1 + $0x140] sm:$0xff] }
 0x276   :  { %v4586_v16 = vsel %vm3376_vm3, %v4585_v0, %v4581_v12  ;;  %v2634_v0 = vld [vmem:[%s11125_s1 + $0x1d0] sm:$0xff]  ;;  %v1485_v4 = vsel %vm527_vm0, %v334_v50, 0.0  ;;  %v336_v12 = vld [vmem:[%s11124_s0 + $0xa08] sm:$0xff]  ;;  %v2631_v56 = vld [vmem:[%s11125_s1 + $0x1b8] sm:$0xff] }
 0x277   :  { %v4595_v24 = vrot.slane %v2309_v15, %v7170_v42  ;;  %v4590_v25 = vrot.slane %v2308_v17, %v7173_v43  ;;  %1474 = vadd.xlane.f32.xlu1 %v1473_v13  ;;  %1471 = vadd.xlane.f32.xlu0 %v1470_v10  ;;  %v335_v15 = vld [vmem:[%s11124_s0 + $0xa00] sm:$0xff]  ;;  %v2618_v17 = vld [vmem:[%s11125_s1 + $0x150] sm:$0xff]  ;;  %v1491_v27 = vsel %vm527_vm0, %v336_v12, 0.0 }
 0x278   :  { %v1271_v36 = vpop.xlane.xlu1 %1270  ;;  %v1268_v37 = vpop.xlane.xlu0 %1267  ;;  %6566 = vmatprep.subr.mxu1 %v2634_v0 }
 0x279   :  { %v4591_v47 = vsel %vm3383_vm4, %v4590_v25, %v4586_v16  ;;  %v2311_v48 = vmul.f32 0.0625, %v1271_v36  ;;  %v2310_v49 = vmul.f32 0.0625, %v1268_v37  ;;  %v1488_v36 = vsel %vm527_vm0, %v335_v15, 0.0  ;;  %6567 = vmatpush3.msra.mxu1 %v2618_v17  ;;  %v2630_v15 = vld [vmem:[%s11125_s1 + $0x1b0] sm:$0xff] }
 0x27a   :  { %v4596_v55 = vsel %vm3390_vm5, %v4595_v24, %v4591_v47  ;;  %v338_v47 = vld [vmem:[%s11124_s0 + $0xa18] sm:$0xff]  ;;  %6568 = vmatprep.subr.mxu1 %v2633_v20  ;;  %v2614_v20 = vld [vmem:[%s11125_s1 + $0x130] sm:$0xff] }
 0x27b   :  { %v4605_v58 = vrot.slane %v2311_v48, %v7192_v60  ;;  %v4600_v59 = vrot.slane %v2310_v49, %v7195_v61  ;;  %1480 = vadd.xlane.f32.xlu1 %v1479_v38  ;;  %1477 = vadd.xlane.f32.xlu0 %v1476_v44  ;;  %v337_v48 = vld [vmem:[%s11124_s0 + $0xa10] sm:$0xff]  ;;  %v2632_v49 = vld [vmem:[%s11125_s1 + $0x1c0] sm:$0xff]  ;;  %v1497_v0 = vsel %vm527_vm0, %v338_v47, 0.0  ;;  %v2613_v47 = vld [vmem:[%s11125_s1 + $0x128] sm:$0xff] }
 0x27c   :  { %v1277_v1 = vpop.xlane.xlu1 %1276  ;;  %v1274_v2 = vpop.xlane.xlu0 %1273  ;;  %6569 = vmatpush3.msra.mxu1 %v2617_v23 }
 0x27d   :  { %v4601_v13 = vsel %vm11136_vm6, %v4600_v59, %v4596_v55  ;;  %v2313_v10 = vmul.f32 0.0625, %v1277_v1  ;;  %v2312_v11 = vmul.f32 0.0625, %v1274_v2  ;;  %v1494_v1 = vsel %vm527_vm0, %v337_v48, 0.0  ;;  %6570 = vmatprep.subr.mxu1 %v2632_v49 }
 0x27e   :  { %v4606_v18 = vsel %vm3404_vm7, %v4605_v58, %v4601_v13  ;;  %v340_v13 = vld [vmem:[%s11124_s0 + $0xa28] sm:$0xff]  ;;  %6571 = vmatpush3.msra.mxu1 %v2616_v52  ;;  %v2628_v52 = vld [vmem:[%s11125_s1 + $0x1a0] sm:$0xff] }
 0x27f   :  { %v4615_v21 = vrot.slane %v2313_v10, %v7213_v14  ;;  %v4610_v16 = vrot.slane %v2312_v11, %v7219_v19  ;;  %1486 = vadd.xlane.f32.xlu1 %v1485_v4  ;;  %1483 = vadd.xlane.f32.xlu0 %v1482_v5  ;;  %v339_v10 = vld [vmem:[%s11124_s0 + $0xa20] sm:$0xff]  ;;  %v2615_v11 = vld [vmem:[%s11125_s1 + $0x138] sm:$0xff]  ;;  %v1503_v23 = vsel %vm527_vm0, %v340_v13, 0.0 }
 0x280   :  { %v1283_v24 = vpop.xlane.xlu1 %1282  ;;  %v1280_v25 = vpop.xlane.xlu0 %1279  ;;  %6572 = vmatprep.subr.mxu1 %v2631_v56  ;;  %v2611_v13 = vld [vmem:[%s11125_s1 + $0x118] sm:$0xff] }
 0x281   :  { %v4611_v37 = vsel %vm11129_vm8, %v4610_v16, %v4606_v18  ;;  %v2315_v38 = vmul.f32 0.0625, %v1283_v24  ;;  %v2314_v44 = vmul.f32 0.0625, %v1280_v25  ;;  %v1500_v24 = vsel %vm527_vm0, %v339_v10, 0.0  ;;  %6573 = vmatpush3.msra.mxu1 %v2615_v11 }
 0x282   :  { %v4616_v50 = vsel %vm3418_vm9, %v4615_v21, %v4611_v37  ;;  %v342_v37 = vld [vmem:[%s11124_s0 + $0xa38] sm:$0xff]  ;;  %6574 = vmatprep.subr.mxu1 %v2630_v15 }
 0x283   :  { %v4625_v54 = vrot.slane %v2315_v38, %v7233_v35  ;;  %v4620_v55 = vrot.slane %v2314_v44, %v7239_v39  ;;  %1492 = vadd.xlane.f32.xlu1 %v1491_v27  ;;  %1489 = vadd.xlane.f32.xlu0 %v1488_v36  ;;  %v341_v38 = vld [vmem:[%s11124_s0 + $0xa30] sm:$0xff]  ;;  %v2629_v44 = vld [vmem:[%s11125_s1 + $0x1a8] sm:$0xff]  ;;  %v1509_v56 = vsel %vm527_vm0, %v342_v37, 0.0  ;;  %v347_v37 = vld [vmem:[%s11124_s0 + $0xa60] sm:$0xff] }
 0x284   :  { %v1289_v58 = vpop.xlane.xlu1 %1288  ;;  %v1286_v59 = vpop.xlane.xlu0 %1285  ;;  %6575 = vmatpush3.msra.mxu1 %v2614_v20  ;;  %v2626_v20 = vld [vmem:[%s11125_s1 + $0x190] sm:$0xff] }
 0x285   :  { %v4621_v2 = vsel %vm3425_vm10, %v4620_v55, %v4616_v50  ;;  %v2317_v4 = vmul.f32 0.0625, %v1289_v58  ;;  %v2316_v5 = vmul.f32 0.0625, %v1286_v59  ;;  %v1506_v58 = vsel %vm527_vm0, %v341_v38, 0.0  ;;  %6576 = vmatprep.subr.mxu1 %v2629_v44  ;;  %v344_v59 = vld [vmem:[%s11124_s0 + $0xa48] sm:$0xff]  ;;  %v2624_v44 = vld [vmem:[%s11125_s1 + $0x180] sm:$0xff] }
 0x286   :  { %v4626_v12 = vsel %vm3432_vm11, %v4625_v54, %v4621_v2  ;;  %6577 = vmatpush3.msra.mxu1 %v2613_v47  ;;  %v2609_v38 = vld [vmem:[%s11125_s1 + $0x108] sm:$0xff]  ;;  %v2608_v47 = vld [vmem:[%s11125_s1 + $0x100] sm:$0xff] }
 0x287   :  { %v4635_v17 = vrot.slane %v2317_v4, %v7253_v53  ;;  %v4630_v18 = vrot.slane %v2316_v5, %v7259_v57  ;;  %1498 = vadd.xlane.f32.xlu1 %v1497_v0  ;;  %1495 = vadd.xlane.f32.xlu0 %v1494_v1  ;;  %v343_v0 = vld [vmem:[%s11124_s0 + $0xa40] sm:$0xff]  ;;  %v2627_v4 = vld [vmem:[%s11125_s1 + $0x198] sm:$0xff] }
 0x288   :  { %v1295_v21 = vpop.xlane.xlu1 %1294  ;;  %v1292_v16 = vpop.xlane.xlu0 %1291  ;;  %v2612_v1 = vld [vmem:[%s11125_s1 + $0x120] sm:$0xff]  ;;  %6578 = vmatprep.subr.mxu1 %v2628_v52  ;;  %v1512_v15 = vsel %vm527_vm0, %v343_v0, 0.0  ;;  %v1524_v52 = vsel %vm527_vm0, %v347_v37, 0.0 }
 0x289   :  { %v4631_v25 = vsel %vm11128_vm12, %v4630_v18, %v4626_v12  ;;  %v2319_v27 = vmul.f32 0.0625, %v1295_v21  ;;  %v2318_v36 = vmul.f32 0.0625, %v1292_v16  ;;  %v1515_v12 = vsel %vm527_vm0, %v344_v59, 0.0  ;;  %6579 = vmatpush3.msra.mxu1 %v2612_v1  ;;  %v345_v18 = vld [vmem:[%s11124_s0 + $0xa50] sm:$0xff]  ;;  %v2625_v16 = vld [vmem:[%s11125_s1 + $0x188] sm:$0xff]  ;;  %v367_v37 = vld [vmem:[%s11124_s0 + $0xb00] sm:$0xff] }
 0x28a   :  { %v4636_v48 = vsel %vm3446_vm13, %v4635_v17, %v4631_v25  ;;  %v346_v17 = vld [vmem:[%s11124_s0 + $0xa58] sm:$0xff]  ;;  %6580 = vmatprep.subr.mxu1 %v2627_v4  ;;  %v2610_v21 = vld [vmem:[%s11125_s1 + $0x110] sm:$0xff] }
 0x28b   :  { %v4645_v49 = vrot.slane %v2319_v27, %v7278_v9  ;;  %v4640_v50 = vrot.slane %v2318_v36, %v7273_v6  ;;  %1504 = vadd.xlane.f32.xlu1 %v1503_v23  ;;  %1501 = vadd.xlane.f32.xlu0 %v1500_v24  ;;  %v1521_v25 = vsel %vm527_vm0, %v346_v17, 0.0  ;;  %v1518_v27 = vsel %vm527_vm0, %v345_v18, 0.0  ;;  %v348_v36 = vld [vmem:[%s11124_s0 + $0xa68] sm:$0xff]  ;;  %v354_v4 = vld [vmem:[%s11124_s0 + $0xa98] sm:$0xff] }
 0x28c   :  { %v8912_v54 = vpop.xlane.xlu1 %1300  ;;  %v8914_v55 = vpop.xlane.xlu0 %1297  ;;  %6581 = vmatpush3.msra.mxu1 %v2611_v13  ;;  %v353_v13 = vld [vmem:[%s11124_s0 + $0xa90] sm:$0xff]  ;;  %v1545_v17 = vsel %vm527_vm0, %v354_v4, 0.0 }
 0x28d   :  { %v4641_v2 = vsel %vm3453_vm14, %v4640_v50, %v4636_v48  ;;  %6582 = vmatprep.subr.mxu1 %v2626_v20  ;;  %v1527_v50 = vsel %vm527_vm0, %v348_v36, 0.0  ;;  %v1542_v18 = vsel %vm527_vm0, %v353_v13, 0.0  ;;  %v384_v20 = vld [vmem:[%s11124_s0 + $0xb88] sm:$0xff] }
 0x28e   :  { %v8932_v5 = vsel %vm3460_vm15, %v4645_v49, %v4641_v2  ;;  %6583 = vmatpush3.msra.mxu1 %v2610_v21  ;;  %v383_v21 = vld [vmem:[%s11124_s0 + $0xb80] sm:$0xff] }
 0x28f   :  { %11153 = vst [vmem:[#allocation19_spill] sm:$0xff] %v8932_v5  ;;  %1510 = vadd.xlane.f32.xlu1 %v1509_v56  ;;  %1507 = vadd.xlane.f32.xlu0 %v1506_v58  ;;  %v352_v56 = vld [vmem:[%s11124_s0 + $0xa88] sm:$0xff]  ;;  %v351_v58 = vld [vmem:[%s11124_s0 + $0xa80] sm:$0xff]  ;;  %v1632_v36 = vsel %vm527_vm0, %v383_v21, 0.0 }
 0x290   :  { %v8937_v10 = vpop.xlane.xlu1 %1306  ;;  %v1304_v11 = vpop.xlane.xlu0 %1303  ;;  %6584 = vmatprep.subr.mxu1 %v2625_v16  ;;  %v1539_v1 = vsel %vm527_vm0, %v352_v56, 0.0  ;;  %v1536_v2 = vsel %vm527_vm0, %v351_v58, 0.0  ;;  %v1584_v58 = vsel %vm527_vm0, %v367_v37, 0.0 }
 0x291   :  { %6585 = vmatpush3.msra.mxu1 %v2609_v38  ;;  %v355_v38 = vld [vmem:[%s11124_s0 + $0xaa0] sm:$0xff]  ;;  %v2323_v4 = vmul.f32 0.0625, %v8937_v10  ;;  %v356_v10 = vld [vmem:[%s11124_s0 + $0xaa8] sm:$0xff] }
 0x292   :  { %6586 = vmatprep.subr.mxu1 %v2624_v44  ;;  %v2321_v44 = vmul.f32 0.0625, %v8912_v54  ;;  %v368_v54 = vld [vmem:[%s11124_s0 + $0xb08] sm:$0xff] }
 0x293   :  { %1516 = vadd.xlane.f32.xlu1 %v1515_v12  ;;  %1513 = vadd.xlane.f32.xlu0 %v1512_v15 }
 0x294   :  { %v8956_v23 = vpop.xlane.xlu1 %1312  ;;  %v1310_v24 = vpop.xlane.xlu0 %1309  ;;  %6587 = vmatpush3.msra.mxu1 %v2608_v47  ;;  %v2320_v47 = vmul.f32 0.0625, %v8914_v55  ;;  %v4654_v55 = vrot.slane %v2321_v44, %v7156_v31  ;;  %v4664_v44 = vrot.slane %v2323_v4, %v7153_v30 }
 0x297   :  { %1522 = vadd.xlane.f32.xlu1 %v1521_v25  ;;  %1519 = vadd.xlane.f32.xlu0 %v1518_v27  ;;  %v1635_v27 = vsel %vm527_vm0, %v384_v20, 0.0 }
 0x298   :  { %v8975_v48 = vpop.xlane.xlu1 %1318  ;;  %v8977_v49 = vpop.xlane.xlu0 %1315 }
 0x29b   :  { %1528 = vadd.xlane.f32.xlu1 %v1527_v50  ;;  %1525 = vadd.xlane.f32.xlu0 %v1524_v52  ;;  %v2322_v50 = vmul.f32 0.0625, %v1304_v11  ;;  %v4650_v11 = vrot.slane %v2320_v47, %v7150_v28  ;;  %v2325_v47 = vmul.f32 0.0625, %v8956_v23 }
 0x29c   :  { %v8987_v59 = vpop.xlane.xlu1 %1324  ;;  %v8989_v0 = vpop.xlane.xlu0 %1321 }
 0x29d   :  { %v4659_v13 = vrot.slane %v2322_v50, %v7159_v32 }
 0x29f   :  { %1540 = vadd.xlane.f32.xlu1 %v1539_v1  ;;  %1537 = vadd.xlane.f32.xlu0 %v1536_v2  ;;  %v1548_v1 = vsel %vm527_vm0, %v355_v38, 0.0  ;;  %v385_v2 = vld [vmem:[%s11124_s0 + $0xb90] sm:$0xff] }
 0x2a0   :  { %v8999_v12 = vpop.xlane.xlu1 %1330  ;;  %v9001_v15 = vpop.xlane.xlu0 %1327  ;;  %v1638_v21 = vsel %vm527_vm0, %v385_v2, 0.0  ;;  %v369_v38 = vld [vmem:[%s11124_s0 + $0xb10] sm:$0xff] }
 0x2a3   :  { %1546 = vadd.xlane.f32.xlu1 %v1545_v17  ;;  %1543 = vadd.xlane.f32.xlu0 %v1542_v18  ;;  %v2324_v17 = vmul.f32 0.0625, %v1310_v24  ;;  %v4655_v24 = vsel %vm3362_vm1, %v4654_v55, %v4650_v11  ;;  %v1590_v55 = vsel %vm527_vm0, %v369_v38, 0.0  ;;  %v1551_v11 = vsel %vm527_vm0, %v356_v10, 0.0 }
 0x2a4   :  { %v9011_v16 = vpop.xlane.xlu1 %1336  ;;  %v9013_v25 = vpop.xlane.xlu0 %1333  ;;  %v4660_v50 = vsel %vm3369_vm2, %v4659_v13, %v4655_v24  ;;  %v357_v13 = vld [vmem:[%s11124_s0 + $0xab0] sm:$0xff]  ;;  %v2328_v38 = vmul.f32 0.0625, %v8989_v0  ;;  %v387_v0 = vld [vmem:[%s11124_s0 + $0xba0] sm:$0xff] }
 0x2a7   :  { %1636 = vadd.xlane.f32.xlu1 %v1635_v27  ;;  %1633 = vadd.xlane.f32.xlu0 %v1632_v36  ;;  %v1587_v27 = vsel %vm527_vm0, %v368_v54, 0.0 }
 0x2a8   :  { %v9025_v52 = vpop.xlane.xlu1 %1342  ;;  %v9027_v56 = vpop.xlane.xlu0 %1339 }
 0x2ab   :  { %1585 = vadd.xlane.f32.xlu1 %v1584_v58  ;;  %1549 = vadd.xlane.f32.xlu0 %v1548_v1  ;;  %v4669_v58 = vrot.slane %v2324_v17, %v7173_v43  ;;  %v2326_v1 = vmul.f32 0.0625, %v8977_v49  ;;  %v386_v49 = vld [vmem:[%s11124_s0 + $0xb98] sm:$0xff]  ;;  %v4674_v17 = vrot.slane %v2325_v47, %v7170_v42 }
 0x2ac   :  { %v1349_v18 = vpop.xlane.xlu1 %1348  ;;  %v1346_v20 = vpop.xlane.xlu0 %1345 }
 0x2ad   :  { %v2337_v36 = vmul.f32 0.0625, %v1349_v18  ;;  %v2336_v37 = vmul.f32 0.0625, %v1346_v20 }
 0x2af   :  { %1639 = vadd.xlane.f32.xlu1 %v1638_v21  ;;  %1588 = vadd.xlane.f32.xlu0 %v1587_v27  ;;  %v4733_v2 = vrot.slane %v2337_v36, %v7156_v31  ;;  %v4729_v54 = vrot.slane %v2336_v37, %v7150_v28  ;;  %v4665_v21 = vsel %vm3376_vm3, %v4664_v44, %v4660_v50  ;;  %v2327_v27 = vmul.f32 0.0625, %v8975_v48 }
 0x2b0   :  { %v1355_v18 = vpop.xlane.xlu1 %1354  ;;  %v1352_v20 = vpop.xlane.xlu0 %1351  ;;  %v4670_v36 = vsel %vm3383_vm4, %v4669_v58, %v4665_v21  ;;  %v4679_v37 = vrot.slane %v2326_v1, %v7195_v61  ;;  %v1554_v44 = vsel %vm527_vm0, %v357_v13, 0.0  ;;  %v1641_v48 = vsel %vm527_vm0, %v386_v49, 0.0  ;;  %v371_v21 = vld [vmem:[%s11124_s0 + $0xb20] sm:$0xff] }
 0x2b1   :  { %v2339_v4 = vmul.f32 0.0625, %v1355_v18  ;;  %v2338_v23 = vmul.f32 0.0625, %v1352_v20  ;;  %v4734_v24 = vsel %vm3362_vm1, %v4733_v2, %v4729_v54  ;;  %v370_v2 = vld [vmem:[%s11124_s0 + $0xb18] sm:$0xff]  ;;  %v4684_v54 = vrot.slane %v2327_v27, %v7192_v60 }
 0x2b2   :  { %v2330_v13 = vmul.f32 0.0625, %v9001_v15 }
 0x2b3   :  { %v4738_v10 = vrot.slane %v2338_v23, %v7159_v32  ;;  %1591 = vadd.xlane.f32.xlu1 %v1590_v55  ;;  %1552 = vadd.xlane.f32.xlu0 %v1551_v11  ;;  %v4743_v18 = vrot.slane %v2339_v4, %v7153_v30  ;;  %v4675_v55 = vsel %vm3390_vm5, %v4674_v17, %v4670_v36  ;;  %v2329_v11 = vmul.f32 0.0625, %v8987_v59 }
 0x2b4   :  { %v1361_v20 = vpop.xlane.xlu1 %1360  ;;  %v1358_v47 = vpop.xlane.xlu0 %1357  ;;  %v4680_v4 = vsel %vm11136_vm6, %v4679_v37, %v4675_v55  ;;  %v4689_v23 = vrot.slane %v2328_v38, %v7219_v19  ;;  %v1644_v37 = vsel %vm527_vm0, %v387_v0, 0.0  ;;  %v1593_v38 = vsel %vm527_vm0, %v370_v2, 0.0  ;;  %v359_v0 = vld [vmem:[%s11124_s0 + $0xac0] sm:$0xff] }
 0x2b5   :  { %v4739_v50 = vsel %vm3369_vm2, %v4738_v10, %v4734_v24  ;;  %v2341_v58 = vmul.f32 0.0625, %v1361_v20  ;;  %v2340_v1 = vmul.f32 0.0625, %v1358_v47  ;;  %v358_v20 = vld [vmem:[%s11124_s0 + $0xab8] sm:$0xff]  ;;  %v4694_v47 = vrot.slane %v2329_v11, %v7213_v14 }
 0x2b6   :  { %v4744_v17 = vsel %vm3376_vm3, %v4743_v18, %v4739_v50  ;;  %v1596_v18 = vsel %vm527_vm0, %v371_v21, 0.0  ;;  %v2331_v50 = vmul.f32 0.0625, %v8999_v12  ;;  %v2332_v2 = vmul.f32 0.0625, %v9013_v25 }
 0x2b7   :  { %v4748_v49 = vrot.slane %v2340_v1, %v7173_v43  ;;  %1555 = vadd.xlane.f32.xlu1 %v1554_v44  ;;  %1642 = vadd.xlane.f32.xlu0 %v1641_v48  ;;  %v4753_v27 = vrot.slane %v2341_v58, %v7170_v42  ;;  %v4685_v44 = vsel %vm3404_vm7, %v4684_v54, %v4680_v4  ;;  %v1557_v12 = vsel %vm527_vm0, %v358_v20, 0.0 }
 0x2b8   :  { %v1367_v36 = vpop.xlane.xlu1 %1366  ;;  %v1364_v59 = vpop.xlane.xlu0 %1363  ;;  %v4690_v48 = vsel %vm11129_vm8, %v4689_v23, %v4685_v44  ;;  %v4699_v58 = vrot.slane %v2330_v13, %v7239_v39  ;;  %v388_v23 = vld [vmem:[%s11124_s0 + $0xba8] sm:$0xff]  ;;  %v1560_v25 = vsel %vm527_vm0, %v359_v0, 0.0  ;;  %v389_v44 = vld [vmem:[%s11124_s0 + $0xbb0] sm:$0xff] }
 0x2b9   :  { %v4749_v15 = vsel %vm3383_vm4, %v4748_v49, %v4744_v17  ;;  %v2343_v10 = vmul.f32 0.0625, %v1367_v36  ;;  %v2342_v24 = vmul.f32 0.0625, %v1364_v59  ;;  %v4695_v17 = vsel %vm3418_vm9, %v4694_v47, %v4690_v48 }
 0x2ba   :  { %v4754_v55 = vsel %vm3390_vm5, %v4753_v27, %v4749_v15  ;;  %v4704_v36 = vrot.slane %v2331_v50, %v7233_v35  ;;  %v4700_v27 = vsel %vm3425_vm10, %v4699_v58, %v4695_v17  ;;  %v4709_v15 = vrot.slane %v2332_v2, %v7259_v57 }
 0x2bb   :  { %v4758_v1 = vrot.slane %v2342_v24, %v7195_v61  ;;  %1645 = vadd.xlane.f32.xlu1 %v1644_v37  ;;  %1594 = vadd.xlane.f32.xlu0 %v1593_v38  ;;  %v4763_v54 = vrot.slane %v2343_v10, %v7192_v60  ;;  %v1647_v37 = vsel %vm527_vm0, %v388_v23, 0.0  ;;  %v2333_v38 = vmul.f32 0.0625, %v9011_v16 }
 0x2bc   :  { %v1373_v11 = vpop.xlane.xlu1 %1372  ;;  %v1370_v4 = vpop.xlane.xlu0 %1369  ;;  %v2334_v58 = vmul.f32 0.0625, %v9027_v56  ;;  %v1650_v2 = vsel %vm527_vm0, %v389_v44, 0.0 }
 0x2bd   :  { %v4759_v13 = vsel %vm11136_vm6, %v4758_v1, %v4754_v55  ;;  %v2345_v49 = vmul.f32 0.0625, %v1373_v11  ;;  %v2344_v21 = vmul.f32 0.0625, %v1370_v4  ;;  %v4705_v1 = vsel %vm3432_vm11, %v4704_v36, %v4700_v27  ;;  %v360_v36 = vld [vmem:[%s11124_s0 + $0xac8] sm:$0xff] }
 0x2be   :  { %v4764_v24 = vsel %vm3404_vm7, %v4763_v54, %v4759_v13  ;;  %v4714_v55 = vrot.slane %v2333_v38, %v7253_v53  ;;  %v4710_v11 = vsel %vm11128_vm12, %v4709_v15, %v4705_v1  ;;  %v373_v13 = vld [vmem:[%s11124_s0 + $0xb30] sm:$0xff]  ;;  %v4719_v27 = vrot.slane %v2334_v58, %v7273_v6 }
 0x2bf   :  { %v4768_v59 = vrot.slane %v2344_v21, %v7219_v19  ;;  %1597 = vadd.xlane.f32.xlu1 %v1596_v18  ;;  %1558 = vadd.xlane.f32.xlu0 %v1557_v12  ;;  %v4773_v10 = vrot.slane %v2345_v49, %v7213_v14  ;;  %v372_v18 = vld [vmem:[%s11124_s0 + $0xb28] sm:$0xff]  ;;  %v2335_v49 = vmul.f32 0.0625, %v9025_v52 }
 0x2c0   :  { %v1379_v20 = vpop.xlane.xlu1 %1378  ;;  %v1376_v47 = vpop.xlane.xlu0 %1375  ;;  %v1599_v54 = vsel %vm527_vm0, %v372_v18, 0.0 }
 0x2c1   :  { %v4769_v48 = vsel %vm11129_vm8, %v4768_v59, %v4764_v24  ;;  %v2347_v50 = vmul.f32 0.0625, %v1379_v20  ;;  %v2346_v16 = vmul.f32 0.0625, %v1376_v47  ;;  %v1563_v24 = vsel %vm527_vm0, %v360_v36, 0.0 }
 0x2c2   :  { %v4774_v12 = vsel %vm3418_vm9, %v4773_v10, %v4769_v48  ;;  %v4715_v20 = vsel %vm3446_vm13, %v4714_v55, %v4710_v11  ;;  %v4724_v47 = vrot.slane %v2335_v49, %v7278_v9 }
 0x2c3   :  { %v4778_v0 = vrot.slane %v2346_v16, %v7239_v39  ;;  %1561 = vadd.xlane.f32.xlu1 %v1560_v25  ;;  %1648 = vadd.xlane.f32.xlu0 %v1647_v37  ;;  %v4783_v4 = vrot.slane %v2347_v50, %v7233_v35  ;;  %v1602_v37 = vsel %vm527_vm0, %v373_v13, 0.0  ;;  %v361_v50 = vld [vmem:[%s11124_s0 + $0xad0] sm:$0xff]  ;;  %v390_v16 = vld [vmem:[%s11124_s0 + $0xbb8] sm:$0xff]  ;;  %v4720_v58 = vsel %vm3453_vm14, %v4719_v27, %v4715_v20 }
 0x2c4   :  { %v1385_v23 = vpop.xlane.xlu1 %1384  ;;  %v1382_v56 = vpop.xlane.xlu0 %1381  ;;  %v1566_v55 = vsel %vm527_vm0, %v361_v50, 0.0  ;;  %v1653_v11 = vsel %vm527_vm0, %v390_v16, 0.0  ;;  %v374_v13 = vld [vmem:[%s11124_s0 + $0xb38] sm:$0xff]  ;;  %v376_v50 = vld [vmem:[%s11124_s0 + $0xb48] sm:$0xff] }
 0x2c5   :  { %v4779_v21 = vsel %vm3425_vm10, %v4778_v0, %v4774_v12  ;;  %v2349_v17 = vmul.f32 0.0625, %v1385_v23  ;;  %v2348_v25 = vmul.f32 0.0625, %v1382_v56  ;;  %v4725_v23 = vsel %vm3460_vm15, %v4724_v47, %v4720_v58  ;;  %v391_v56 = vld [vmem:[%s11124_s0 + $0xbc0] sm:$0xff] }
 0x2c6   :  { %v4784_v52 = vsel %vm3432_vm11, %v4783_v4, %v4779_v21  ;;  %v1656_v27 = vsel %vm527_vm0, %v391_v56, 0.0 }
 0x2c7   :  { %v4788_v59 = vrot.slane %v2348_v25, %v7259_v57  ;;  %1651 = vadd.xlane.f32.xlu1 %v1650_v2  ;;  %1600 = vadd.xlane.f32.xlu0 %v1599_v54  ;;  %v4793_v38 = vrot.slane %v2349_v17, %v7253_v53 }
 0x2c8   :  { %v1391_v15 = vpop.xlane.xlu1 %1390  ;;  %v1388_v10 = vpop.xlane.xlu0 %1387 }
 0x2c9   :  { %v4789_v44 = vsel %vm11128_vm12, %v4788_v59, %v4784_v52  ;;  %v2351_v18 = vmul.f32 0.0625, %v1391_v15  ;;  %v2350_v48 = vmul.f32 0.0625, %v1388_v10  ;;  %vm5911_vm12 = vcmask 1041409   ;;  %v363_v10 = vld [vmem:[%s11124_s0 + $0xae0] sm:$0xff] }
 0x2ca   :  { %v4794_v4 = vsel %vm3446_vm13, %v4793_v38, %v4789_v44  ;;  %v5912_v36 = vsel %vm5911_vm12, %v4725_v23, %v7302_v40  ;;  %v1605_v59 = vsel %vm527_vm0, %v374_v13, 0.0  ;;  %v1572_v44 = vsel %vm527_vm0, %v363_v10, 0.0  ;;  %v365_v13 = vld [vmem:[%s11124_s0 + $0xaf0] sm:$0xff]  ;;  %v2671_v10 = vld [vmem:[%s11125_s1 + $0x2f8] sm:$0xff] }
 0x2cb   :  { %v4803_v1 = vrot.slane %v2351_v18, %v7278_v9  ;;  %v4798_v0 = vrot.slane %v2350_v48, %v7273_v6  ;;  %1603 = vadd.xlane.f32.xlu1 %v1602_v37  ;;  %1564 = vadd.xlane.f32.xlu0 %v1563_v24  ;;  %v375_v37 = vld [vmem:[%s11124_s0 + $0xb40] sm:$0xff]  ;;  %v392_v24 = vld [vmem:[%s11124_s0 + $0xbc8] sm:$0xff]  ;;  %v393_v48 = vld [vmem:[%s11124_s0 + $0xbd0] sm:$0xff] }
 0x2cc   :  { %v1397_v2 = vpop.xlane.xlu1 %1396  ;;  %v1394_v54 = vpop.xlane.xlu0 %1393  ;;  %v1608_v40 = vsel %vm527_vm0, %v375_v37, 0.0  ;;  %v1659_v18 = vsel %vm527_vm0, %v392_v24, 0.0  ;;  %v395_v37 = vld [vmem:[%s11124_s0 + $0xbe0] sm:$0xff]  ;;  %6591 = vmatprep.subr.mxu0 %v2671_v10  ;;  %v396_v10 = vld [vmem:[%s11124_s0 + $0xbe8] sm:$0xff] }
 0x2cd   :  { %v4799_v12 = vsel %vm3453_vm14, %v4798_v0, %v4794_v4  ;;  %v1611_v0 = vsel %vm527_vm0, %v376_v50, 0.0  ;;  %v1668_v50 = vsel %vm527_vm0, %v395_v37, 0.0 }
 0x2ce   :  { %v4804_v49 = vsel %vm3460_vm15, %v4803_v1, %v4799_v12  ;;  %v1662_v1 = vsel %vm527_vm0, %v393_v48, 0.0 }
 0x2cf   :  { %1567 = vadd.xlane.f32.xlu1 %v1566_v55  ;;  %1654 = vadd.xlane.f32.xlu0 %v1653_v11  ;;  %v5913_v21 = vsel %vm5911_vm12, %v4804_v49, %v7399_v41  ;;  %v362_v41 = vld [vmem:[%s11124_s0 + $0xad8] sm:$0xff]  ;;  %v377_v55 = vld [vmem:[%s11124_s0 + $0xb50] sm:$0xff]  ;;  %v364_v11 = vld [vmem:[%s11124_s0 + $0xae8] sm:$0xff] }
 0x2d0   :  { %v9185_v17 = vpop.xlane.xlu1 %1402  ;;  %6008 = vmatprep.mubr.f32.mxu0 %v5913_v21  ;;  %v1400_v25 = vpop.xlane.xlu0 %1399  ;;  %v1569_v15 = vsel %vm527_vm0, %v362_v41, 0.0  ;;  %v1614_v23 = vsel %vm527_vm0, %v377_v55, 0.0  ;;  %v1575_v56 = vsel %vm527_vm0, %v364_v11, 0.0  ;;  %v394_v49 = vld [vmem:[%s11124_s0 + $0xbd8] sm:$0xff] }
 0x2d1   :  { %6009 = vmatmul.mubr.f32.vlgmr.msra.gmra.mxu0 %v5912_v36  ;;  %v378_v41 = vld [vmem:[%s11124_s0 + $0xb58] sm:$0xff]  ;;  %v2354_v24 = vmul.f32 0.0625, %v1400_v25 }
 0x2d2   :  { %v366_v25 = vld [vmem:[%s11124_s0 + $0xaf8] sm:$0xff] }
 0x2d3   :  { %1657 = vadd.xlane.f32.xlu1 %v1656_v27  ;;  %1606 = vadd.xlane.f32.xlu0 %v1605_v59  ;;  %v1578_v27 = vsel %vm527_vm0, %v365_v13, 0.0  ;;  %v1665_v59 = vsel %vm527_vm0, %v394_v49, 0.0  ;;  %v4817_v13 = vrot.slane %v2354_v24, %v7159_v32  ;;  %v2668_v24 = vld [vmem:[%s11125_s1 + $0x2e0] sm:$0xff] }
 0x2d4   :  { %v9197_v38 = vpop.xlane.xlu1 %1408  ;;  %v1406_v52 = vpop.xlane.xlu0 %1405 }
 0x2d5   :  { %v2356_v49 = vmul.f32 0.0625, %v1406_v52  ;;  %v379_v52 = vld [vmem:[%s11124_s0 + $0xb60] sm:$0xff] }
 0x2d7   :  { %1609 = vadd.xlane.f32.xlu1 %v1608_v40  ;;  %1570 = vadd.xlane.f32.xlu0 %v1569_v15  ;;  %v2353_v40 = vmul.f32 0.0625, %v1397_v2  ;;  %v2352_v15 = vmul.f32 0.0625, %v1394_v54  ;;  %v1617_v2 = vsel %vm527_vm0, %v378_v41, 0.0  ;;  %v2670_v54 = vld [vmem:[%s11125_s1 + $0x2f0] sm:$0xff]  ;;  %v1581_v41 = vsel %vm527_vm0, %v366_v25, 0.0 }
 0x2d8   :  { %v9207_v20 = vpop.xlane.xlu1 %1414  ;;  %v9209_v47 = vpop.xlane.xlu0 %1411 }
 0x2d9   :  { %v4812_v55 = vrot.slane %v2353_v40, %v7156_v31  ;;  %v4808_v11 = vrot.slane %v2352_v15, %v7150_v28 }
 0x2db   :  { %1573 = vadd.xlane.f32.xlu1 %v1572_v44  ;;  %1660 = vadd.xlane.f32.xlu0 %v1659_v18  ;;  %v2655_v44 = vld [vmem:[%s11125_s1 + $0x278] sm:$0xff] }
 0x2dc   :  { %v9219_v16 = vpop.xlane.xlu1 %1420  ;;  %v9221_v58 = vpop.xlane.xlu0 %1417  ;;  %6592 = vmatpush3.msra.mxu0 %v2655_v44  ;;  %v4813_v44 = vsel %vm3362_vm1, %v4812_v55, %v4808_v11  ;;  %v2667_v55 = vld [vmem:[%s11125_s1 + $0x2d8] sm:$0xff] }
 0x2dd   :  { %6593 = vmatprep.subr.mxu0 %v2670_v54  ;;  %v2652_v54 = vld [vmem:[%s11125_s1 + $0x260] sm:$0xff]  ;;  %v4818_v25 = vsel %vm3369_vm2, %v4817_v13, %v4813_v44 }
 0x2df   :  { %1663 = vadd.xlane.f32.xlu1 %v1662_v1  ;;  %1612 = vadd.xlane.f32.xlu0 %v1611_v0  ;;  %v349_v1 = vld [vmem:[%s11124_s0 + $0xa70] sm:$0xff] }
 0x2e0   :  { %v9231_v4 = vpop.xlane.xlu1 %1426  ;;  %v9233_v12 = vpop.xlane.xlu0 %1423  ;;  %v2654_v0 = vld [vmem:[%s11125_s1 + $0x270] sm:$0xff] }
 0x2e1   :  { %6594 = vmatpush3.msra.mxu0 %v2654_v0  ;;  %v2358_v0 = vmul.f32 0.0625, %v9209_v47  ;;  %v1620_v47 = vsel %vm527_vm0, %v379_v52, 0.0  ;;  %v2666_v52 = vld [vmem:[%s11125_s1 + $0x2d0] sm:$0xff] }
 0x2e3   :  { %1615 = vadd.xlane.f32.xlu1 %v1614_v23  ;;  %1576 = vadd.xlane.f32.xlu0 %v1575_v56  ;;  %v2355_v23 = vmul.f32 0.0625, %v9185_v17  ;;  %v2669_v56 = vld [vmem:[%s11125_s1 + $0x2e8] sm:$0xff]  ;;  %v1530_v17 = vsel %vm527_vm0, %v349_v1, 0.0  ;;  %v4827_v1 = vrot.slane %v2356_v49, %v7173_v43  ;;  %v1671_v49 = vsel %vm527_vm0, %v396_v10, 0.0 }
 0x2e4   :  { %v9243_v21 = vpop.xlane.xlu1 %1432  ;;  %v9245_v36 = vpop.xlane.xlu0 %1429  ;;  %6595 = vmatprep.subr.mxu0 %v2669_v56  ;;  %v2359_v10 = vmul.f32 0.0625, %v9207_v20  ;;  %v4837_v44 = vrot.slane %v2358_v0, %v7195_v61 }
 0x2e7   :  { %1579 = vadd.xlane.f32.xlu1 %v1578_v27  ;;  %1666 = vadd.xlane.f32.xlu0 %v1665_v59  ;;  %v2653_v27 = vld [vmem:[%s11125_s1 + $0x268] sm:$0xff] }
 0x2e8   :  { %v9261_v18 = vpop.xlane.xlu1 %1438  ;;  %v9263_v48 = vpop.xlane.xlu0 %1435  ;;  %6596 = vmatpush3.msra.mxu0 %v2653_v27 }
 0x2e9   :  { %6597 = vmatprep.subr.mxu0 %v2668_v24 }
 0x2ea   :  { %6598 = vmatpush3.msra.mxu0 %v2652_v54  ;;  %v2360_v54 = vmul.f32 0.0625, %v9221_v58 }
 0x2eb   :  { %1669 = vadd.xlane.f32.xlu1 %v1668_v50  ;;  %1618 = vadd.xlane.f32.xlu0 %v1617_v2  ;;  %v4822_v50 = vrot.slane %v2355_v23, %v7153_v30  ;;  %v2357_v2 = vmul.f32 0.0625, %v9197_v38  ;;  %v2703_v38 = vld [vmem:[%s11125_s1 + $0x3f8] sm:$0xff] }
 0x2ec   :  { %v1445_v59 = vpop.xlane.xlu1 %1444  ;;  %v1442_v37 = vpop.xlane.xlu0 %1441  ;;  %6626 = vmatprep.subr.mxu1 %v2703_v38  ;;  %6599 = vmatprep.subr.mxu0 %v2667_v55 }
 0x2ed   :  { %v2369_v40 = vmul.f32 0.0625, %v1445_v59  ;;  %v2368_v15 = vmul.f32 0.0625, %v1442_v37  ;;  %v380_v37 = vld [vmem:[%s11124_s0 + $0xb68] sm:$0xff] }
 0x2ef   :  { %1582 = vadd.xlane.f32.xlu1 %v1581_v41  ;;  %1531 = vadd.xlane.f32.xlu0 %v1530_v17  ;;  %v4891_v11 = vrot.slane %v2369_v40, %v7156_v31  ;;  %v4887_v23 = vrot.slane %v2368_v15, %v7150_v28  ;;  %v350_v41 = vld [vmem:[%s11124_s0 + $0xa78] sm:$0xff]  ;;  %v4832_v40 = vrot.slane %v2357_v2, %v7170_v42 }
 0x2f0   :  { %v1451_v56 = vpop.xlane.xlu1 %1450  ;;  %v1448_v13 = vpop.xlane.xlu0 %1447  ;;  %v2651_v17 = vld [vmem:[%s11125_s1 + $0x258] sm:$0xff]  ;;  %v4823_v15 = vsel %vm3376_vm3, %v4822_v50, %v4818_v25  ;;  %v2650_v50 = vld [vmem:[%s11125_s1 + $0x250] sm:$0xff]  ;;  %v1533_v0 = vsel %vm527_vm0, %v350_v41, 0.0 }
 0x2f1   :  { %v2371_v27 = vmul.f32 0.0625, %v1451_v56  ;;  %v2370_v59 = vmul.f32 0.0625, %v1448_v13  ;;  %v4828_v24 = vsel %vm3383_vm4, %v4827_v1, %v4823_v15  ;;  %v4892_v20 = vsel %vm3362_vm1, %v4891_v11, %v4887_v23  ;;  %6600 = vmatpush3.msra.mxu0 %v2651_v17  ;;  %v397_v11 = vld [vmem:[%s11124_s0 + $0xbf0] sm:$0xff]  ;;  %v2665_v23 = vld [vmem:[%s11125_s1 + $0x2c8] sm:$0xff] }
 0x2f2   :  { %v1623_v1 = vsel %vm527_vm0, %v380_v37, 0.0  ;;  %6601 = vmatprep.subr.mxu0 %v2666_v52  ;;  %v2649_v37 = vld [vmem:[%s11125_s1 + $0x248] sm:$0xff]  ;;  %v4847_v17 = vrot.slane %v2360_v54, %v7219_v19  ;;  %v2362_v15 = vmul.f32 0.0625, %v9233_v12 }
 0x2f3   :  { %v4896_v38 = vrot.slane %v2370_v59, %v7159_v32  ;;  %1672 = vadd.xlane.f32.xlu1 %v1671_v49  ;;  %1621 = vadd.xlane.f32.xlu0 %v1620_v47  ;;  %v4901_v2 = vrot.slane %v2371_v27, %v7153_v30  ;;  %v381_v49 = vld [vmem:[%s11124_s0 + $0xb70] sm:$0xff]  ;;  %v4842_v47 = vrot.slane %v2359_v10, %v7192_v60  ;;  %v2361_v59 = vmul.f32 0.0625, %v9219_v16  ;;  %v2664_v16 = vld [vmem:[%s11125_s1 + $0x2c0] sm:$0xff] }
 0x2f4   :  { %v1457_v25 = vpop.xlane.xlu1 %1456  ;;  %v1454_v55 = vpop.xlane.xlu0 %1453  ;;  %v4833_v27 = vsel %vm3390_vm5, %v4832_v40, %v4828_v24  ;;  %6602 = vmatpush3.msra.mxu0 %v2650_v50  ;;  %v382_v40 = vld [vmem:[%s11124_s0 + $0xb78] sm:$0xff]  ;;  %v1626_v12 = vsel %vm527_vm0, %v381_v49, 0.0  ;;  %v2363_v49 = vmul.f32 0.0625, %v9231_v4 }
 0x2f5   :  { %v4897_v58 = vsel %vm3369_vm2, %v4896_v38, %v4892_v20  ;;  %v2373_v56 = vmul.f32 0.0625, %v1457_v25  ;;  %v2372_v13 = vmul.f32 0.0625, %v1454_v55  ;;  %v4838_v41 = vsel %vm11136_vm6, %v4837_v44, %v4833_v27  ;;  %6603 = vmatprep.subr.mxu0 %v2665_v23  ;;  %v398_v55 = vld [vmem:[%s11124_s0 + $0xbf8] sm:$0xff] }
 0x2f6   :  { %v4902_v24 = vsel %vm3376_vm3, %v4901_v2, %v4897_v58  ;;  %v1674_v38 = vsel %vm527_vm0, %v397_v11, 0.0  ;;  %6604 = vmatpush3.msra.mxu0 %v2649_v37  ;;  %v2648_v2 = vld [vmem:[%s11125_s1 + $0x240] sm:$0xff]  ;;  %v1629_v58 = vsel %vm527_vm0, %v382_v40, 0.0  ;;  %v4857_v11 = vrot.slane %v2362_v15, %v7239_v39  ;;  %v2647_v27 = vld [vmem:[%s11125_s1 + $0x238] sm:$0xff] }
 0x2f7   :  { %v4906_v52 = vrot.slane %v2372_v13, %v7173_v43  ;;  %1624 = vadd.xlane.f32.xlu1 %v1623_v1  ;;  %1534 = vadd.xlane.f32.xlu0 %v1533_v0  ;;  %v4911_v10 = vrot.slane %v2373_v56, %v7170_v42  ;;  %v4852_v1 = vrot.slane %v2361_v59, %v7213_v14  ;;  %v2663_v56 = vld [vmem:[%s11125_s1 + $0x2b8] sm:$0xff]  ;;  %v2364_v59 = vmul.f32 0.0625, %v9245_v36  ;;  %v2662_v36 = vld [vmem:[%s11125_s1 + $0x2b0] sm:$0xff] }
 0x2f8   :  { %v1463_v44 = vpop.xlane.xlu1 %1462  ;;  %v1460_v54 = vpop.xlane.xlu0 %1459  ;;  %v4843_v0 = vsel %vm3404_vm7, %v4842_v47, %v4838_v41  ;;  %6605 = vmatprep.subr.mxu0 %v2664_v16  ;;  %v416_v47 = vld [vmem:[%s11124_s0 + $0xc88] sm:$0xff]  ;;  %v1677_v15 = vsel %vm527_vm0, %v398_v55, 0.0  ;;  %v2365_v55 = vmul.f32 0.0625, %v9243_v21 }
 0x2f9   :  { %v4907_v50 = vsel %vm3383_vm4, %v4906_v52, %v4902_v24  ;;  %v2375_v20 = vmul.f32 0.0625, %v1463_v44  ;;  %v2374_v25 = vmul.f32 0.0625, %v1460_v54  ;;  %v4848_v13 = vsel %vm11129_vm8, %v4847_v17, %v4843_v0  ;;  %v415_v52 = vld [vmem:[%s11124_s0 + $0xc80] sm:$0xff]  ;;  %6606 = vmatpush3.msra.mxu0 %v2648_v2  ;;  %v2646_v54 = vld [vmem:[%s11125_s1 + $0x230] sm:$0xff] }
 0x2fa   :  { %v4912_v4 = vsel %vm3390_vm5, %v4911_v10, %v4907_v50  ;;  %6607 = vmatprep.subr.mxu0 %v2663_v56  ;;  %v4853_v10 = vsel %vm3418_vm9, %v4852_v1, %v4848_v13  ;;  %v1731_v44 = vsel %vm527_vm0, %v416_v47, 0.0  ;;  %v4867_v2 = vrot.slane %v2364_v59, %v7259_v57  ;;  %v2645_v47 = vld [vmem:[%s11125_s1 + $0x228] sm:$0xff]  ;;  %v2660_v59 = vld [vmem:[%s11125_s1 + $0x2a0] sm:$0xff] }
 0x2fb   :  { %v4916_v23 = vrot.slane %v2374_v25, %v7195_v61  ;;  %1627 = vadd.xlane.f32.xlu1 %v1626_v12  ;;  %1675 = vadd.xlane.f32.xlu0 %v1674_v38  ;;  %v4921_v37 = vrot.slane %v2375_v20, %v7192_v60  ;;  %v4862_v12 = vrot.slane %v2363_v49, %v7233_v35  ;;  %v1728_v20 = vsel %vm527_vm0, %v415_v52, 0.0  ;;  %v2661_v25 = vld [vmem:[%s11125_s1 + $0x2a8] sm:$0xff]  ;;  %v399_v49 = vld [vmem:[%s11124_s0 + $0xc00] sm:$0xff] }
 0x2fc   :  { %v1469_v41 = vpop.xlane.xlu1 %1468  ;;  %v1466_v17 = vpop.xlane.xlu0 %1465  ;;  %6608 = vmatpush3.msra.mxu0 %v2647_v27  ;;  %v4858_v38 = vsel %vm3425_vm10, %v4857_v11, %v4853_v10  ;;  %v2366_v27 = vmul.f32 0.0625, %v9263_v48  ;;  %v4872_v48 = vrot.slane %v2365_v55, %v7253_v53  ;;  %v401_v10 = vld [vmem:[%s11124_s0 + $0xc10] sm:$0xff] }
 0x2fd   :  { %v4917_v40 = vsel %vm11136_vm6, %v4916_v23, %v4912_v4  ;;  %v2377_v16 = vmul.f32 0.0625, %v1469_v41  ;;  %v2376_v24 = vmul.f32 0.0625, %v1466_v17  ;;  %6609 = vmatprep.subr.mxu0 %v2662_v36  ;;  %v1680_v17 = vsel %vm527_vm0, %v399_v49, 0.0 }
 0x2fe   :  { %v4922_v0 = vsel %vm3404_vm7, %v4921_v37, %v4917_v40  ;;  %6610 = vmatpush3.msra.mxu0 %v2646_v54  ;;  %v4863_v37 = vsel %vm3432_vm11, %v4862_v12, %v4858_v38 }
 0x2ff   :  { %v4926_v50 = vrot.slane %v2376_v24, %v7219_v19  ;;  %1630 = vadd.xlane.f32.xlu1 %v1629_v58  ;;  %1678 = vadd.xlane.f32.xlu0 %v1677_v15  ;;  %v4931_v1 = vrot.slane %v2377_v16, %v7213_v14  ;;  %v400_v58 = vld [vmem:[%s11124_s0 + $0xc08] sm:$0xff]  ;;  %v2644_v15 = vld [vmem:[%s11125_s1 + $0x220] sm:$0xff] }
 0x300   :  { %v1475_v56 = vpop.xlane.xlu1 %1474  ;;  %v1472_v13 = vpop.xlane.xlu0 %1471  ;;  %6611 = vmatprep.subr.mxu0 %v2661_v25  ;;  %v1683_v41 = vsel %vm527_vm0, %v400_v58, 0.0  ;;  %v4877_v25 = vrot.slane %v2366_v27, %v7273_v6 }
 0x301   :  { %v4927_v11 = vsel %vm11129_vm8, %v4926_v50, %v4922_v0  ;;  %v2379_v21 = vmul.f32 0.0625, %v1475_v56  ;;  %v2378_v23 = vmul.f32 0.0625, %v1472_v13  ;;  %vm11154_vm8 = vcmask 851712   ;;  %6612 = vmatpush3.msra.mxu0 %v2645_v47  ;;  %v417_v50 = vld [vmem:[%s11124_s0 + $0xc90] sm:$0xff] }
 0x302   :  { %v4868_v52 = vsel %vm11154_vm8, %v4867_v2, %v4863_v37  ;;  %v4932_v16 = vsel %vm3418_vm9, %v4931_v1, %v4927_v11  ;;  %6613 = vmatprep.subr.mxu0 %v2660_v59  ;;  %v1686_v2 = vsel %vm527_vm0, %v401_v10, 0.0  ;;  %v2658_v1 = vld [vmem:[%s11125_s1 + $0x290] sm:$0xff]  ;;  %v1734_v49 = vsel %vm527_vm0, %v417_v50, 0.0  ;;  %v447_v59 = vld [vmem:[%s11124_s0 + $0xd80] sm:$0xff]  ;;  %v418_v37 = vld [vmem:[%s11124_s0 + $0xc98] sm:$0xff] }
 0x303   :  { %v4936_v4 = vrot.slane %v2378_v23, %v7239_v39  ;;  %1732 = vadd.xlane.f32.xlu1 %v1731_v44  ;;  %1729 = vadd.xlane.f32.xlu0 %v1728_v20  ;;  %v4941_v40 = vrot.slane %v2379_v21, %v7233_v35  ;;  %v2367_v44 = vmul.f32 0.0625, %v9261_v18  ;;  %v2659_v20 = vld [vmem:[%s11125_s1 + $0x298] sm:$0xff]  ;;  %v4873_v11 = vsel %vm3446_vm13, %v4872_v48, %v4868_v52  ;;  %v2641_v52 = vld [vmem:[%s11125_s1 + $0x208] sm:$0xff] }
 0x304   :  { %v1481_v24 = vpop.xlane.xlu1 %1480  ;;  %v1478_v36 = vpop.xlane.xlu0 %1477  ;;  %6614 = vmatpush3.msra.mxu0 %v2644_v15  ;;  %v2643_v18 = vld [vmem:[%s11125_s1 + $0x218] sm:$0xff] }
 0x305   :  { %v4937_v54 = vsel %vm3425_vm10, %v4936_v4, %v4932_v16  ;;  %v2381_v12 = vmul.f32 0.0625, %v1481_v24  ;;  %v2380_v38 = vmul.f32 0.0625, %v1478_v36  ;;  %6615 = vmatprep.subr.mxu0 %v2659_v20  ;;  %v4882_v21 = vrot.slane %v2367_v44, %v7278_v9  ;;  %v2642_v4 = vld [vmem:[%s11125_s1 + $0x210] sm:$0xff]  ;;  %v402_v50 = vld [vmem:[%s11124_s0 + $0xc18] sm:$0xff]  ;;  %v448_v20 = vld [vmem:[%s11124_s0 + $0xd88] sm:$0xff] }
 0x306   :  { %v4942_v56 = vsel %vm3432_vm11, %v4941_v40, %v4937_v54  ;;  %6616 = vmatpush3.msra.mxu0 %v2643_v18  ;;  %v1824_v24 = vsel %vm527_vm0, %v447_v59, 0.0  ;;  %v1737_v36 = vsel %vm527_vm0, %v418_v37, 0.0  ;;  %v419_v59 = vld [vmem:[%s11124_s0 + $0xca0] sm:$0xff]  ;;  %v2686_v37 = vld [vmem:[%s11125_s1 + $0x370] sm:$0xff] }
 0x307   :  { %v4946_v55 = vrot.slane %v2380_v38, %v7259_v57  ;;  %1684 = vadd.xlane.f32.xlu1 %v1683_v41  ;;  %1681 = vadd.xlane.f32.xlu0 %v1680_v17  ;;  %v4951_v0 = vrot.slane %v2381_v12, %v7253_v53  ;;  %v4878_v41 = vsel %vm3453_vm14, %v4877_v25, %v4873_v11  ;;  %v2657_v17 = vld [vmem:[%s11125_s1 + $0x288] sm:$0xff]  ;;  %v2656_v25 = vld [vmem:[%s11125_s1 + $0x280] sm:$0xff]  ;;  %v1689_v11 = vsel %vm527_vm0, %v402_v50, 0.0 }
 0x308   :  { %v1487_v13 = vpop.xlane.xlu1 %1486  ;;  %v1484_v58 = vpop.xlane.xlu0 %1483  ;;  %6617 = vmatprep.subr.mxu0 %v2658_v1  ;;  %v4883_v38 = vsel %vm3460_vm15, %v4882_v21, %v4878_v41  ;;  %v1827_v21 = vsel %vm527_vm0, %v448_v20, 0.0 }
 0x309   :  { %v4947_v23 = vsel %vm11154_vm8, %v4946_v55, %v4942_v56  ;;  %v2383_v47 = vmul.f32 0.0625, %v1487_v13  ;;  %v2382_v27 = vmul.f32 0.0625, %v1484_v58  ;;  %6618 = vmatpush3.msra.mxu0 %v2642_v4  ;;  %v2640_v55 = vld [vmem:[%s11125_s1 + $0x200] sm:$0xff]  ;;  %v2687_v56 = vld [vmem:[%s11125_s1 + $0x378] sm:$0xff]  ;;  %vm11155_vm8 = vcmask 589312  }
 0x30a   :  { %v4952_v10 = vsel %vm3446_vm13, %v4951_v0, %v4947_v23  ;;  %6619 = vmatprep.subr.mxu0 %v2657_v17  ;;  %v2701_v17 = vld [vmem:[%s11125_s1 + $0x3e8] sm:$0xff] }
 0x30b   :  { %v4961_v15 = vrot.slane %v2383_v47, %v7278_v9  ;;  %v4956_v48 = vrot.slane %v2382_v27, %v7273_v6  ;;  %1687 = vadd.xlane.f32.xlu1 %v1686_v2  ;;  %1735 = vadd.xlane.f32.xlu0 %v1734_v49  ;;  %v5914_v49 = vsel %vm5911_vm12, %v4883_v38, %v7496_v46  ;;  %v2702_v46 = vld [vmem:[%s11125_s1 + $0x3f0] sm:$0xff]  ;;  %v2700_v38 = vld [vmem:[%s11125_s1 + $0x3e0] sm:$0xff] }
 0x30c   :  { %v1493_v40 = vpop.xlane.xlu1 %1492  ;;  %v1490_v16 = vpop.xlane.xlu0 %1489  ;;  %6620 = vmatpush3.msra.mxu0 %v2641_v52 }
 0x30d   :  { %v2385_v44 = vmul.f32 0.0625, %v1493_v40  ;;  %v2384_v54 = vmul.f32 0.0625, %v1490_v16  ;;  %v4957_v12 = vsel %vm3453_vm14, %v4956_v48, %v4952_v10  ;;  %6621 = vmatprep.subr.mxu0 %v2656_v25  ;;  %v1740_v40 = vsel %vm527_vm0, %v419_v59, 0.0  ;;  %v449_v10 = vld [vmem:[%s11124_s0 + $0xd90] sm:$0xff]  ;;  %v2684_v25 = vld [vmem:[%s11125_s1 + $0x360] sm:$0xff] }
 0x30e   :  { %v4962_v18 = vsel %vm3460_vm15, %v4961_v15, %v4957_v12  ;;  %6622 = vmatpush3.msra.mxu0 %v2640_v55 }
 0x30f   :  { %v4970_v2 = vrot.slane %v2385_v44, %v7156_v31  ;;  %v4966_v1 = vrot.slane %v2384_v54, %v7150_v28  ;;  %1825 = vadd.xlane.f32.xlu1 %v1824_v24  ;;  %1738 = vadd.xlane.f32.xlu0 %v1737_v36  ;;  %v5915_v0 = vsel %vm5911_vm12, %v4962_v18, %v7593_v51  ;;  %v431_v51 = vld [vmem:[%s11124_s0 + $0xd00] sm:$0xff]  ;;  %v432_v44 = vld [vmem:[%s11124_s0 + $0xd08] sm:$0xff] }
 0x310   :  { %v1499_v13 = vpop.xlane.xlu1 %1498  ;;  %6078 = vmatprep.mubr.f32.mxu1 %v5915_v0  ;;  %v1496_v58 = vpop.xlane.xlu0 %1495  ;;  %v1776_v52 = vsel %vm527_vm0, %v431_v51, 0.0  ;;  %v2685_v54 = vld [vmem:[%s11125_s1 + $0x368] sm:$0xff]  ;;  %v2698_v51 = vld [vmem:[%s11125_s1 + $0x3d0] sm:$0xff] }
 0x311   :  { %v4971_v23 = vsel %vm3362_vm1, %v4970_v2, %v4966_v1  ;;  %v2387_v47 = vmul.f32 0.0625, %v1499_v13  ;;  %v2386_v27 = vmul.f32 0.0625, %v1496_v58  ;;  %6079 = vmatmul.mubr.f32.vlgmr.msra.gmra.mxu1 %v5914_v49  ;;  %v1830_v2 = vsel %vm527_vm0, %v449_v10, 0.0  ;;  %v420_v58 = vld [vmem:[%s11124_s0 + $0xca8] sm:$0xff]  ;;  %v403_v49 = vld [vmem:[%s11124_s0 + $0xc20] sm:$0xff] }
 0x312   :  { %6627 = vmatpush3.msra.mxu1 %v2687_v56  ;;  %v1779_v1 = vsel %vm527_vm0, %v432_v44, 0.0  ;;  %v2681_v44 = vld [vmem:[%s11125_s1 + $0x348] sm:$0xff] }
 0x313   :  { %v4980_v4 = vrot.slane %v2387_v47, %v7153_v30  ;;  %v4975_v41 = vrot.slane %v2386_v27, %v7159_v32  ;;  %1690 = vadd.xlane.f32.xlu1 %v1689_v11  ;;  %1828 = vadd.xlane.f32.xlu0 %v1827_v21  ;;  %v2699_v11 = vld [vmem:[%s11125_s1 + $0x3d8] sm:$0xff] }
 0x314   :  { %v1505_v15 = vpop.xlane.xlu1 %1504  ;;  %v1502_v48 = vpop.xlane.xlu0 %1501  ;;  %6628 = vmatprep.subr.mxu1 %v2702_v46 }
 0x315   :  { %v4976_v16 = vsel %vm3369_vm2, %v4975_v41, %v4971_v23  ;;  %v2389_v24 = vmul.f32 0.0625, %v1505_v15  ;;  %v2388_v36 = vmul.f32 0.0625, %v1502_v48  ;;  %6629 = vmatpush3.msra.mxu1 %v2686_v37  ;;  %v2683_v23 = vld [vmem:[%s11125_s1 + $0x358] sm:$0xff]  ;;  %v1743_v37 = vsel %vm527_vm0, %v420_v58, 0.0 }
 0x316   :  { %v4981_v12 = vsel %vm3376_vm3, %v4980_v4, %v4976_v16  ;;  %6630 = vmatprep.subr.mxu1 %v2701_v17  ;;  %v1692_v4 = vsel %vm527_vm0, %v403_v49, 0.0  ;;  %v450_v48 = vld [vmem:[%s11124_s0 + $0xd98] sm:$0xff] }
 0x317   :  { %v4990_v50 = vrot.slane %v2389_v24, %v7170_v42  ;;  %v4985_v20 = vrot.slane %v2388_v36, %v7173_v43  ;;  %1777 = vadd.xlane.f32.xlu1 %v1776_v52  ;;  %1741 = vadd.xlane.f32.xlu0 %v1740_v40  ;;  %v433_v52 = vld [vmem:[%s11124_s0 + $0xd10] sm:$0xff]  ;;  %v2697_v24 = vld [vmem:[%s11125_s1 + $0x3c8] sm:$0xff]  ;;  %v2695_v49 = vld [vmem:[%s11125_s1 + $0x3b8] sm:$0xff] }
 0x318   :  { %v1511_v18 = vpop.xlane.xlu1 %1510  ;;  %v1508_v55 = vpop.xlane.xlu0 %1507  ;;  %6631 = vmatpush3.msra.mxu1 %v2685_v54  ;;  %v2682_v40 = vld [vmem:[%s11125_s1 + $0x350] sm:$0xff] }
 0x319   :  { %v4986_v0 = vsel %vm3383_vm4, %v4985_v20, %v4981_v12  ;;  %v2391_v56 = vmul.f32 0.0625, %v1511_v18  ;;  %v2390_v13 = vmul.f32 0.0625, %v1508_v55  ;;  %6632 = vmatprep.subr.mxu1 %v2700_v38  ;;  %v1833_v38 = vsel %vm527_vm0, %v450_v48, 0.0  ;;  %v421_v55 = vld [vmem:[%s11124_s0 + $0xcb0] sm:$0xff] }
 0x31a   :  { %v4991_v21 = vsel %vm3390_vm5, %v4990_v50, %v4986_v0  ;;  %6633 = vmatpush3.msra.mxu1 %v2684_v25  ;;  %v1782_v50 = vsel %vm527_vm0, %v433_v52, 0.0  ;;  %v2678_v52 = vld [vmem:[%s11125_s1 + $0x330] sm:$0xff] }
 0x31b   :  { %v5000_v47 = vrot.slane %v2391_v56, %v7192_v60  ;;  %v4995_v27 = vrot.slane %v2390_v13, %v7195_v61  ;;  %1831 = vadd.xlane.f32.xlu1 %v1830_v2  ;;  %1780 = vadd.xlane.f32.xlu0 %v1779_v1  ;;  %v404_v2 = vld [vmem:[%s11124_s0 + $0xc28] sm:$0xff]  ;;  %v2696_v1 = vld [vmem:[%s11125_s1 + $0x3c0] sm:$0xff] }
 0x31c   :  { %v1517_v59 = vpop.xlane.xlu1 %1516  ;;  %v1514_v46 = vpop.xlane.xlu0 %1513  ;;  %6634 = vmatprep.subr.mxu1 %v2699_v11  ;;  %v2680_v56 = vld [vmem:[%s11125_s1 + $0x340] sm:$0xff] }
 0x31d   :  { %v4996_v41 = vsel %vm11136_vm6, %v4995_v27, %v4991_v21  ;;  %v2393_v17 = vmul.f32 0.0625, %v1517_v59  ;;  %v2392_v15 = vmul.f32 0.0625, %v1514_v46  ;;  %6635 = vmatpush3.msra.mxu1 %v2683_v23  ;;  %v1746_v23 = vsel %vm527_vm0, %v421_v55, 0.0  ;;  %v451_v46 = vld [vmem:[%s11124_s0 + $0xda0] sm:$0xff] }
 0x31e   :  { %v5001_v16 = vsel %vm3404_vm7, %v5000_v47, %v4996_v41  ;;  %6636 = vmatprep.subr.mxu1 %v2698_v51  ;;  %v1695_v47 = vsel %vm527_vm0, %v404_v2, 0.0  ;;  %v2692_v2 = vld [vmem:[%s11125_s1 + $0x3a0] sm:$0xff] }
 0x31f   :  { %v5010_v36 = vrot.slane %v2393_v17, %v7213_v14  ;;  %v5005_v10 = vrot.slane %v2392_v15, %v7219_v19  ;;  %1744 = vadd.xlane.f32.xlu1 %v1743_v37  ;;  %1693 = vadd.xlane.f32.xlu0 %v1692_v4  ;;  %v434_v37 = vld [vmem:[%s11124_s0 + $0xd18] sm:$0xff]  ;;  %v2694_v17 = vld [vmem:[%s11125_s1 + $0x3b0] sm:$0xff] }
 0x320   :  { %v1523_v54 = vpop.xlane.xlu1 %1522  ;;  %v1520_v12 = vpop.xlane.xlu0 %1519  ;;  %6637 = vmatpush3.msra.mxu1 %v2682_v40  ;;  %v2679_v4 = vld [vmem:[%s11125_s1 + $0x338] sm:$0xff] }
 0x321   :  { %v5006_v20 = vsel %vm11155_vm8, %v5005_v10, %v5001_v16  ;;  %v2395_v25 = vmul.f32 0.0625, %v1523_v54  ;;  %v2394_v18 = vmul.f32 0.0625, %v1520_v12  ;;  %6638 = vmatprep.subr.mxu1 %v2697_v24  ;;  %v1836_v24 = vsel %vm527_vm0, %v451_v46, 0.0  ;;  %v422_v12 = vld [vmem:[%s11124_s0 + $0xcb8] sm:$0xff] }
 0x322   :  { %v5011_v0 = vsel %vm3418_vm9, %v5010_v36, %v5006_v20  ;;  %6639 = vmatpush3.msra.mxu1 %v2681_v44  ;;  %v1785_v36 = vsel %vm527_vm0, %v434_v37, 0.0  ;;  %vm11156_vm8 = vcmask 851712   ;;  %v2677_v20 = vld [vmem:[%s11125_s1 + $0x328] sm:$0xff]  ;;  %v2675_v46 = vld [vmem:[%s11125_s1 + $0x318] sm:$0xff] }
 0x323   :  { %v5020_v13 = vrot.slane %v2395_v25, %v7233_v35  ;;  %v5015_v58 = vrot.slane %v2394_v18, %v7239_v39  ;;  %1834 = vadd.xlane.f32.xlu1 %v1833_v38  ;;  %1783 = vadd.xlane.f32.xlu0 %v1782_v50  ;;  %v405_v38 = vld [vmem:[%s11124_s0 + $0xc30] sm:$0xff]  ;;  %v2693_v50 = vld [vmem:[%s11125_s1 + $0x3a8] sm:$0xff] }
 0x324   :  { %v1529_v11 = vpop.xlane.xlu1 %1528  ;;  %v1526_v21 = vpop.xlane.xlu0 %1525  ;;  %6640 = vmatprep.subr.mxu1 %v2696_v1 }
 0x325   :  { %v5016_v27 = vsel %vm3425_vm10, %v5015_v58, %v5011_v0  ;;  %v2397_v51 = vmul.f32 0.0625, %v1529_v11  ;;  %v2396_v59 = vmul.f32 0.0625, %v1526_v21  ;;  %6641 = vmatpush3.msra.mxu1 %v2680_v56  ;;  %v1749_v56 = vsel %vm527_vm0, %v422_v12, 0.0  ;;  %v452_v21 = vld [vmem:[%s11124_s0 + $0xda8] sm:$0xff] }
 0x326   :  { %v5021_v41 = vsel %vm3432_vm11, %v5020_v13, %v5016_v27  ;;  %6642 = vmatprep.subr.mxu1 %v2695_v49  ;;  %v1698_v13 = vsel %vm527_vm0, %v405_v38, 0.0  ;;  %v2691_v27 = vld [vmem:[%s11125_s1 + $0x398] sm:$0xff]  ;;  %v2689_v12 = vld [vmem:[%s11125_s1 + $0x388] sm:$0xff] }
 0x327   :  { %v5030_v15 = vrot.slane %v2397_v51, %v7253_v53  ;;  %v5025_v48 = vrot.slane %v2396_v59, %v7259_v57  ;;  %1747 = vadd.xlane.f32.xlu1 %v1746_v23  ;;  %1696 = vadd.xlane.f32.xlu0 %v1695_v47  ;;  %v435_v23 = vld [vmem:[%s11124_s0 + $0xd20] sm:$0xff] }
 0x328   :  { %v1541_v40 = vpop.xlane.xlu1 %1540  ;;  %v1538_v16 = vpop.xlane.xlu0 %1537  ;;  %6643 = vmatpush3.msra.mxu1 %v2679_v4  ;;  %v2676_v47 = vld [vmem:[%s11125_s1 + $0x320] sm:$0xff] }
 0x329   :  { %v5026_v10 = vsel %vm11156_vm8, %v5025_v48, %v5021_v41  ;;  %v2401_v44 = vmul.f32 0.0625, %v1541_v40  ;;  %v2400_v54 = vmul.f32 0.0625, %v1538_v16  ;;  %6644 = vmatprep.subr.mxu1 %v2694_v17  ;;  %v1839_v41 = vsel %vm527_vm0, %v452_v21, 0.0  ;;  %v423_v40 = vld [vmem:[%s11124_s0 + $0xcc0] sm:$0xff]  ;;  %v406_v16 = vld [vmem:[%s11124_s0 + $0xc38] sm:$0xff] }
 0x32a   :  { %6645 = vmatpush3.msra.mxu1 %v2678_v52  ;;  %v9662_v25 = vsel %vm3446_vm13, %v5030_v15, %v5026_v10  ;;  %v1788_v17 = vsel %vm527_vm0, %v435_v23, 0.0  ;;  %v2674_v10 = vld [vmem:[%s11125_s1 + $0x310] sm:$0xff]  ;;  %vm11159_vm8 = vcmask 589312  }
 0x32b   :  { %11157 = vst [vmem:[#allocation20_spill] sm:$0xff] %v9662_v25  ;;  %v5049_v18 = vrot.slane %v2401_v44, %v7156_v31  ;;  %v5045_v55 = vrot.slane %v2400_v54, %v7150_v28  ;;  %1837 = vadd.xlane.f32.xlu1 %v1836_v24  ;;  %1786 = vadd.xlane.f32.xlu0 %v1785_v36  ;;  %v2690_v24 = vld [vmem:[%s11125_s1 + $0x390] sm:$0xff] }
 0x32c   :  { %v1547_v1 = vpop.xlane.xlu1 %1546  ;;  %v1544_v0 = vpop.xlane.xlu0 %1543  ;;  %6646 = vmatprep.subr.mxu1 %v2693_v50 }
 0x32d   :  { %v5050_v58 = vsel %vm3362_vm1, %v5049_v18, %v5045_v55  ;;  %v2403_v49 = vmul.f32 0.0625, %v1547_v1  ;;  %v2402_v11 = vmul.f32 0.0625, %v1544_v0  ;;  %6647 = vmatpush3.msra.mxu1 %v2677_v20  ;;  %v1752_v20 = vsel %vm527_vm0, %v423_v40, 0.0  ;;  %v436_v1 = vld [vmem:[%s11124_s0 + $0xd28] sm:$0xff] }
 0x32e   :  { %6648 = vmatprep.subr.mxu1 %v2692_v2  ;;  %v1701_v18 = vsel %vm527_vm0, %v406_v16, 0.0  ;;  %v453_v2 = vld [vmem:[%s11124_s0 + $0xdb0] sm:$0xff]  ;;  %v2673_v0 = vld [vmem:[%s11125_s1 + $0x308] sm:$0xff]  ;;  %v1791_v23 = vsel %vm527_vm0, %v436_v1, 0.0 }
 0x32f   :  { %v5059_v51 = vrot.slane %v2403_v49, %v7153_v30  ;;  %v5054_v59 = vrot.slane %v2402_v11, %v7159_v32  ;;  %1750 = vadd.xlane.f32.xlu1 %v1749_v56  ;;  %1699 = vadd.xlane.f32.xlu0 %v1698_v13  ;;  %v2688_v56 = vld [vmem:[%s11125_s1 + $0x380] sm:$0xff]  ;;  %v1842_v21 = vsel %vm527_vm0, %v453_v2, 0.0  ;;  %v408_v2 = vld [vmem:[%s11124_s0 + $0xc48] sm:$0xff] }
 0x330   :  { %v1637_v37 = vpop.xlane.xlu1 %1636  ;;  %v1634_v4 = vpop.xlane.xlu0 %1633  ;;  %6649 = vmatpush3.msra.mxu1 %v2676_v47 }
 0x331   :  { %v5055_v15 = vsel %vm3369_vm2, %v5054_v59, %v5050_v58  ;;  %v2433_v48 = vmul.f32 0.0625, %v1637_v37  ;;  %v2432_v52 = vmul.f32 0.0625, %v1634_v4  ;;  %6650 = vmatprep.subr.mxu1 %v2691_v27  ;;  %v2672_v58 = vld [vmem:[%s11125_s1 + $0x300] sm:$0xff] }
 0x332   :  { %v9702_v36 = vsel %vm3376_vm3, %v5059_v51, %v5055_v15  ;;  %6651 = vmatpush3.msra.mxu1 %v2675_v46  ;;  %v424_v51 = vld [vmem:[%s11124_s0 + $0xcc8] sm:$0xff]  ;;  %v407_v59 = vld [vmem:[%s11124_s0 + $0xc40] sm:$0xff] }
 0x333   :  { %v5207_v44 = vrot.slane %v2433_v48, %v7156_v31  ;;  %v5203_v54 = vrot.slane %v2432_v52, %v7150_v28  ;;  %1840 = vadd.xlane.f32.xlu1 %v1839_v41  ;;  %1789 = vadd.xlane.f32.xlu0 %v1788_v17  ;;  %v1755_v15 = vsel %vm527_vm0, %v424_v51, 0.0  ;;  %v1704_v48 = vsel %vm527_vm0, %v407_v59, 0.0  ;;  %v409_v51 = vld [vmem:[%s11124_s0 + $0xc50] sm:$0xff] }
 0x334   :  { %v1586_v38 = vpop.xlane.xlu1 %1585  ;;  %v9712_v50 = vpop.xlane.xlu0 %1549  ;;  %6652 = vmatprep.subr.mxu1 %v2690_v24  ;;  %v454_v24 = vld [vmem:[%s11124_s0 + $0xdb8] sm:$0xff] }
 0x335   :  { %v5208_v55 = vsel %vm3362_vm1, %v5207_v44, %v5203_v54  ;;  %6653 = vmatpush3.msra.mxu1 %v2674_v10  ;;  %v2416_v13 = vmul.f32 0.0625, %v1586_v38  ;;  %v437_v10 = vld [vmem:[%s11124_s0 + $0xd30] sm:$0xff]  ;;  %v1845_v38 = vsel %vm527_vm0, %v454_v24, 0.0 }
 0x336   :  { %6654 = vmatprep.subr.mxu1 %v2689_v12 }
 0x337   :  { %1753 = vadd.xlane.f32.xlu1 %v1752_v20  ;;  %1702 = vadd.xlane.f32.xlu0 %v1701_v18  ;;  %v5124_v46 = vrot.slane %v2416_v13, %v7150_v28  ;;  %v1794_v20 = vsel %vm527_vm0, %v437_v10, 0.0  ;;  %v1707_v13 = vsel %vm527_vm0, %v408_v2, 0.0  ;;  %v427_v10 = vld [vmem:[%s11124_s0 + $0xce0] sm:$0xff] }
 0x338   :  { %v1640_v49 = vpop.xlane.xlu1 %1639  ;;  %v1589_v11 = vpop.xlane.xlu0 %1588  ;;  %6655 = vmatpush3.msra.mxu1 %v2673_v0 }
 0x339   :  { %v2434_v47 = vmul.f32 0.0625, %v1640_v49  ;;  %v2417_v27 = vmul.f32 0.0625, %v1589_v11  ;;  %6656 = vmatprep.subr.mxu1 %v2688_v56  ;;  %v438_v49 = vld [vmem:[%s11124_s0 + $0xd38] sm:$0xff] }
 0x33a   :  { %6657 = vmatpush3.msra.mxu1 %v2672_v58  ;;  %v455_v58 = vld [vmem:[%s11124_s0 + $0xdc0] sm:$0xff] }
 0x33b   :  { %v5212_v37 = vrot.slane %v2434_v47, %v7159_v32  ;;  %v5128_v4 = vrot.slane %v2417_v27, %v7156_v31  ;;  %1843 = vadd.xlane.f32.xlu1 %v1842_v21  ;;  %1792 = vadd.xlane.f32.xlu0 %v1791_v23  ;;  %v1848_v23 = vsel %vm527_vm0, %v455_v58, 0.0  ;;  %v1797_v47 = vsel %vm527_vm0, %v438_v49, 0.0  ;;  %v426_v27 = vld [vmem:[%s11124_s0 + $0xcd8] sm:$0xff] }
 0x33c   :  { %v1592_v41 = vpop.xlane.xlu1 %1591  ;;  %v9743_v17 = vpop.xlane.xlu0 %1552 }
 0x33d   :  { %v9748_v52 = vsel %vm3369_vm2, %v5212_v37, %v5208_v55  ;;  %v5129_v40 = vsel %vm3362_vm1, %v5128_v4, %v5124_v46  ;;  %v2418_v16 = vmul.f32 0.0625, %v1592_v41  ;;  %v425_v55 = vld [vmem:[%s11124_s0 + $0xcd0] sm:$0xff]  ;;  %v1761_v37 = vsel %vm527_vm0, %v426_v27, 0.0  ;;  %v456_v41 = vld [vmem:[%s11124_s0 + $0xdc8] sm:$0xff] }
 0x33e   :  { %v1758_v56 = vsel %vm527_vm0, %v425_v55, 0.0  ;;  %v1710_v4 = vsel %vm527_vm0, %v409_v51, 0.0  ;;  %v1764_v55 = vsel %vm527_vm0, %v427_v10, 0.0  ;;  %v428_v27 = vld [vmem:[%s11124_s0 + $0xce8] sm:$0xff]  ;;  %v411_v51 = vld [vmem:[%s11124_s0 + $0xc60] sm:$0xff] }
 0x33f   :  { %v5133_v44 = vrot.slane %v2418_v16, %v7159_v32  ;;  %1756 = vadd.xlane.f32.xlu1 %v1755_v15  ;;  %1705 = vadd.xlane.f32.xlu0 %v1704_v48  ;;  %v439_v15 = vld [vmem:[%s11124_s0 + $0xd40] sm:$0xff]  ;;  %v1851_v16 = vsel %vm527_vm0, %v456_v41, 0.0  ;;  %v1767_v41 = vsel %vm527_vm0, %v428_v27, 0.0  ;;  %v1812_v32 = vsel %vm527_vm0, %v443_v33, 0.0  ;;  %v480_v33 = vld [vmem:[%s11124_s0 + $0xe88] sm:$0xff] }
 0x340   :  { %v9758_v54 = vpop.xlane.xlu1 %1555  ;;  %v9760_v12 = vpop.xlane.xlu0 %1642  ;;  %v1800_v24 = vsel %vm527_vm0, %v439_v15, 0.0  ;;  %v1716_v15 = vsel %vm527_vm0, %v411_v51, 0.0  ;;  %v9965_v25 = vsel %vm527_vm0, %v480_v33, 0.0 }
 0x341   :  { %v9765_v18 = vsel %vm3369_vm2, %v5133_v44, %v5129_v40  ;;  %v410_v44 = vld [vmem:[%s11124_s0 + $0xc58] sm:$0xff]  ;;  %v2435_v3 = vmul.f32 0.0625, %v9760_v12 }
 0x342   :  { %v1713_v2 = vsel %vm527_vm0, %v410_v44, 0.0 }
 0x343   :  { %1846 = vadd.xlane.f32.xlu1 %v1845_v38  ;;  %1795 = vadd.xlane.f32.xlu0 %v1794_v20 }
 0x344   :  { %v9773_v1 = vpop.xlane.xlu1 %1645  ;;  %v9775_v0 = vpop.xlane.xlu0 %1594 }
 0x345   :  { %v2419_v31 = vmul.f32 0.0625, %v9775_v0 }
 0x347   :  { %1759 = vadd.xlane.f32.xlu1 %v1758_v56  ;;  %1708 = vadd.xlane.f32.xlu0 %v1707_v13  ;;  %v457_v56 = vld [vmem:[%s11124_s0 + $0xdd0] sm:$0xff]  ;;  %v440_v13 = vld [vmem:[%s11124_s0 + $0xd48] sm:$0xff] }
 0x348   :  { %v9785_v11 = vpop.xlane.xlu1 %1597  ;;  %v9787_v21 = vpop.xlane.xlu0 %1558 }
 0x34b   :  { %1849 = vadd.xlane.f32.xlu1 %v1848_v23  ;;  %1798 = vadd.xlane.f32.xlu0 %v1797_v47  ;;  %v1854_v23 = vsel %vm527_vm0, %v457_v56, 0.0  ;;  %v1803_v47 = vsel %vm527_vm0, %v440_v13, 0.0  ;;  %v429_v56 = vld [vmem:[%s11124_s0 + $0xcf0] sm:$0xff]  ;;  %v412_v13 = vld [vmem:[%s11124_s0 + $0xc68] sm:$0xff] }
 0x34c   :  { %v9797_v59 = vpop.xlane.xlu1 %1561  ;;  %v9799_v46 = vpop.xlane.xlu0 %1648  ;;  %v1770_v27 = vsel %vm527_vm0, %v429_v56, 0.0  ;;  %v1719_v51 = vsel %vm527_vm0, %v412_v13, 0.0  ;;  %v2405_v56 = vmul.f32 0.0625, %v9743_v17  ;;  %v444_v17 = vld [vmem:[%s11124_s0 + $0xd68] sm:$0xff] }
 0x34d   :  { %v1815_v12 = vsel %vm527_vm0, %v444_v17, 0.0  ;;  %v464_v17 = vld [vmem:[%s11124_s0 + $0xe08] sm:$0xff]  ;;  %v2408_v45 = vmul.f32 0.0625, %v9797_v59  ;;  %v463_v59 = vld [vmem:[%s11124_s0 + $0xe00] sm:$0xff] }
 0x34f   :  { %1762 = vadd.xlane.f32.xlu1 %v1761_v37  ;;  %1711 = vadd.xlane.f32.xlu0 %v1710_v4  ;;  %v5084_v33 = vrot.slane %v2408_v45, %v7219_v19 }
 0x350   :  { %v9809_v48 = vpop.xlane.xlu1 %1651  ;;  %v9811_v40 = vpop.xlane.xlu0 %1600 }
 0x353   :  { %1852 = vadd.xlane.f32.xlu1 %v1851_v16  ;;  %1801 = vadd.xlane.f32.xlu0 %v1800_v24  ;;  %v458_v16 = vld [vmem:[%s11124_s0 + $0xdd8] sm:$0xff]  ;;  %v441_v24 = vld [vmem:[%s11124_s0 + $0xd50] sm:$0xff] }
 0x354   :  { %v9821_v38 = vpop.xlane.xlu1 %1603  ;;  %v9823_v20 = vpop.xlane.xlu0 %1564 }
 0x355   :  { %v2409_v62 = vmul.f32 0.0625, %v9823_v20 }
 0x357   :  { %1765 = vadd.xlane.f32.xlu1 %v1764_v55  ;;  %1714 = vadd.xlane.f32.xlu0 %v1713_v2  ;;  %v1857_v55 = vsel %vm527_vm0, %v458_v16, 0.0  ;;  %v1806_v2 = vsel %vm527_vm0, %v441_v24, 0.0  ;;  %v2404_v16 = vmul.f32 0.0625, %v9712_v50  ;;  %v430_v24 = vld [vmem:[%s11124_s0 + $0xcf8] sm:$0xff] }
 0x358   :  { %v9833_v58 = vpop.xlane.xlu1 %1567  ;;  %v9835_v49 = vpop.xlane.xlu0 %1654  ;;  %v1773_v34 = vsel %vm527_vm0, %v430_v24, 0.0  ;;  %v462_v24 = vld [vmem:[%s11124_s0 + $0xdf8] sm:$0xff] }
 0x359   :  { %v5064_v29 = vrot.slane %v2404_v16, %v7173_v43  ;;  %v9958_v0 = vsel %vm527_vm0, %v462_v24, 0.0 }
 0x35b   :  { %1855 = vadd.xlane.f32.xlu1 %v1854_v23  ;;  %1804 = vadd.xlane.f32.xlu0 %v1803_v47 }
 0x35c   :  { %v9845_v37 = vpop.xlane.xlu1 %1657  ;;  %v9847_v4 = vpop.xlane.xlu0 %1606 }
 0x35f   :  { %1768 = vadd.xlane.f32.xlu1 %v1767_v41  ;;  %1717 = vadd.xlane.f32.xlu0 %v1716_v15  ;;  %v459_v41 = vld [vmem:[%s11124_s0 + $0xde0] sm:$0xff]  ;;  %v442_v15 = vld [vmem:[%s11124_s0 + $0xd58] sm:$0xff] }
 0x360   :  { %v9857_v10 = vpop.xlane.xlu1 %1609  ;;  %v9859_v44 = vpop.xlane.xlu0 %1570  ;;  %v1860_v50 = vsel %vm527_vm0, %v459_v41, 0.0  ;;  %v445_v41 = vld [vmem:[%s11124_s0 + $0xd70] sm:$0xff] }
 0x363   :  { %1858 = vadd.xlane.f32.xlu1 %v1857_v55  ;;  %1807 = vadd.xlane.f32.xlu0 %v1806_v2  ;;  %v413_v55 = vld [vmem:[%s11124_s0 + $0xc70] sm:$0xff]  ;;  %v2735_v2 = vld [vmem:[%s11125_s1 + $0x4f8] sm:$0xff] }
 0x364   :  { %v9869_v23 = vpop.xlane.xlu1 %1573  ;;  %v9871_v47 = vpop.xlane.xlu0 %1660  ;;  %6661 = vmatprep.subr.mxu0 %v2735_v2  ;;  %v1722_v63 = vsel %vm527_vm0, %v413_v55, 0.0  ;;  %v461_v2 = vld [vmem:[%s11124_s0 + $0xdf0] sm:$0xff]  ;;  %v5069_v55 = vrot.slane %v2405_v56, %v7170_v42  ;;  %v2407_v56 = vmul.f32 0.0625, %v9787_v21  ;;  %v5065_v21 = vsel %vm3383_vm4, %v5064_v29, %v9702_v36 }
 0x365   :  { %v9944_v22 = vsel %vm527_vm0, %v461_v2, 0.0  ;;  %v5217_v2 = vrot.slane %v2435_v3, %v7153_v30  ;;  %v9978_v29 = vsel %vm527_vm0, %v464_v17, 0.0  ;;  %v5138_v36 = vrot.slane %v2419_v31, %v7153_v30 }
 0x366   :  { %v5079_v20 = vrot.slane %v2407_v56, %v7192_v60  ;;  %v9991_v17 = vsel %vm527_vm0, %v463_v59, 0.0  ;;  %v5089_v31 = vrot.slane %v2409_v62, %v7213_v14 }
 0x367   :  { %1771 = vadd.xlane.f32.xlu1 %v1770_v27  ;;  %1720 = vadd.xlane.f32.xlu0 %v1719_v51  ;;  %v1809_v27 = vsel %vm527_vm0, %v442_v15, 0.0  ;;  %v460_v51 = vld [vmem:[%s11124_s0 + $0xde8] sm:$0xff]  ;;  %v2406_v15 = vmul.f32 0.0625, %v9758_v54  ;;  %v446_v54 = vld [vmem:[%s11124_s0 + $0xd78] sm:$0xff] }
 0x368   :  { %v9892_v13 = vpop.xlane.xlu1 %1663  ;;  %v9894_v5 = vpop.xlane.xlu0 %1612  ;;  %v1863_v26 = vsel %vm527_vm0, %v460_v51, 0.0  ;;  %v2436_v51 = vmul.f32 0.0625, %v9773_v1  ;;  %v9955_v1 = vsel %vm527_vm0, %v446_v54, 0.0  ;;  %v2410_v54 = vmul.f32 0.0625, %v9833_v58 }
 0x369   :  { %v2411_v58 = vmul.f32 0.0625, %v9859_v44  ;;  %v2437_v44 = vmul.f32 0.0625, %v9799_v46  ;;  %v2422_v46 = vmul.f32 0.0625, %v9821_v38 }
 0x36a   :  { %v5094_v45 = vrot.slane %v2410_v54, %v7239_v39  ;;  %v2439_v54 = vmul.f32 0.0625, %v9835_v49  ;;  %v2440_v49 = vmul.f32 0.0625, %v9845_v37 }
 0x36b   :  { %1861 = vadd.xlane.f32.xlu1 %v1860_v50  ;;  %1810 = vadd.xlane.f32.xlu0 %v1809_v27  ;;  %v1725_v50 = vsel %vm527_vm0, %v414_v8, 0.0  ;;  %v9935_v27 = vsel %vm527_vm0, %v445_v41, 0.0  ;;  %v479_v8 = vld [vmem:[%s11124_s0 + $0xe80] sm:$0xff]  ;;  %v5074_v41 = vrot.slane %v2406_v15, %v7195_v61  ;;  %v5070_v15 = vsel %vm3390_vm5, %v5069_v55, %v5065_v21 }
 0x36c   :  { %v9930_v28 = vpop.xlane.xlu1 %1615  ;;  %v1577_v16 = vpop.xlane.xlu0 %1576  ;;  %v9975_v3 = vsel %vm527_vm0, %v479_v8, 0.0  ;;  %v2412_v8 = vmul.f32 0.0625, %v9869_v23  ;;  %v5218_v21 = vsel %vm3376_vm3, %v5217_v2, %v9748_v52  ;;  %v5139_v52 = vsel %vm3376_vm3, %v5138_v36, %v9765_v18 }
 0x36d   :  { %11158 = vst [vmem:[#allocation21_spill] sm:$0xff] %v9930_v28  ;;  %v5075_v55 = vsel %vm11136_vm6, %v5074_v41, %v5070_v15  ;;  %v2413_v56 = vmul.f32 0.0625, %v1577_v16  ;;  %v2438_v41 = vmul.f32 0.0625, %v9809_v48 }
 0x36e   :  { %v5080_v62 = vsel %vm3404_vm7, %v5079_v20, %v5075_v55  ;;  %v5104_v48 = vrot.slane %v2412_v8, %v7259_v57  ;;  %v2423_v55 = vmul.f32 0.0625, %v9847_v4  ;;  %v5153_v8 = vrot.slane %v2422_v46, %v7195_v61 }
 0x36f   :  { %1774 = vadd.xlane.f32.xlu1 %v1773_v34  ;;  %1723 = vadd.xlane.f32.xlu0 %v1722_v63  ;;  %v2767_v63 = vld [vmem:[%s11125_s1 + $0x5f8] sm:$0xff]  ;;  %v5222_v34 = vrot.slane %v2436_v51, %v7173_v43  ;;  %v2420_v51 = vmul.f32 0.0625, %v9785_v11  ;;  %v2421_v11 = vmul.f32 0.0625, %v9811_v40  ;;  %v5109_v18 = vrot.slane %v2413_v56, %v7253_v53 }
 0x370   :  { %v1580_v24 = vpop.xlane.xlu1 %1579  ;;  %v9972_v28 = vpop.xlane.xlu0 %1666  ;;  %6696 = vmatprep.subr.mxu1 %v2767_v63 }
 0x371   :  { %v2414_v23 = vmul.f32 0.0625, %v1580_v24  ;;  %v5223_v63 = vsel %vm3383_vm4, %v5222_v34, %v5218_v21  ;;  %v5143_v16 = vrot.slane %v2420_v51, %v7173_v43  ;;  %v5227_v24 = vrot.slane %v2437_v44, %v7170_v42 }
 0x372   :  { %v5232_v34 = vrot.slane %v2438_v41, %v7195_v61  ;;  %v2424_v21 = vmul.f32 0.0625, %v9857_v10 }
 0x373   :  { %1864 = vadd.xlane.f32.xlu1 %v1863_v26  ;;  %1813 = vadd.xlane.f32.xlu0 %v1812_v32  ;;  %v5099_v26 = vrot.slane %v2411_v58, %v7233_v35  ;;  %v5085_v32 = vsel %vm11159_vm8, %v5084_v33, %v5080_v62  ;;  %v5114_v38 = vrot.slane %v2414_v23, %v7273_v6  ;;  %v465_v58 = vld [vmem:[%s11124_s0 + $0xe10] sm:$0xff]  ;;  %vm11160_vm8 = vcmask 851712  }
 0x374   :  { %v1670_v15 = vpop.xlane.xlu1 %1669  ;;  %v10000_v59 = vpop.xlane.xlu0 %1618  ;;  %v5090_v2 = vsel %vm3418_vm9, %v5089_v31, %v5085_v32  ;;  %v5148_v33 = vrot.slane %v2421_v11, %v7170_v42  ;;  %v5237_v31 = vrot.slane %v2439_v54, %v7192_v60  ;;  %v10035_v37 = vsel %vm527_vm0, %v465_v58, 0.0 }
 0x375   :  { %v5095_v40 = vsel %vm3425_vm10, %v5094_v45, %v5090_v2  ;;  %v5144_v4 = vsel %vm3383_vm4, %v5143_v16, %v5139_v52  ;;  %v5228_v41 = vsel %vm3390_vm5, %v5227_v24, %v5223_v63  ;;  %v5242_v32 = vrot.slane %v2440_v49, %v7219_v19 }
 0x376   :  { %v5149_v11 = vsel %vm3390_vm5, %v5148_v33, %v5144_v4  ;;  %v5163_v46 = vrot.slane %v2424_v21, %v7219_v19  ;;  %v2441_v52 = vmul.f32 0.0625, %v9871_v47  ;;  %v2442_v2 = vmul.f32 0.0625, %v9892_v13 }
 0x377   :  { %1816 = vadd.xlane.f32.xlu1 %v1815_v12  ;;  %1726 = vadd.xlane.f32.xlu0 %v1725_v50  ;;  %v5100_v12 = vsel %vm3432_vm11, %v5099_v26, %v5095_v40  ;;  %v5233_v26 = vsel %vm11136_vm6, %v5232_v34, %v5228_v41  ;;  %v2425_v54 = vmul.f32 0.0625, %v9894_v5  ;;  %v2443_v34 = vmul.f32 0.0625, %v9972_v28 }
 0x378   :  { %v1583_v36 = vpop.xlane.xlu1 %1582  ;;  %v1532_v20 = vpop.xlane.xlu0 %1531  ;;  %v5105_v51 = vsel %vm11160_vm8, %v5104_v48, %v5100_v12  ;;  %v5154_v48 = vsel %vm11136_vm6, %v5153_v8, %v5149_v11  ;;  %v5238_v16 = vsel %vm3404_vm7, %v5237_v31, %v5233_v26  ;;  %v2444_v47 = vmul.f32 0.0625, %v1670_v15  ;;  %v2719_v26 = vld [vmem:[%s11125_s1 + $0x478] sm:$0xff] }
 0x379   :  { %v2415_v50 = vmul.f32 0.0625, %v1583_v36  ;;  %v5110_v56 = vsel %vm3446_vm13, %v5109_v18, %v5105_v51  ;;  %v2398_v10 = vmul.f32 0.0625, %v1532_v20  ;;  %v11161_v18 = vld [vmem:[#allocation21_spill] sm:$0xff]  ;;  %vm11162_vm8 = vcmask 589312   ;;  %v11164_v51 = vld [vmem:[#allocation20_spill] sm:$0xff] }
 0x37a   :  { %v5115_v62 = vsel %vm3453_vm14, %v5114_v38, %v5110_v56  ;;  %v2426_v24 = vmul.f32 0.0625, %v11161_v18  ;;  %v5243_v36 = vsel %vm11162_vm8, %v5242_v32, %v5238_v16  ;;  %v2427_v5 = vmul.f32 0.0625, %v10000_v59  ;;  %vm11163_vm6 = vmmov %vm11162_vm8  ;;  %v481_v56 = vld [vmem:[%s11124_s0 + $0xe90] sm:$0xff] }
 0x37b   :  { %v5119_v44 = vrot.slane %v2415_v50, %v7278_v9  ;;  %1819 = vadd.xlane.f32.xlu1 %v9935_v27  ;;  %1867 = vadd.xlane.f32.xlu0 %v9944_v22  ;;  %v5158_v27 = vrot.slane %v2423_v55, %v7192_v60  ;;  %v5035_v40 = vrot.slane %v2398_v10, %v7273_v6  ;;  %v1926_v11 = vsel %vm527_vm0, %v481_v56, 0.0  ;;  %v11169_v56 = vld [vmem:[#allocation10_spill] sm:$0xff] }
 0x37c   :  { %v1673_v45 = vpop.xlane.xlu1 %1672  ;;  %v1622_v23 = vpop.xlane.xlu0 %1621  ;;  %v5252_v28 = vrot.slane %v2442_v2, %v7239_v39  ;;  %v5168_v15 = vrot.slane %v2425_v54, %v7213_v14  ;;  %v5173_v59 = vrot.slane %v2426_v24, %v7239_v39  ;;  %v5257_v50 = vrot.slane %v2443_v34, %v7233_v35  ;;  %v511_v34 = vld [vmem:[%s11124_s0 + $0xf80] sm:$0xff] }
 0x37d   :  { %v5120_v22 = vsel %vm3460_vm15, %v5119_v44, %v5115_v62  ;;  %v5159_v13 = vsel %vm3404_vm7, %v5158_v27, %v5154_v48  ;;  %v2445_v58 = vmul.f32 0.0625, %v1673_v45  ;;  %v2428_v49 = vmul.f32 0.0625, %v1622_v23  ;;  %v11165_v23 = vld [vmem:[#allocation9_spill] sm:$0xff] }
 0x37e   :  { %v5917_v63 = vsel %vm5911_vm12, %v5120_v22, %v7787_v7  ;;  %v5262_v33 = vrot.slane %v2444_v47, %v7259_v57  ;;  %v5036_v31 = vsel %vm3453_vm14, %v5035_v40, %v11164_v51  ;;  %v5178_v44 = vrot.slane %v2427_v5, %v7233_v35  ;;  %v482_v47 = vld [vmem:[%s11124_s0 + $0xe98] sm:$0xff]  ;;  %v2718_v40 = vld [vmem:[%s11125_s1 + $0x470] sm:$0xff] }
 0x37f   :  { %1822 = vadd.xlane.f32.xlu1 %v9955_v1  ;;  %1870 = vadd.xlane.f32.xlu0 %v9958_v0  ;;  %v5164_v1 = vsel %vm11163_vm6, %v5163_v46, %v5159_v13  ;;  %v5247_v0 = vrot.slane %v2441_v52, %v7213_v14  ;;  %v5267_v10 = vrot.slane %v2445_v58, %v7253_v53  ;;  %v2734_v46 = vld [vmem:[%s11125_s1 + $0x4f0] sm:$0xff]  ;;  %vm11166_vm6 = vcmask 851712  }
 0x380   :  { %6148 = vmatprep.mubr.f32.mxu0 %v5917_v63  ;;  %v1625_v7 = vpop.xlane.xlu1 %1624  ;;  %v1535_v38 = vpop.xlane.xlu0 %1534  ;;  %v5183_v45 = vrot.slane %v2428_v49, %v7259_v57  ;;  %v5169_v27 = vsel %vm3418_vm9, %v5168_v15, %v5164_v1  ;;  %vm11167_vm8 = vmmov %vm11166_vm6  ;;  %v2717_v1 = vld [vmem:[%s11125_s1 + $0x468] sm:$0xff]  ;;  %v2016_v49 = vsel %vm527_vm0, %v511_v34, 0.0  ;;  %v11168_v51 = vld [vmem:[#allocation11_spill] sm:$0xff] }
 0x381   :  { %v2399_v20 = vmul.f32 0.0625, %v1535_v38  ;;  %v2429_v55 = vmul.f32 0.0625, %v1625_v7  ;;  %v5248_v41 = vsel %vm3418_vm9, %v5247_v0, %v5243_v36  ;;  %v5174_v52 = vsel %vm3425_vm10, %v5173_v59, %v5169_v27  ;;  %v2733_v36 = vld [vmem:[%s11125_s1 + $0x4e8] sm:$0xff] }
 0x382   :  { %v5253_v32 = vsel %vm3425_vm10, %v5252_v28, %v5248_v41  ;;  %v1929_v28 = vsel %vm527_vm0, %v482_v47, 0.0  ;;  %v11171_v41 = vld [vmem:[#allocation5_spill] sm:$0xff] }
 0x383   :  { %v5040_v12 = vrot.slane %v2399_v20, %v7278_v9  ;;  %1924 = vadd.xlane.f32.xlu1 %v9965_v25  ;;  %1921 = vadd.xlane.f32.xlu0 %v9975_v3  ;;  %v5188_v22 = vrot.slane %v2429_v55, %v7253_v53  ;;  %v5258_v63 = vsel %vm3432_vm11, %v5257_v50, %v5253_v32 }
 0x384   :  { %v1628_v8 = vpop.xlane.xlu1 %1627  ;;  %v1676_v21 = vpop.xlane.xlu0 %1675 }
 0x385   :  { %v2430_v25 = vmul.f32 0.0625, %v1628_v8  ;;  %v2446_v4 = vmul.f32 0.0625, %v1676_v21  ;;  %v5041_v3 = vsel %vm3460_vm15, %v5040_v12, %v5036_v31  ;;  %v512_v8 = vld [vmem:[%s11124_s0 + $0xf88] sm:$0xff]  ;;  %v2732_v21 = vld [vmem:[%s11125_s1 + $0x4e0] sm:$0xff] }
 0x386   :  { %v5916_v62 = vsel %vm5911_vm12, %v5041_v3, %v11165_v23  ;;  %v2751_v23 = vld [vmem:[%s11125_s1 + $0x578] sm:$0xff]  ;;  %v2019_v27 = vsel %vm527_vm0, %v512_v8, 0.0 }
 0x387   :  { %1876 = vadd.xlane.f32.xlu1 %v9978_v29  ;;  %1873 = vadd.xlane.f32.xlu0 %v9991_v17  ;;  %v5193_v48 = vrot.slane %v2430_v25, %v7273_v6  ;;  %v5272_v16 = vrot.slane %v2446_v4, %v7273_v6  ;;  %v5263_v29 = vsel %vm11166_vm6, %v5262_v33, %v5258_v63  ;;  %v466_v33 = vld [vmem:[%s11124_s0 + $0xe18] sm:$0xff]  ;;  %v2716_v25 = vld [vmem:[%s11125_s1 + $0x460] sm:$0xff]  ;;  %v11170_v4 = vld [vmem:[#allocation6_spill] sm:$0xff]  ;;  %vm11173_vm6 = vcmask 458112  }
 0x388   :  { %6149 = vmatmul.mubr.f32.vlgmr.msra.gmra.mxu0 %v5916_v62  ;;  %v1631_v2 = vpop.xlane.xlu1 %1630  ;;  %v1679_v54 = vpop.xlane.xlu0 %1678  ;;  %v5179_v17 = vsel %vm3432_vm11, %v5178_v44, %v5174_v52  ;;  %v5268_v7 = vsel %vm3446_vm13, %v5267_v10, %v5263_v29  ;;  %v1881_v32 = vsel %vm527_vm0, %v466_v33, 0.0  ;;  %v483_v63 = vld [vmem:[%s11124_s0 + $0xea0] sm:$0xff] }
 0x389   :  { %v2431_v18 = vmul.f32 0.0625, %v1631_v2  ;;  %v2447_v24 = vmul.f32 0.0625, %v1679_v54  ;;  %6662 = vmatpush3.msra.mxu0 %v2719_v26  ;;  %v5184_v38 = vsel %vm11167_vm8, %v5183_v45, %v5179_v17  ;;  %v5273_v15 = vsel %vm3453_vm14, %v5272_v16, %v5268_v7  ;;  %v2731_v45 = vld [vmem:[%s11125_s1 + $0x4d8] sm:$0xff]  ;;  %v2766_v16 = vld [vmem:[%s11125_s1 + $0x5f0] sm:$0xff]  ;;  %vm11174_vm8 = vmmov %vm11173_vm6 }
 0x38a   :  { %6663 = vmatprep.subr.mxu0 %v2734_v46  ;;  %v5189_v13 = vsel %vm3446_vm13, %v5188_v22, %v5184_v38  ;;  %v495_v22 = vld [vmem:[%s11124_s0 + $0xf00] sm:$0xff]  ;;  %v2730_v2 = vld [vmem:[%s11125_s1 + $0x4d0] sm:$0xff]  ;;  %v1932_v7 = vsel %vm527_vm0, %v483_v63, 0.0 }
 0x38b   :  { %v5198_v5 = vrot.slane %v2431_v18, %v7278_v9  ;;  %v5277_v20 = vrot.slane %v2447_v24, %v7278_v9  ;;  %1879 = vadd.xlane.f32.xlu1 %v10035_v37  ;;  %1927 = vadd.xlane.f32.xlu0 %v1926_v11  ;;  %v5194_v55 = vsel %vm3453_vm14, %v5193_v48, %v5189_v13  ;;  %v2715_v48 = vld [vmem:[%s11125_s1 + $0x458] sm:$0xff]  ;;  %v2750_v54 = vld [vmem:[%s11125_s1 + $0x570] sm:$0xff]  ;;  %v2765_v24 = vld [vmem:[%s11125_s1 + $0x5e8] sm:$0xff] }
 0x38c   :  { %v1733_v0 = vpop.xlane.xlu1 %1732  ;;  %v1730_v58 = vpop.xlane.xlu0 %1729  ;;  %6664 = vmatpush3.msra.mxu0 %v2718_v40  ;;  %v2714_v18 = vld [vmem:[%s11125_s1 + $0x450] sm:$0xff]  ;;  %v1968_v40 = vsel %vm527_vm0, %v495_v22, 0.0 }
 0x38d   :  { %v2465_v12 = vmul.f32 0.0625, %v1733_v0  ;;  %v2464_v59 = vmul.f32 0.0625, %v1730_v58  ;;  %v5278_v37 = vsel %vm3460_vm15, %v5277_v20, %v5273_v15  ;;  %v5199_v50 = vsel %vm3460_vm15, %v5198_v5, %v5194_v55  ;;  %6665 = vmatprep.subr.mxu0 %v2733_v36  ;;  %v513_v38 = vld [vmem:[%s11124_s0 + $0xf90] sm:$0xff]  ;;  %v496_v20 = vld [vmem:[%s11124_s0 + $0xf08] sm:$0xff] }
 0x38e   :  { %v5919_v31 = vsel %vm5911_vm12, %v5278_v37, %v11168_v51  ;;  %v5918_v44 = vsel %vm5911_vm12, %v5199_v50, %v11169_v56  ;;  %6666 = vmatpush3.msra.mxu0 %v2717_v1  ;;  %v2729_v1 = vld [vmem:[%s11125_s1 + $0x4c8] sm:$0xff]  ;;  %v2022_v33 = vsel %vm527_vm0, %v513_v38, 0.0  ;;  %v1971_v8 = vsel %vm527_vm0, %v496_v20, 0.0  ;;  %v485_v20 = vld [vmem:[%s11124_s0 + $0xeb0] sm:$0xff] }
 0x38f   :  { %v5365_v3 = vrot.slane %v2465_v12, %v11170_v4  ;;  %v5361_v10 = vrot.slane %v2464_v59, %v11171_v41  ;;  %2017 = vadd.xlane.f32.xlu1 %v2016_v49  ;;  %1930 = vadd.xlane.f32.xlu0 %v1929_v28  ;;  %v2749_v0 = vld [vmem:[%s11125_s1 + $0x568] sm:$0xff]  ;;  %v2764_v49 = vld [vmem:[%s11125_s1 + $0x5e0] sm:$0xff]  ;;  %v11172_v28 = vld [vmem:[#allocation7_spill] sm:$0xff] }
 0x390   :  { %6218 = vmatprep.mubr.f32.mxu1 %v5919_v31  ;;  %v1685_v62 = vpop.xlane.xlu1 %1684  ;;  %v1682_v26 = vpop.xlane.xlu0 %1681  ;;  %6667 = vmatprep.subr.mxu0 %v2732_v21  ;;  %v2713_v58 = vld [vmem:[%s11125_s1 + $0x448] sm:$0xff]  ;;  %v2728_v12 = vld [vmem:[%s11125_s1 + $0x4c0] sm:$0xff] }
 0x391   :  { %v5366_v11 = vsel %vm3362_vm1, %v5365_v3, %v5361_v10  ;;  %v2449_v46 = vmul.f32 0.0625, %v1685_v62  ;;  %6219 = vmatmul.mubr.f32.vlgmr.msra.gmra.mxu1 %v5918_v44  ;;  %v2448_v52 = vmul.f32 0.0625, %v1682_v26  ;;  %6668 = vmatpush3.msra.mxu0 %v2716_v25  ;;  %v2748_v59 = vld [vmem:[%s11125_s1 + $0x560] sm:$0xff]  ;;  %v484_v21 = vld [vmem:[%s11124_s0 + $0xea8] sm:$0xff]  ;;  %v2763_v3 = vld [vmem:[%s11125_s1 + $0x5d8] sm:$0xff] }
 0x392   :  { %6669 = vmatprep.subr.mxu0 %v2731_v45  ;;  %6697 = vmatpush3.msra.mxu1 %v2751_v23  ;;  %v467_v44 = vld [vmem:[%s11124_s0 + $0xe20] sm:$0xff]  ;;  %v2727_v10 = vld [vmem:[%s11125_s1 + $0x4b8] sm:$0xff] }
 0x393   :  { %v5286_v29 = vrot.slane %v2449_v46, %v11170_v4  ;;  %v5282_v17 = vrot.slane %v2448_v52, %v11171_v41  ;;  %1882 = vadd.xlane.f32.xlu1 %v1881_v32  ;;  %2020 = vadd.xlane.f32.xlu0 %v2019_v27  ;;  %v2712_v25 = vld [vmem:[%s11125_s1 + $0x440] sm:$0xff]  ;;  %v2747_v45 = vld [vmem:[%s11125_s1 + $0x558] sm:$0xff]  ;;  %v2762_v32 = vld [vmem:[%s11125_s1 + $0x5d0] sm:$0xff]  ;;  %v1884_v46 = vsel %vm527_vm0, %v467_v44, 0.0 }
 0x394   :  { %v1688_v34 = vpop.xlane.xlu1 %1687  ;;  %v1736_v47 = vpop.xlane.xlu0 %1735  ;;  %6670 = vmatpush3.msra.mxu0 %v2715_v48  ;;  %6698 = vmatprep.subr.mxu1 %v2766_v16  ;;  %v2711_v26 = vld [vmem:[%s11125_s1 + $0x438] sm:$0xff]  ;;  %v515_v44 = vld [vmem:[%s11124_s0 + $0xfa0] sm:$0xff] }
 0x395   :  { %v5287_v36 = vsel %vm3362_vm1, %v5286_v29, %v5282_v17  ;;  %v2450_v13 = vmul.f32 0.0625, %v1688_v34  ;;  %v2466_v5 = vmul.f32 0.0625, %v1736_v47  ;;  %6671 = vmatprep.subr.mxu0 %v2730_v2  ;;  %6699 = vmatpush3.msra.mxu1 %v2750_v54  ;;  %v514_v52 = vld [vmem:[%s11124_s0 + $0xf98] sm:$0xff]  ;;  %v497_v2 = vld [vmem:[%s11124_s0 + $0xf10] sm:$0xff] }
 0x396   :  { %6672 = vmatpush3.msra.mxu0 %v2714_v18  ;;  %6700 = vmatprep.subr.mxu1 %v2765_v24  ;;  %v2726_v54 = vld [vmem:[%s11125_s1 + $0x4b0] sm:$0xff]  ;;  %v2761_v18 = vld [vmem:[%s11125_s1 + $0x5c8] sm:$0xff] }
 0x397   :  { %v5291_v15 = vrot.slane %v2450_v13, %v11172_v28  ;;  %v5370_v55 = vrot.slane %v2466_v5, %v11172_v28  ;;  %1969 = vadd.xlane.f32.xlu1 %v1968_v40  ;;  %1933 = vadd.xlane.f32.xlu0 %v1932_v7  ;;  %v2746_v29 = vld [vmem:[%s11125_s1 + $0x550] sm:$0xff]  ;;  %v2725_v40 = vld [vmem:[%s11125_s1 + $0x4a8] sm:$0xff]  ;;  %v2025_v13 = vsel %vm527_vm0, %v514_v52, 0.0  ;;  %v1974_v5 = vsel %vm527_vm0, %v497_v2, 0.0 }
 0x398   :  { %v1826_v37 = vpop.xlane.xlu1 %1825  ;;  %v1739_v50 = vpop.xlane.xlu0 %1738  ;;  %6673 = vmatprep.subr.mxu0 %v2729_v1  ;;  %6701 = vmatpush3.msra.mxu1 %v2749_v0  ;;  %v2710_v17 = vld [vmem:[%s11125_s1 + $0x430] sm:$0xff]  ;;  %v2745_v7 = vld [vmem:[%s11125_s1 + $0x548] sm:$0xff] }
 0x399   :  { %v5292_v51 = vsel %vm3369_vm2, %v5291_v15, %v5287_v36  ;;  %v5371_v31 = vsel %vm3369_vm2, %v5370_v55, %v5366_v11  ;;  %v2467_v56 = vmul.f32 0.0625, %v1739_v50  ;;  %6674 = vmatpush3.msra.mxu0 %v2713_v58  ;;  %6702 = vmatprep.subr.mxu1 %v2764_v49  ;;  %v2496_v23 = vmul.f32 0.0625, %v1826_v37  ;;  %v468_v49 = vld [vmem:[%s11124_s0 + $0xe28] sm:$0xff]  ;;  %v2760_v55 = vld [vmem:[%s11125_s1 + $0x5c0] sm:$0xff]  ;;  %v2742_v52 = vld [vmem:[%s11125_s1 + $0x530] sm:$0xff] }
 0x39a   :  { %6675 = vmatprep.subr.mxu0 %v2728_v12  ;;  %6703 = vmatpush3.msra.mxu1 %v2748_v59  ;;  %v1935_v11 = vsel %vm527_vm0, %v484_v21, 0.0  ;;  %v2709_v15 = vld [vmem:[%s11125_s1 + $0x428] sm:$0xff]  ;;  %v2724_v12 = vld [vmem:[%s11125_s1 + $0x4a0] sm:$0xff] }
 0x39b   :  { %v5375_v62 = vrot.slane %v2467_v56, %v7153_v30  ;;  %2023 = vadd.xlane.f32.xlu1 %v2022_v33  ;;  %1972 = vadd.xlane.f32.xlu0 %v1971_v8  ;;  %v5519_v24 = vrot.slane %v2496_v23, %v11171_v41  ;;  %v2744_v59 = vld [vmem:[%s11125_s1 + $0x540] sm:$0xff]  ;;  %v2759_v8 = vld [vmem:[%s11125_s1 + $0x5b8] sm:$0xff]  ;;  %v1887_v56 = vsel %vm527_vm0, %v468_v49, 0.0 }
 0x39c   :  { %v1691_v27 = vpop.xlane.xlu1 %1690  ;;  %v1829_v22 = vpop.xlane.xlu0 %1828  ;;  %6676 = vmatpush3.msra.mxu0 %v2712_v25  ;;  %6704 = vmatprep.subr.mxu1 %v2763_v3  ;;  %v2708_v33 = vld [vmem:[%s11125_s1 + $0x420] sm:$0xff]  ;;  %v2723_v23 = vld [vmem:[%s11125_s1 + $0x498] sm:$0xff] }
 0x39d   :  { %v5376_v63 = vsel %vm3376_vm3, %v5375_v62, %v5371_v31  ;;  %v2451_v48 = vmul.f32 0.0625, %v1691_v27  ;;  %v2497_v16 = vmul.f32 0.0625, %v1829_v22  ;;  %6677 = vmatprep.subr.mxu0 %v2727_v10  ;;  %6705 = vmatpush3.msra.mxu1 %v2747_v45  ;;  %v1938_v31 = vsel %vm527_vm0, %v485_v20, 0.0  ;;  %v498_v45 = vld [vmem:[%s11124_s0 + $0xf18] sm:$0xff]  ;;  %v2756_v20 = vld [vmem:[%s11125_s1 + $0x5a0] sm:$0xff] }
 0x39e   :  { %6678 = vmatpush3.msra.mxu0 %v2711_v26  ;;  %6706 = vmatprep.subr.mxu1 %v2762_v32  ;;  %v2743_v62 = vld [vmem:[%s11125_s1 + $0x538] sm:$0xff]  ;;  %v2758_v32 = vld [vmem:[%s11125_s1 + $0x5b0] sm:$0xff]  ;;  %v1977_v2 = vsel %vm527_vm0, %v498_v45, 0.0 }
 0x39f   :  { %v5296_v34 = vrot.slane %v2451_v48, %v7153_v30  ;;  %v5523_v47 = vrot.slane %v2497_v16, %v11170_v4  ;;  %1936 = vadd.xlane.f32.xlu1 %v1935_v11  ;;  %1885 = vadd.xlane.f32.xlu0 %v1884_v46  ;;  %v2707_v26 = vld [vmem:[%s11125_s1 + $0x418] sm:$0xff]  ;;  %v2722_v46 = vld [vmem:[%s11125_s1 + $0x490] sm:$0xff]  ;;  %v2028_v16 = vsel %vm527_vm0, %v515_v44, 0.0 }
 0x3a0   :  { %v1778_v38 = vpop.xlane.xlu1 %1777  ;;  %v1742_v36 = vpop.xlane.xlu0 %1741  ;;  %6679 = vmatprep.subr.mxu0 %v2726_v54  ;;  %6707 = vmatpush3.msra.mxu1 %v2746_v29  ;;  %v486_v54 = vld [vmem:[%s11124_s0 + $0xeb8] sm:$0xff] }
 0x3a1   :  { %v10275_v1 = vsel %vm3376_vm3, %v5296_v34, %v5292_v51  ;;  %v5524_v0 = vsel %vm3362_vm1, %v5523_v47, %v5519_v24  ;;  %v2468_v58 = vmul.f32 0.0625, %v1742_v36  ;;  %6680 = vmatpush3.msra.mxu0 %v2710_v17  ;;  %6708 = vmatprep.subr.mxu1 %v2761_v18  ;;  %v2480_v37 = vmul.f32 0.0625, %v1778_v38  ;;  %v469_v34 = vld [vmem:[%s11124_s0 + $0xe30] sm:$0xff]  ;;  %v2741_v38 = vld [vmem:[%s11125_s1 + $0x528] sm:$0xff]  ;;  %v2739_v44 = vld [vmem:[%s11125_s1 + $0x518] sm:$0xff] }
 0x3a2   :  { %6681 = vmatprep.subr.mxu0 %v2725_v40  ;;  %6709 = vmatpush3.msra.mxu1 %v2745_v7  ;;  %v2706_v47 = vld [vmem:[%s11125_s1 + $0x410] sm:$0xff]  ;;  %v2757_v40 = vld [vmem:[%s11125_s1 + $0x5a8] sm:$0xff]  ;;  %v1941_v49 = vsel %vm527_vm0, %v486_v54, 0.0 }
 0x3a3   :  { %v5380_v50 = vrot.slane %v2468_v58, %v7173_v43  ;;  %2026 = vadd.xlane.f32.xlu1 %v2025_v13  ;;  %1975 = vadd.xlane.f32.xlu0 %v1974_v5  ;;  %v5440_v27 = vrot.slane %v2480_v37, %v11171_v41  ;;  %v2721_v7 = vld [vmem:[%s11125_s1 + $0x488] sm:$0xff] }
 0x3a4   :  { %v1832_v21 = vpop.xlane.xlu1 %1831  ;;  %v1781_v51 = vpop.xlane.xlu0 %1780  ;;  %6682 = vmatpush3.msra.mxu0 %v2709_v15  ;;  %6710 = vmatprep.subr.mxu1 %v2760_v55  ;;  %v2705_v5 = vld [vmem:[%s11125_s1 + $0x408] sm:$0xff]  ;;  %v1890_v15 = vsel %vm527_vm0, %v469_v34, 0.0 }
 0x3a5   :  { %v5381_v25 = vsel %vm3383_vm4, %v5380_v50, %v5376_v63  ;;  %v2498_v3 = vmul.f32 0.0625, %v1832_v21  ;;  %v2481_v10 = vmul.f32 0.0625, %v1781_v51  ;;  %6683 = vmatprep.subr.mxu0 %v2724_v12  ;;  %6711 = vmatpush3.msra.mxu1 %v2744_v59  ;;  %v516_v55 = vld [vmem:[%s11124_s0 + $0xfa8] sm:$0xff]  ;;  %v2740_v21 = vld [vmem:[%s11125_s1 + $0x520] sm:$0xff]  ;;  %v2755_v51 = vld [vmem:[%s11125_s1 + $0x598] sm:$0xff] }
 0x3a6   :  { %6684 = vmatpush3.msra.mxu0 %v2708_v33  ;;  %6712 = vmatprep.subr.mxu1 %v2759_v8  ;;  %v499_v33 = vld [vmem:[%s11124_s0 + $0xf20] sm:$0xff]  ;;  %v2737_v34 = vld [vmem:[%s11125_s1 + $0x508] sm:$0xff] }
 0x3a7   :  { %v5528_v22 = vrot.slane %v2498_v3, %v11172_v28  ;;  %v5444_v11 = vrot.slane %v2481_v10, %v11170_v4  ;;  %1939 = vadd.xlane.f32.xlu1 %v1938_v31  ;;  %1888 = vadd.xlane.f32.xlu0 %v1887_v56  ;;  %v2720_v8 = vld [vmem:[%s11125_s1 + $0x480] sm:$0xff]  ;;  %v2031_v10 = vsel %vm527_vm0, %v516_v55, 0.0  ;;  %v1980_v45 = vsel %vm527_vm0, %v499_v33, 0.0 }
 0x3a8   :  { %v1745_v63 = vpop.xlane.xlu1 %1744  ;;  %v1694_v48 = vpop.xlane.xlu0 %1693  ;;  %6685 = vmatprep.subr.mxu0 %v2723_v23  ;;  %6713 = vmatpush3.msra.mxu1 %v2743_v62 }
 0x3a9   :  { %v5529_v29 = vsel %vm3369_vm2, %v5528_v22, %v5524_v0  ;;  %v5445_v17 = vsel %vm3362_vm1, %v5444_v11, %v5440_v27  ;;  %v2469_v18 = vmul.f32 0.0625, %v1745_v63  ;;  %v2452_v24 = vmul.f32 0.0625, %v1694_v48  ;;  %6686 = vmatpush3.msra.mxu0 %v2707_v26  ;;  %6714 = vmatprep.subr.mxu1 %v2758_v32  ;;  %v487_v32 = vld [vmem:[%s11124_s0 + $0xec0] sm:$0xff]  ;;  %v470_v27 = vld [vmem:[%s11124_s0 + $0xe38] sm:$0xff]  ;;  %v2754_v22 = vld [vmem:[%s11125_s1 + $0x590] sm:$0xff] }
 0x3aa   :  { %6687 = vmatprep.subr.mxu0 %v2722_v46  ;;  %6715 = vmatpush3.msra.mxu1 %v2742_v52  ;;  %v2738_v11 = vld [vmem:[%s11125_s1 + $0x510] sm:$0xff]  ;;  %v2753_v52 = vld [vmem:[%s11125_s1 + $0x588] sm:$0xff] }
 0x3ab   :  { %v5385_v36 = vrot.slane %v2469_v18, %v7170_v42  ;;  %v5301_v13 = vrot.slane %v2452_v24, %v7173_v43  ;;  %2029 = vadd.xlane.f32.xlu1 %v2028_v16  ;;  %1978 = vadd.xlane.f32.xlu0 %v1977_v2  ;;  %v1944_v16 = vsel %vm527_vm0, %v487_v32, 0.0  ;;  %v1893_v2 = vsel %vm527_vm0, %v470_v27, 0.0  ;;  %v517_v18 = vld [vmem:[%s11124_s0 + $0xfb0] sm:$0xff]  ;;  %v500_v24 = vld [vmem:[%s11124_s0 + $0xf28] sm:$0xff] }
 0x3ac   :  { %v1835_v0 = vpop.xlane.xlu1 %1834  ;;  %v1784_v58 = vpop.xlane.xlu0 %1783  ;;  %6688 = vmatpush3.msra.mxu0 %v2706_v47  ;;  %6716 = vmatprep.subr.mxu1 %v2757_v40  ;;  %v2752_v47 = vld [vmem:[%s11125_s1 + $0x580] sm:$0xff] }
 0x3ad   :  { %v10366_v12 = vsel %vm3390_vm5, %v5385_v36, %v5381_v25  ;;  %v5302_v59 = vsel %vm3383_vm4, %v5301_v13, %v10275_v1  ;;  %v2499_v37 = vmul.f32 0.0625, %v1835_v0  ;;  %v2482_v50 = vmul.f32 0.0625, %v1784_v58  ;;  %6689 = vmatprep.subr.mxu0 %v2721_v7  ;;  %6717 = vmatpush3.msra.mxu1 %v2741_v38  ;;  %v2704_v1 = vld [vmem:[%s11125_s1 + $0x400] sm:$0xff] }
 0x3ae   :  { %6690 = vmatpush3.msra.mxu0 %v2705_v5  ;;  %6718 = vmatprep.subr.mxu1 %v2756_v20  ;;  %v2736_v38 = vld [vmem:[%s11125_s1 + $0x500] sm:$0xff]  ;;  %v2034_v5 = vsel %vm527_vm0, %v517_v18, 0.0  ;;  %v1983_v20 = vsel %vm527_vm0, %v500_v24, 0.0 }
 0x3af   :  { %v5533_v31 = vrot.slane %v2499_v37, %v7153_v30  ;;  %v5449_v56 = vrot.slane %v2482_v50, %v11172_v28  ;;  %1942 = vadd.xlane.f32.xlu1 %v1941_v49  ;;  %1891 = vadd.xlane.f32.xlu0 %v1890_v15  ;;  %v488_v49 = vld [vmem:[%s11124_s0 + $0xec8] sm:$0xff]  ;;  %v471_v15 = vld [vmem:[%s11124_s0 + $0xe40] sm:$0xff] }
 0x3b0   :  { %v10390_v25 = vpop.xlane.xlu1 %1747  ;;  %v1697_v3 = vpop.xlane.xlu0 %1696  ;;  %6691 = vmatprep.subr.mxu0 %v2720_v8  ;;  %6719 = vmatpush3.msra.mxu1 %v2740_v21  ;;  %v1947_v37 = vsel %vm527_vm0, %v488_v49, 0.0  ;;  %v1896_v50 = vsel %vm527_vm0, %v471_v15, 0.0  ;;  %v518_v21 = vld [vmem:[%s11124_s0 + $0xfb8] sm:$0xff] }
 0x3b1   :  { %v5534_v23 = vsel %vm3376_vm3, %v5533_v31, %v5529_v29  ;;  %v5450_v62 = vsel %vm3369_vm2, %v5449_v56, %v5445_v17  ;;  %v2453_v26 = vmul.f32 0.0625, %v1697_v3  ;;  %6692 = vmatpush3.msra.mxu0 %v2704_v1  ;;  %6720 = vmatprep.subr.mxu1 %v2755_v51  ;;  %v501_v1 = vld [vmem:[%s11124_s0 + $0xf30] sm:$0xff]  ;;  %v2037_v3 = vsel %vm527_vm0, %v518_v21, 0.0  ;;  %v474_v49 = vld [vmem:[%s11124_s0 + $0xe58] sm:$0xff] }
 0x3b2   :  { %6721 = vmatpush3.msra.mxu1 %v2739_v44 }
 0x3b3   :  { %v5306_v46 = vrot.slane %v2453_v26, %v7170_v42  ;;  %2032 = vadd.xlane.f32.xlu1 %v2031_v10  ;;  %1981 = vadd.xlane.f32.xlu0 %v1980_v45  ;;  %v1986_v10 = vsel %vm527_vm0, %v501_v1, 0.0  ;;  %v472_v26 = vld [vmem:[%s11124_s0 + $0xe48] sm:$0xff] }
 0x3b4   :  { %v1838_v63 = vpop.xlane.xlu1 %1837  ;;  %v1787_v48 = vpop.xlane.xlu0 %1786  ;;  %6722 = vmatprep.subr.mxu1 %v2754_v22 }
 0x3b5   :  { %v10415_v54 = vsel %vm3390_vm5, %v5306_v46, %v5302_v59  ;;  %v2500_v29 = vmul.f32 0.0625, %v1838_v63  ;;  %v2483_v17 = vmul.f32 0.0625, %v1787_v48  ;;  %6723 = vmatpush3.msra.mxu1 %v2738_v11  ;;  %v1899_v11 = vsel %vm527_vm0, %v472_v26, 0.0  ;;  %v519_v46 = vld [vmem:[%s11124_s0 + $0xfc0] sm:$0xff] }
 0x3b6   :  { %6724 = vmatprep.subr.mxu1 %v2753_v52  ;;  %v502_v52 = vld [vmem:[%s11124_s0 + $0xf38] sm:$0xff] }
 0x3b7   :  { %v5538_v40 = vrot.slane %v2500_v29, %v7173_v43  ;;  %v5454_v7 = vrot.slane %v2483_v17, %v7153_v30  ;;  %1945 = vadd.xlane.f32.xlu1 %v1944_v16  ;;  %1894 = vadd.xlane.f32.xlu0 %v1893_v2  ;;  %v2040_v16 = vsel %vm527_vm0, %v519_v46, 0.0  ;;  %v1989_v2 = vsel %vm527_vm0, %v502_v52, 0.0  ;;  %v490_v29 = vld [vmem:[%s11124_s0 + $0xed8] sm:$0xff]  ;;  %v473_v17 = vld [vmem:[%s11124_s0 + $0xe50] sm:$0xff] }
 0x3b8   :  { %v10434_v36 = vpop.xlane.xlu1 %1750  ;;  %v10436_v13 = vpop.xlane.xlu0 %1699  ;;  %6725 = vmatpush3.msra.mxu1 %v2737_v34  ;;  %v1953_v34 = vsel %vm527_vm0, %v490_v29, 0.0  ;;  %v505_v46 = vld [vmem:[%s11124_s0 + $0xf50] sm:$0xff] }
 0x3b9   :  { %v5539_v0 = vsel %vm3383_vm4, %v5538_v40, %v5534_v23  ;;  %v5455_v58 = vsel %vm3376_vm3, %v5454_v7, %v5450_v62  ;;  %6726 = vmatprep.subr.mxu1 %v2752_v47  ;;  %v489_v62 = vld [vmem:[%s11124_s0 + $0xed0] sm:$0xff]  ;;  %v1902_v47 = vsel %vm527_vm0, %v473_v17, 0.0  ;;  %v520_v40 = vld [vmem:[%s11124_s0 + $0xfc8] sm:$0xff]  ;;  %v503_v7 = vld [vmem:[%s11124_s0 + $0xf40] sm:$0xff]  ;;  %v1998_v29 = vsel %vm527_vm0, %v505_v46, 0.0 }
 0x3ba   :  { %6727 = vmatpush3.msra.mxu1 %v2736_v38  ;;  %v1950_v22 = vsel %vm527_vm0, %v489_v62, 0.0  ;;  %v493_v17 = vld [vmem:[%s11124_s0 + $0xef0] sm:$0xff] }
 0x3bb   :  { %2035 = vadd.xlane.f32.xlu1 %v2034_v5  ;;  %1984 = vadd.xlane.f32.xlu0 %v1983_v20  ;;  %v2043_v20 = vsel %vm527_vm0, %v520_v40, 0.0 }
 0x3bc   :  { %v1841_v55 = vpop.xlane.xlu1 %1840  ;;  %v1790_v59 = vpop.xlane.xlu0 %1789 }
 0x3bd   :  { %v2501_v33 = vmul.f32 0.0625, %v1841_v55  ;;  %v2484_v8 = vmul.f32 0.0625, %v1790_v59 }
 0x3bf   :  { %v5543_v51 = vrot.slane %v2501_v33, %v7170_v42  ;;  %v5459_v31 = vrot.slane %v2484_v8, %v7173_v43  ;;  %1948 = vadd.xlane.f32.xlu1 %v1947_v37  ;;  %1897 = vadd.xlane.f32.xlu0 %v1896_v50  ;;  %v1905_v37 = vsel %vm527_vm0, %v474_v49, 0.0  ;;  %v521_v50 = vld [vmem:[%s11124_s0 + $0xfd0] sm:$0xff]  ;;  %v504_v33 = vld [vmem:[%s11124_s0 + $0xf48] sm:$0xff]  ;;  %v2799_v49 = vld [vmem:[%s11125_s1 + $0x6f8] sm:$0xff] }
 0x3c0   :  { %v10458_v56 = vpop.xlane.xlu1 %1753  ;;  %v10460_v44 = vpop.xlane.xlu0 %1702  ;;  %v2046_v1 = vsel %vm527_vm0, %v521_v50, 0.0  ;;  %6731 = vmatprep.subr.mxu0 %v2799_v49 }
 0x3c1   :  { %v10465_v45 = vsel %vm3390_vm5, %v5543_v51, %v5539_v0  ;;  %v10468_v23 = vsel %vm3383_vm4, %v5459_v31, %v5455_v58  ;;  %v1992_v0 = vsel %vm527_vm0, %v503_v7, 0.0  ;;  %v491_v58 = vld [vmem:[%s11124_s0 + $0xee0] sm:$0xff]  ;;  %v1995_v51 = vsel %vm527_vm0, %v504_v33, 0.0  ;;  %v492_v31 = vld [vmem:[%s11124_s0 + $0xee8] sm:$0xff] }
 0x3c2   :  { %v1956_v59 = vsel %vm527_vm0, %v491_v58, 0.0  ;;  %v1959_v26 = vsel %vm527_vm0, %v492_v31, 0.0  ;;  %v1962_v7 = vsel %vm527_vm0, %v493_v17, 0.0  ;;  %v506_v58 = vld [vmem:[%s11124_s0 + $0xf58] sm:$0xff]  ;;  %v2471_v31 = vmul.f32 0.0625, %v10434_v36  ;;  %v508_v36 = vld [vmem:[%s11124_s0 + $0xf68] sm:$0xff] }
 0x3c3   :  { %2038 = vadd.xlane.f32.xlu1 %v2037_v3  ;;  %1987 = vadd.xlane.f32.xlu0 %v1986_v10  ;;  %v475_v3 = vld [vmem:[%s11124_s0 + $0xe60] sm:$0xff]  ;;  %v2455_v46 = vmul.f32 0.0625, %v10460_v44 }
 0x3c4   :  { %v10476_v32 = vpop.xlane.xlu1 %1843  ;;  %v10478_v27 = vpop.xlane.xlu0 %1792 }
 0x3c5   :  { %v2502_v49 = vmul.f32 0.0625, %v10476_v32 }
 0x3c7   :  { %1951 = vadd.xlane.f32.xlu1 %v1950_v22  ;;  %1900 = vadd.xlane.f32.xlu0 %v1899_v11  ;;  %v1908_v22 = vsel %vm527_vm0, %v475_v3, 0.0  ;;  %v522_v11 = vld [vmem:[%s11124_s0 + $0xfd8] sm:$0xff]  ;;  %v477_v3 = vld [vmem:[%s11124_s0 + $0xe70] sm:$0xff] }
 0x3c8   :  { %v10488_v63 = vpop.xlane.xlu1 %1756  ;;  %v10490_v48 = vpop.xlane.xlu0 %1705 }
 0x3c9   :  { %v2456_v32 = vmul.f32 0.0625, %v10490_v48  ;;  %v2831_v48 = vld [vmem:[%s11125_s1 + $0x7f8] sm:$0xff] }
 0x3ca   :  { %6766 = vmatprep.subr.mxu1 %v2831_v48 }
 0x3cb   :  { %2041 = vadd.xlane.f32.xlu1 %v2040_v16  ;;  %1990 = vadd.xlane.f32.xlu0 %v1989_v2  ;;  %v2049_v2 = vsel %vm527_vm0, %v522_v11, 0.0  ;;  %v2472_v11 = vmul.f32 0.0625, %v10458_v56  ;;  %v1914_v56 = vsel %vm527_vm0, %v477_v3, 0.0 }
 0x3cc   :  { %v10500_v18 = vpop.xlane.xlu1 %1846  ;;  %v10502_v24 = vpop.xlane.xlu0 %1795 }
 0x3cd   :  { %v5400_v3 = vrot.slane %v2472_v11, %v7219_v19  ;;  %v2503_v11 = vmul.f32 0.0625, %v10500_v18 }
 0x3cf   :  { %1954 = vadd.xlane.f32.xlu1 %v1953_v34  ;;  %1903 = vadd.xlane.f32.xlu0 %v1902_v47  ;;  %v476_v34 = vld [vmem:[%s11124_s0 + $0xe68] sm:$0xff] }
 0x3d0   :  { %v10512_v38 = vpop.xlane.xlu1 %1759  ;;  %v10514_v5 = vpop.xlane.xlu0 %1708 }
 0x3d3   :  { %2044 = vadd.xlane.f32.xlu1 %v2043_v20  ;;  %1993 = vadd.xlane.f32.xlu0 %v1992_v0  ;;  %v1911_v20 = vsel %vm527_vm0, %v476_v34, 0.0  ;;  %v523_v0 = vld [vmem:[%s11124_s0 + $0xfe0] sm:$0xff] }
 0x3d4   :  { %v10524_v15 = vpop.xlane.xlu1 %1849  ;;  %v10526_v55 = vpop.xlane.xlu0 %1798  ;;  %v2052_v33 = vsel %vm527_vm0, %v523_v0, 0.0  ;;  %v525_v0 = vld [vmem:[%s11124_s0 + $0xff0] sm:$0xff] }
 0x3d7   :  { %1957 = vadd.xlane.f32.xlu1 %v1956_v59  ;;  %1906 = vadd.xlane.f32.xlu0 %v1905_v37  ;;  %v2470_v59 = vmul.f32 0.0625, %v10390_v25  ;;  %v524_v25 = vld [vmem:[%s11124_s0 + $0xfe8] sm:$0xff] }
 0x3d8   :  { %v10536_v8 = vpop.xlane.xlu1 %1762  ;;  %v10538_v21 = vpop.xlane.xlu0 %1711 }
 0x3d9   :  { %v5390_v17 = vrot.slane %v2470_v59, %v7195_v61  ;;  %v2485_v59 = vmul.f32 0.0625, %v10478_v27 }
 0x3db   :  { %2047 = vadd.xlane.f32.xlu1 %v2046_v1  ;;  %1996 = vadd.xlane.f32.xlu0 %v1995_v51  ;;  %v2001_v1 = vsel %vm527_vm0, %v506_v58, 0.0  ;;  %v494_v51 = vld [vmem:[%s11124_s0 + $0xef8] sm:$0xff]  ;;  %v5395_v58 = vrot.slane %v2471_v31, %v7192_v60  ;;  %v5316_v31 = vrot.slane %v2455_v46, %v7192_v60 }
 0x3dc   :  { %v10548_v10 = vpop.xlane.xlu1 %1852  ;;  %v10550_v62 = vpop.xlane.xlu0 %1801 }
 0x3df   :  { %1960 = vadd.xlane.f32.xlu1 %v1959_v26  ;;  %1909 = vadd.xlane.f32.xlu0 %v1908_v22  ;;  %v507_v26 = vld [vmem:[%s11124_s0 + $0xf60] sm:$0xff]  ;;  %v2454_v22 = vmul.f32 0.0625, %v10436_v13 }
 0x3e0   :  { %v10560_v52 = vpop.xlane.xlu1 %1765  ;;  %v10562_v16 = vpop.xlane.xlu0 %1714  ;;  %v2004_v44 = vsel %vm527_vm0, %v507_v26, 0.0 }
 0x3e3   :  { %2050 = vadd.xlane.f32.xlu1 %v2049_v2  ;;  %1999 = vadd.xlane.f32.xlu0 %v1998_v29  ;;  %v1965_v2 = vsel %vm527_vm0, %v494_v51, 0.0  ;;  %v478_v29 = vld [vmem:[%s11124_s0 + $0xe78] sm:$0xff]  ;;  %v5311_v51 = vrot.slane %v2454_v22, %v7195_v61  ;;  %v5391_v22 = vsel %vm11173_vm6, %v5390_v17, %v10366_v12  ;;  %v2475_v12 = vmul.f32 0.0625, %v10536_v8 }
 0x3e4   :  { %v10572_v47 = vpop.xlane.xlu1 %1855  ;;  %v10574_v40 = vpop.xlane.xlu0 %1804  ;;  %v1917_v26 = vsel %vm527_vm0, %v478_v29, 0.0  ;;  %vm11175_vm6 = vcmask 589312   ;;  %v5553_v8 = vrot.slane %v2503_v11, %v7192_v60 }
 0x3e5   :  { %v5312_v18 = vsel %vm11174_vm8, %v5311_v51, %v10415_v54  ;;  %v2457_v54 = vmul.f32 0.0625, %v10514_v5  ;;  %v2487_v5 = vmul.f32 0.0625, %v10526_v55 }
 0x3e7   :  { %1963 = vadd.xlane.f32.xlu1 %v1962_v7  ;;  %1912 = vadd.xlane.f32.xlu0 %v1911_v20  ;;  %v2055_v7 = vsel %vm527_vm0, %v524_v25, 0.0  ;;  %v509_v20 = vld [vmem:[%s11124_s0 + $0xf70] sm:$0xff]  ;;  %v2473_v25 = vmul.f32 0.0625, %v10488_v63  ;;  %v2474_v63 = vmul.f32 0.0625, %v10512_v38  ;;  %v5326_v55 = vrot.slane %v2457_v54, %v7213_v14 }
 0x3e8   :  { %v1769_v37 = vpop.xlane.xlu1 %1768  ;;  %v10588_v50 = vpop.xlane.xlu0 %1717  ;;  %v10643_v27 = vsel %vm527_vm0, %v509_v20, 0.0  ;;  %v5464_v20 = vrot.slane %v2485_v59, %v7170_v42 }
 0x3e9   :  { %v5405_v17 = vrot.slane %v2473_v25, %v7213_v14  ;;  %v5410_v59 = vrot.slane %v2474_v63, %v7239_v39 }
 0x3eb   :  { %2053 = vadd.xlane.f32.xlu1 %v2052_v33  ;;  %2002 = vadd.xlane.f32.xlu0 %v2001_v1  ;;  %v2007_v33 = vsel %vm527_vm0, %v508_v36, 0.0  ;;  %v510_v1 = vld [vmem:[%s11124_s0 + $0xf78] sm:$0xff]  ;;  %v2058_v36 = vsel %vm527_vm0, %v525_v0, 0.0  ;;  %v2476_v0 = vmul.f32 0.0625, %v10560_v52 }
 0x3ec   :  { %v10616_v34 = vpop.xlane.xlu1 %1858  ;;  %v10618_v13 = vpop.xlane.xlu0 %1807  ;;  %v10651_v46 = vsel %vm527_vm0, %v510_v1, 0.0  ;;  %v5317_v1 = vsel %vm3404_vm7, %v5316_v31, %v5312_v18  ;;  %v526_v52 = vld [vmem:[%s11124_s0 + $0xff8] sm:$0xff]  ;;  %v2458_v31 = vmul.f32 0.0625, %v10538_v21  ;;  %v2459_v18 = vmul.f32 0.0625, %v10562_v16 }
 0x3ef   :  { %1966 = vadd.xlane.f32.xlu1 %v1965_v2  ;;  %1915 = vadd.xlane.f32.xlu0 %v1914_v56  ;;  %v5396_v2 = vsel %vm3404_vm7, %v5395_v58, %v5391_v22  ;;  %v5548_v56 = vrot.slane %v2502_v49, %v7195_v61  ;;  %v5321_v58 = vrot.slane %v2456_v32, %v7219_v19  ;;  %v2486_v49 = vmul.f32 0.0625, %v10502_v24 }
 0x3f0   :  { %v1772_v43 = vpop.xlane.xlu1 %1771  ;;  %v1721_v29 = vpop.xlane.xlu0 %1720  ;;  %v5401_v38 = vsel %vm11175_vm6, %v5400_v3, %v5396_v2  ;;  %v2477_v22 = vmul.f32 0.0625, %v1769_v37  ;;  %v5465_v37 = vsel %vm3390_vm5, %v5464_v20, %v10468_v23  ;;  %v5420_v32 = vrot.slane %v2476_v0, %v7259_v57 }
 0x3f1   :  { %v2478_v51 = vmul.f32 0.0625, %v1772_v43  ;;  %v5549_v24 = vsel %vm11174_vm8, %v5548_v56, %v10465_v45  ;;  %v5406_v43 = vsel %vm3418_vm9, %v5405_v17, %v5401_v38  ;;  %v5322_v11 = vsel %vm11175_vm6, %v5321_v58, %v5317_v1 }
 0x3f2   :  { %v5469_v63 = vrot.slane %v2486_v49, %v7195_v61  ;;  %v5425_v45 = vrot.slane %v2477_v22, %v7253_v53  ;;  %v2061_v23 = vsel %vm527_vm0, %v526_v52, 0.0  ;;  %v5411_v48 = vsel %vm3425_vm10, %v5410_v59, %v5406_v43 }
 0x3f3   :  { %2056 = vadd.xlane.f32.xlu1 %v2055_v7  ;;  %2005 = vadd.xlane.f32.xlu0 %v2004_v44  ;;  %v2504_v7 = vmul.f32 0.0625, %v10524_v15  ;;  %v5415_v44 = vrot.slane %v2475_v12, %v7233_v35  ;;  %v5554_v15 = vsel %vm3404_vm7, %v5553_v8, %v5549_v24  ;;  %v5430_v21 = vrot.slane %v2478_v51, %v7273_v6 }
 0x3f4   :  { %v10671_v3 = vpop.xlane.xlu1 %1861  ;;  %v10673_v25 = vpop.xlane.xlu0 %1810  ;;  %v5331_v38 = vrot.slane %v2458_v31, %v7239_v39  ;;  %vm11176_vm0 = vcmask 851712   ;;  %v2460_v0 = vmul.f32 0.0625, %v10588_v50  ;;  %v2505_v1 = vmul.f32 0.0625, %v10548_v10 }
 0x3f5   :  { %v5558_v20 = vrot.slane %v2504_v7, %v7219_v19  ;;  %v5416_v12 = vsel %vm3432_vm11, %v5415_v44, %v5411_v48  ;;  %v2461_v49 = vmul.f32 0.0625, %v1721_v29  ;;  %v5470_v16 = vsel %vm11174_vm8, %v5469_v63, %v5465_v37  ;;  %v11177_v7 = vld [vmem:[#allocation13_spill] sm:$0xff]  ;;  %vm11178_vm8 = vmmov %vm11175_vm6 }
 0x3f6   :  { %v5421_v17 = vsel %vm11176_vm0, %v5420_v32, %v5416_v12  ;;  %v5327_v8 = vsel %vm3418_vm9, %v5326_v55, %v5322_v11  ;;  %v2488_v10 = vmul.f32 0.0625, %v10550_v62  ;;  %v5336_v29 = vrot.slane %v2459_v18, %v7233_v35 }
 0x3f7   :  { %2008 = vadd.xlane.f32.xlu1 %v2007_v33  ;;  %1918 = vadd.xlane.f32.xlu0 %v1917_v26  ;;  %v5474_v26 = vrot.slane %v2487_v5, %v7192_v60  ;;  %v5426_v58 = vsel %vm3446_vm13, %v5425_v45, %v5421_v17  ;;  %v5559_v50 = vsel %vm11175_vm6, %v5558_v20, %v5554_v15  ;;  %v2506_v62 = vmul.f32 0.0625, %v10572_v47  ;;  %vm11180_vm6 = vmmov %vm11176_vm0 }
 0x3f8   :  { %v1775_v2 = vpop.xlane.xlu1 %1774  ;;  %v1724_v56 = vpop.xlane.xlu0 %1723  ;;  %v5431_v52 = vsel %vm3453_vm14, %v5430_v21, %v5426_v58  ;;  %v5341_v37 = vrot.slane %v2460_v0, %v7259_v57  ;;  %v5332_v43 = vsel %vm3425_vm10, %v5331_v38, %v5327_v8  ;;  %v5563_v5 = vrot.slane %v2505_v1, %v7213_v14  ;;  %v2783_v58 = vld [vmem:[%s11125_s1 + $0x678] sm:$0xff] }
 0x3f9   :  { %v2479_v33 = vmul.f32 0.0625, %v1775_v2  ;;  %v2462_v59 = vmul.f32 0.0625, %v1724_v56  ;;  %v5346_v31 = vrot.slane %v2461_v49, %v7253_v53  ;;  %v2507_v32 = vmul.f32 0.0625, %v10616_v34  ;;  %v11179_v8 = vld [vmem:[#allocation12_spill] sm:$0xff] }
 0x3fa   :  { %v5479_v15 = vrot.slane %v2488_v10, %v7219_v19  ;;  %v5337_v48 = vsel %vm3432_vm11, %v5336_v29, %v5332_v43  ;;  %v2491_v55 = vmul.f32 0.0625, %v10673_v25  ;;  %v2508_v34 = vmul.f32 0.0625, %v10671_v3  ;;  %v2797_v43 = vld [vmem:[%s11125_s1 + $0x6e8] sm:$0xff] }
 0x3fb   :  { %v5435_v22 = vrot.slane %v2479_v33, %v7278_v9  ;;  %2011 = vadd.xlane.f32.xlu1 %v10643_v27  ;;  %2059 = vadd.xlane.f32.xlu0 %v2058_v36  ;;  %v5475_v27 = vsel %vm3404_vm7, %v5474_v26, %v5470_v16  ;;  %v2489_v36 = vmul.f32 0.0625, %v10574_v40  ;;  %v2490_v40 = vmul.f32 0.0625, %v10618_v13 }
 0x3fc   :  { %v1865_v54 = vpop.xlane.xlu1 %1864  ;;  %v1814_v51 = vpop.xlane.xlu0 %1813  ;;  %v5351_v11 = vrot.slane %v2462_v59, %v7273_v6  ;;  %v5342_v47 = vsel %vm11176_vm0, %v5341_v37, %v5337_v48  ;;  %v5568_v12 = vrot.slane %v2506_v62, %v7239_v39  ;;  %v5573_v18 = vrot.slane %v2507_v32, %v7233_v35 }
 0x3fd   :  { %v5436_v24 = vsel %vm3460_vm15, %v5435_v22, %v5431_v52  ;;  %v2492_v2 = vmul.f32 0.0625, %v1814_v51  ;;  %v5347_v13 = vsel %vm3446_vm13, %v5346_v31, %v5342_v47  ;;  %v2509_v56 = vmul.f32 0.0625, %v1865_v54  ;;  %v2798_v54 = vld [vmem:[%s11125_s1 + $0x6f0] sm:$0xff] }
 0x3fe   :  { %v5921_v44 = vsel %vm5911_vm12, %v5436_v24, %v11177_v7  ;;  %v5489_v25 = vrot.slane %v2490_v40, %v7239_v39  ;;  %v5352_v33 = vsel %vm3453_vm14, %v5351_v11, %v5347_v13  ;;  %v5494_v17 = vrot.slane %v2491_v55, %v7233_v35  ;;  %v2782_v24 = vld [vmem:[%s11125_s1 + $0x670] sm:$0xff]  ;;  %v2781_v40 = vld [vmem:[%s11125_s1 + $0x668] sm:$0xff] }
 0x3ff   :  { %2014 = vadd.xlane.f32.xlu1 %v10651_v46  ;;  %6288 = vmatprep.mubr.f32.mxu0 %v5921_v44  ;;  %v5484_v46 = vrot.slane %v2489_v36, %v7213_v14  ;;  %v5480_v49 = vsel %vm11178_vm8, %v5479_v15, %v5475_v27  ;;  %v5578_v22 = vrot.slane %v2508_v34, %v7259_v57 }
 0x400   :  { %2062 = vadd.xlane.f32.xlu0 %v2061_v23  ;;  %v1817_v63 = vpop.xlane.xlu1 %1816  ;;  %v1727_v45 = vpop.xlane.xlu0 %1726  ;;  %v5499_v16 = vrot.slane %v2492_v2, %v7259_v57  ;;  %v5564_v51 = vsel %vm3418_vm9, %v5563_v5, %v5559_v50  ;;  %v5583_v10 = vrot.slane %v2509_v56, %v7253_v53  ;;  %v2795_v56 = vld [vmem:[%s11125_s1 + $0x6d8] sm:$0xff] }
 0x401   :  { %v2463_v21 = vmul.f32 0.0625, %v1727_v45  ;;  %v2493_v23 = vmul.f32 0.0625, %v1817_v63  ;;  %v5485_v52 = vsel %vm3418_vm9, %v5484_v46, %v5480_v49  ;;  %v5569_v27 = vsel %vm3425_vm10, %v5568_v12, %v5564_v51  ;;  %v2796_v45 = vld [vmem:[%s11125_s1 + $0x6e0] sm:$0xff]  ;;  %v2778_v49 = vld [vmem:[%s11125_s1 + $0x650] sm:$0xff] }
 0x402   :  { %v5490_v36 = vsel %vm3425_vm10, %v5489_v25, %v5485_v52  ;;  %v5574_v5 = vsel %vm3432_vm11, %v5573_v18, %v5569_v27  ;;  %v2780_v46 = vld [vmem:[%s11125_s1 + $0x660] sm:$0xff]  ;;  %v2779_v25 = vld [vmem:[%s11125_s1 + $0x658] sm:$0xff] }
 0x403   :  { %v5356_v20 = vrot.slane %v2463_v21, %v7278_v9  ;;  %v5504_v29 = vrot.slane %v2493_v23, %v7253_v53  ;;  %v5495_v31 = vsel %vm3432_vm11, %v5494_v17, %v5490_v36  ;;  %v5579_v11 = vsel %vm11180_vm6, %v5578_v22, %v5574_v5  ;;  %v2830_v22 = vld [vmem:[%s11125_s1 + $0x7f0] sm:$0xff]  ;;  %v2792_v27 = vld [vmem:[%s11125_s1 + $0x6c0] sm:$0xff]  ;;  %v2813_v36 = vld [vmem:[%s11125_s1 + $0x768] sm:$0xff] }
 0x404   :  { %v1820_v26 = vpop.xlane.xlu1 %1819  ;;  %v1868_v38 = vpop.xlane.xlu0 %1867  ;;  %v5500_v63 = vsel %vm11176_vm0, %v5499_v16, %v5495_v31  ;;  %v5584_v15 = vsel %vm3446_vm13, %v5583_v10, %v5579_v11  ;;  %v2791_v31 = vld [vmem:[%s11125_s1 + $0x6b8] sm:$0xff] }
 0x405   :  { %v2494_v3 = vmul.f32 0.0625, %v1820_v26  ;;  %v2510_v0 = vmul.f32 0.0625, %v1868_v38  ;;  %v5357_v1 = vsel %vm3460_vm15, %v5356_v20, %v5352_v33  ;;  %v5505_v48 = vsel %vm3446_vm13, %v5504_v29, %v5500_v63  ;;  %v11181_v33 = vld [vmem:[#allocation15_spill] sm:$0xff]  ;;  %v11182_v38 = vld [vmem:[#allocation14_spill] sm:$0xff] }
 0x406   :  { %v5920_v59 = vsel %vm5911_vm12, %v5357_v1, %v11179_v8  ;;  %v2777_v29 = vld [vmem:[%s11125_s1 + $0x648] sm:$0xff]  ;;  %v2775_v63 = vld [vmem:[%s11125_s1 + $0x638] sm:$0xff] }
 0x407   :  { %6289 = vmatmul.mubr.f32.vlgmr.msra.gmra.mxu0 %v5920_v59  ;;  %v5509_v37 = vrot.slane %v2494_v3, %v7273_v6  ;;  %v5588_v7 = vrot.slane %v2510_v0, %v7273_v6  ;;  %v2794_v3 = vld [vmem:[%s11125_s1 + $0x6d0] sm:$0xff]  ;;  %v2815_v0 = vld [vmem:[%s11125_s1 + $0x778] sm:$0xff]  ;;  %v2793_v59 = vld [vmem:[%s11125_s1 + $0x6c8] sm:$0xff] }
 0x408   :  { %v1823_v50 = vpop.xlane.xlu1 %1822  ;;  %v1871_v44 = vpop.xlane.xlu0 %1870  ;;  %6732 = vmatpush3.msra.mxu0 %v2783_v58 }
 0x409   :  { %v2495_v62 = vmul.f32 0.0625, %v1823_v50  ;;  %v2511_v32 = vmul.f32 0.0625, %v1871_v44  ;;  %6733 = vmatprep.subr.mxu0 %v2798_v54  ;;  %v5510_v47 = vsel %vm3453_vm14, %v5509_v37, %v5505_v48  ;;  %v5589_v13 = vsel %vm3453_vm14, %v5588_v7, %v5584_v15  ;;  %v2814_v54 = vld [vmem:[%s11125_s1 + $0x770] sm:$0xff]  ;;  %v2776_v50 = vld [vmem:[%s11125_s1 + $0x640] sm:$0xff]  ;;  %v2811_v48 = vld [vmem:[%s11125_s1 + $0x758] sm:$0xff] }
 0x40a   :  { %6734 = vmatpush3.msra.mxu0 %v2782_v24  ;;  %v2829_v24 = vld [vmem:[%s11125_s1 + $0x7e8] sm:$0xff]  ;;  %v2828_v44 = vld [vmem:[%s11125_s1 + $0x7e0] sm:$0xff]  ;;  %v2790_v15 = vld [vmem:[%s11125_s1 + $0x6b0] sm:$0xff] }
 0x40b   :  { %v5514_v55 = vrot.slane %v2495_v62, %v7278_v9  ;;  %v5593_v21 = vrot.slane %v2511_v32, %v7278_v9  ;;  %6735 = vmatprep.subr.mxu0 %v2797_v43  ;;  %v2812_v62 = vld [vmem:[%s11125_s1 + $0x760] sm:$0xff] }
 0x40c   :  { %v1925_v34 = vpop.xlane.xlu1 %1924  ;;  %v1922_v2 = vpop.xlane.xlu0 %1921  ;;  %6736 = vmatpush3.msra.mxu0 %v2781_v40 }
 0x40d   :  { %v2529_v23 = vmul.f32 0.0625, %v1925_v34  ;;  %v2528_v20 = vmul.f32 0.0625, %v1922_v2  ;;  %v5594_v12 = vsel %vm3460_vm15, %v5593_v21, %v5589_v13  ;;  %v5515_v18 = vsel %vm3460_vm15, %v5514_v55, %v5510_v47  ;;  %6737 = vmatprep.subr.mxu0 %v2796_v45  ;;  %v2827_v45 = vld [vmem:[%s11125_s1 + $0x7d8] sm:$0xff]  ;;  %v2826_v47 = vld [vmem:[%s11125_s1 + $0x7d0] sm:$0xff]  ;;  %v2789_v13 = vld [vmem:[%s11125_s1 + $0x6a8] sm:$0xff] }
 0x40e   :  { %v5923_v26 = vsel %vm5911_vm12, %v5594_v12, %v11181_v33  ;;  %v5922_v17 = vsel %vm5911_vm12, %v5515_v18, %v11182_v38  ;;  %6738 = vmatpush3.msra.mxu0 %v2780_v46  ;;  %v2774_v46 = vld [vmem:[%s11125_s1 + $0x630] sm:$0xff]  ;;  %v2773_v18 = vld [vmem:[%s11125_s1 + $0x628] sm:$0xff]  ;;  %v2788_v33 = vld [vmem:[%s11125_s1 + $0x6a0] sm:$0xff] }
 0x40f   :  { %v5681_v1 = vrot.slane %v2529_v23, %v11170_v4  ;;  %v5677_v58 = vrot.slane %v2528_v20, %v11171_v41  ;;  %6358 = vmatprep.mubr.f32.mxu1 %v5923_v26  ;;  %6739 = vmatprep.subr.mxu0 %v2795_v56  ;;  %v2810_v56 = vld [vmem:[%s11125_s1 + $0x750] sm:$0xff]  ;;  %v2809_v26 = vld [vmem:[%s11125_s1 + $0x748] sm:$0xff] }
 0x410   :  { %v1877_v16 = vpop.xlane.xlu1 %1876  ;;  %6359 = vmatmul.mubr.f32.vlgmr.msra.gmra.mxu1 %v5922_v17  ;;  %v1874_v8 = vpop.xlane.xlu0 %1873  ;;  %6740 = vmatpush3.msra.mxu0 %v2779_v25  ;;  %v2825_v25 = vld [vmem:[%s11125_s1 + $0x7c8] sm:$0xff] }
 0x411   :  { %v5682_v51 = vsel %vm3362_vm1, %v5681_v1, %v5677_v58  ;;  %v2513_v52 = vmul.f32 0.0625, %v1877_v16  ;;  %v2512_v10 = vmul.f32 0.0625, %v1874_v8  ;;  %6741 = vmatprep.subr.mxu0 %v2794_v3  ;;  %6767 = vmatpush3.msra.mxu1 %v2815_v0  ;;  %v2772_v3 = vld [vmem:[%s11125_s1 + $0x620] sm:$0xff] }
 0x412   :  { %6742 = vmatpush3.msra.mxu0 %v2778_v49  ;;  %6768 = vmatprep.subr.mxu1 %v2830_v22  ;;  %v2824_v0 = vld [vmem:[%s11125_s1 + $0x7c0] sm:$0xff]  ;;  %v2787_v49 = vld [vmem:[%s11125_s1 + $0x698] sm:$0xff] }
 0x413   :  { %v5602_v37 = vrot.slane %v2513_v52, %v11170_v4  ;;  %v5598_v7 = vrot.slane %v2512_v10, %v11171_v41  ;;  %6743 = vmatprep.subr.mxu0 %v2793_v59  ;;  %6769 = vmatpush3.msra.mxu1 %v2814_v54  ;;  %v2808_v22 = vld [vmem:[%s11125_s1 + $0x740] sm:$0xff]  ;;  %v2771_v54 = vld [vmem:[%s11125_s1 + $0x618] sm:$0xff]  ;;  %v2786_v52 = vld [vmem:[%s11125_s1 + $0x690] sm:$0xff] }
 0x414   :  { %v1880_v43 = vpop.xlane.xlu1 %1879  ;;  %v1928_v5 = vpop.xlane.xlu0 %1927  ;;  %6744 = vmatpush3.msra.mxu0 %v2777_v29  ;;  %6770 = vmatprep.subr.mxu1 %v2829_v24  ;;  %v2807_v10 = vld [vmem:[%s11125_s1 + $0x738] sm:$0xff] }
 0x415   :  { %v5603_v32 = vsel %vm3362_vm1, %v5602_v37, %v5598_v7  ;;  %v2514_v40 = vmul.f32 0.0625, %v1880_v43  ;;  %v2530_v11 = vmul.f32 0.0625, %v1928_v5  ;;  %6745 = vmatprep.subr.mxu0 %v2792_v27  ;;  %6771 = vmatpush3.msra.mxu1 %v2813_v36  ;;  %v2770_v36 = vld [vmem:[%s11125_s1 + $0x610] sm:$0xff] }
 0x416   :  { %6746 = vmatpush3.msra.mxu0 %v2776_v50  ;;  %6772 = vmatprep.subr.mxu1 %v2828_v44  ;;  %v2822_v37 = vld [vmem:[%s11125_s1 + $0x7b0] sm:$0xff]  ;;  %v2785_v44 = vld [vmem:[%s11125_s1 + $0x688] sm:$0xff] }
 0x417   :  { %v5607_v55 = vrot.slane %v2514_v40, %v11172_v28  ;;  %v5686_v21 = vrot.slane %v2530_v11, %v11172_v28  ;;  %6747 = vmatprep.subr.mxu0 %v2791_v31  ;;  %6773 = vmatpush3.msra.mxu1 %v2812_v62  ;;  %v2806_v43 = vld [vmem:[%s11125_s1 + $0x730] sm:$0xff]  ;;  %v2821_v40 = vld [vmem:[%s11125_s1 + $0x7a8] sm:$0xff]  ;;  %v2784_v11 = vld [vmem:[%s11125_s1 + $0x680] sm:$0xff] }
 0x418   :  { %v2018_v34 = vpop.xlane.xlu1 %2017  ;;  %v1931_v2 = vpop.xlane.xlu0 %1930  ;;  %6748 = vmatpush3.msra.mxu0 %v2775_v63  ;;  %6774 = vmatprep.subr.mxu1 %v2827_v45  ;;  %v2805_v63 = vld [vmem:[%s11125_s1 + $0x728] sm:$0xff] }
 0x419   :  { %v5608_v23 = vsel %vm3369_vm2, %v5607_v55, %v5603_v32  ;;  %v5687_v20 = vsel %vm3369_vm2, %v5686_v21, %v5682_v51  ;;  %v2531_v12 = vmul.f32 0.0625, %v1931_v2  ;;  %6749 = vmatprep.subr.mxu0 %v2790_v15  ;;  %6775 = vmatpush3.msra.mxu1 %v2811_v48  ;;  %v2560_v38 = vmul.f32 0.0625, %v2018_v34  ;;  %v2823_v51 = vld [vmem:[%s11125_s1 + $0x7b8] sm:$0xff]  ;;  %v2769_v32 = vld [vmem:[%s11125_s1 + $0x608] sm:$0xff]  ;;  %v2768_v55 = vld [vmem:[%s11125_s1 + $0x600] sm:$0xff] }
 0x41a   :  { %6750 = vmatpush3.msra.mxu0 %v2774_v46  ;;  %6776 = vmatprep.subr.mxu1 %v2826_v47  ;;  %v11183_v15 = vld [vmem:[#allocation8_spill] sm:$0xff] }
 0x41b   :  { %v5691_v17 = vrot.slane %v2531_v12, %v7153_v30  ;;  %6751 = vmatprep.subr.mxu0 %v2789_v13  ;;  %6777 = vmatpush3.msra.mxu1 %v2810_v56  ;;  %v5835_v29 = vrot.slane %v2560_v38, %v11171_v41  ;;  %v2820_v21 = vld [vmem:[%s11125_s1 + $0x7a0] sm:$0xff] }
 0x41c   :  { %v1883_v1 = vpop.xlane.xlu1 %1882  ;;  %v2021_v58 = vpop.xlane.xlu0 %2020  ;;  %6752 = vmatpush3.msra.mxu0 %v2773_v18  ;;  %6778 = vmatprep.subr.mxu1 %v2825_v25  ;;  %v2804_v34 = vld [vmem:[%s11125_s1 + $0x720] sm:$0xff] }
 0x41d   :  { %v5692_v16 = vsel %vm3376_vm3, %v5691_v17, %v5687_v20  ;;  %v2515_v8 = vmul.f32 0.0625, %v1883_v1  ;;  %v2561_v59 = vmul.f32 0.0625, %v2021_v58  ;;  %6753 = vmatprep.subr.mxu0 %v2788_v33  ;;  %6779 = vmatpush3.msra.mxu1 %v2809_v26  ;;  %v2803_v20 = vld [vmem:[%s11125_s1 + $0x718] sm:$0xff]  ;;  %v2818_v33 = vld [vmem:[%s11125_s1 + $0x790] sm:$0xff]  ;;  %v2801_v58 = vld [vmem:[%s11125_s1 + $0x708] sm:$0xff] }
 0x41e   :  { %6754 = vmatpush3.msra.mxu0 %v2772_v3  ;;  %6780 = vmatprep.subr.mxu1 %v2824_v0  ;;  %v2802_v17 = vld [vmem:[%s11125_s1 + $0x710] sm:$0xff] }
 0x41f   :  { %v5612_v24 = vrot.slane %v2515_v8, %v7153_v30  ;;  %v5839_v27 = vrot.slane %v2561_v59, %v11170_v4  ;;  %6755 = vmatprep.subr.mxu0 %v2787_v49  ;;  %6781 = vmatpush3.msra.mxu1 %v2808_v22 }
 0x420   :  { %v1970_v7 = vpop.xlane.xlu1 %1969  ;;  %v1934_v50 = vpop.xlane.xlu0 %1933  ;;  %6756 = vmatpush3.msra.mxu0 %v2771_v54  ;;  %6782 = vmatprep.subr.mxu1 %v2823_v51  ;;  %v2800_v54 = vld [vmem:[%s11125_s1 + $0x700] sm:$0xff] }
 0x421   :  { %v5613_v5 = vsel %vm3376_vm3, %v5612_v24, %v5608_v23  ;;  %v5840_v31 = vsel %vm3362_vm1, %v5839_v27, %v5835_v29  ;;  %v2532_v62 = vmul.f32 0.0625, %v1934_v50  ;;  %6757 = vmatprep.subr.mxu0 %v2786_v52  ;;  %6783 = vmatpush3.msra.mxu1 %v2807_v10  ;;  %v2544_v45 = vmul.f32 0.0625, %v1970_v7  ;;  %v2819_v23 = vld [vmem:[%s11125_s1 + $0x798] sm:$0xff] }
 0x422   :  { %6758 = vmatpush3.msra.mxu0 %v2770_v36  ;;  %6784 = vmatprep.subr.mxu1 %v2822_v37 }
 0x423   :  { %v5696_v48 = vrot.slane %v2532_v62, %v11183_v15  ;;  %6759 = vmatprep.subr.mxu0 %v2785_v44  ;;  %6785 = vmatpush3.msra.mxu1 %v2806_v43  ;;  %v5756_v12 = vrot.slane %v2544_v45, %v11171_v41 }
 0x424   :  { %v2024_v46 = vpop.xlane.xlu1 %2023  ;;  %v1973_v47 = vpop.xlane.xlu0 %1972  ;;  %6760 = vmatpush3.msra.mxu0 %v2769_v32  ;;  %6786 = vmatprep.subr.mxu1 %v2821_v40 }
 0x425   :  { %v5697_v2 = vsel %vm3383_vm4, %v5696_v48, %v5692_v16  ;;  %v2562_v13 = vmul.f32 0.0625, %v2024_v46  ;;  %v2545_v56 = vmul.f32 0.0625, %v1973_v47  ;;  %6761 = vmatprep.subr.mxu0 %v2784_v11  ;;  %6787 = vmatpush3.msra.mxu1 %v2805_v63  ;;  %v2816_v16 = vld [vmem:[%s11125_s1 + $0x780] sm:$0xff] }
 0x426   :  { %6762 = vmatpush3.msra.mxu0 %v2768_v55  ;;  %6788 = vmatprep.subr.mxu1 %v2820_v21 }
 0x427   :  { %v5844_v18 = vrot.slane %v2562_v13, %v11172_v28  ;;  %v5760_v25 = vrot.slane %v2545_v56, %v11170_v4  ;;  %6789 = vmatpush3.msra.mxu1 %v2804_v34  ;;  %v2817_v4 = vld [vmem:[%s11125_s1 + $0x788] sm:$0xff] }
 0x428   :  { %v1937_v26 = vpop.xlane.xlu1 %1936  ;;  %v1886_v38 = vpop.xlane.xlu0 %1885  ;;  %6790 = vmatprep.subr.mxu1 %v2819_v23 }
 0x429   :  { %v5845_v3 = vsel %vm3369_vm2, %v5844_v18, %v5840_v31  ;;  %v5761_v41 = vsel %vm3362_vm1, %v5760_v25, %v5756_v12  ;;  %v2533_v0 = vmul.f32 0.0625, %v1937_v26  ;;  %v2516_v1 = vmul.f32 0.0625, %v1886_v38  ;;  %6791 = vmatpush3.msra.mxu1 %v2803_v20 }
 0x42a   :  { %6792 = vmatprep.subr.mxu1 %v2818_v33  ;;  %vm11184_vm1 = vcmask 458112  }
 0x42b   :  { %v5701_v49 = vrot.slane %v2533_v0, %v7170_v42  ;;  %v5617_v22 = vrot.slane %v2516_v1, %v11183_v15  ;;  %6793 = vmatpush3.msra.mxu1 %v2802_v17  ;;  %vm11190_vm6 = vmmov %vm11184_vm1 }
 0x42c   :  { %v2027_v8 = vpop.xlane.xlu1 %2026  ;;  %v1976_v59 = vpop.xlane.xlu0 %1975  ;;  %6794 = vmatprep.subr.mxu1 %v2817_v4 }
 0x42d   :  { %v10983_v51 = vsel %vm3390_vm5, %v5701_v49, %v5697_v2  ;;  %v5618_v52 = vsel %vm3383_vm4, %v5617_v22, %v5613_v5  ;;  %v2563_v10 = vmul.f32 0.0625, %v2027_v8  ;;  %v2546_v29 = vmul.f32 0.0625, %v1976_v59  ;;  %6795 = vmatpush3.msra.mxu1 %v2801_v58 }
 0x42e   :  { %6796 = vmatprep.subr.mxu1 %v2816_v16 }
 0x42f   :  { %v5849_v24 = vrot.slane %v2563_v10, %v7153_v30  ;;  %v5765_v27 = vrot.slane %v2546_v29, %v11172_v28  ;;  %6797 = vmatpush3.msra.mxu1 %v2800_v54 }
 0x430   :  { %v1940_v36 = vpop.xlane.xlu1 %1939  ;;  %v1889_v37 = vpop.xlane.xlu0 %1888 }
 0x431   :  { %v5850_v7 = vsel %vm3376_vm3, %v5849_v24, %v5845_v3  ;;  %v5766_v50 = vsel %vm3369_vm2, %v5765_v27, %v5761_v41  ;;  %v2517_v44 = vmul.f32 0.0625, %v1889_v37  ;;  %v2534_v54 = vmul.f32 0.0625, %v1940_v36  ;;  %vm11185_vm2 = vmmov %vm11184_vm1 }
 0x433   :  { %v5622_v43 = vrot.slane %v2517_v44, %v7170_v42  ;;  %v5706_v37 = vrot.slane %v2534_v54, %v7195_v61 }
 0x434   :  { %v2030_v31 = vpop.xlane.xlu1 %2029  ;;  %v1979_v5 = vpop.xlane.xlu0 %1978 }
 0x435   :  { %v10992_v62 = vsel %vm3390_vm5, %v5622_v43, %v5618_v52  ;;  %v2564_v32 = vmul.f32 0.0625, %v2030_v31  ;;  %v2547_v40 = vmul.f32 0.0625, %v1979_v5 }
 0x437   :  { %v5854_v11 = vrot.slane %v2564_v32, %v11183_v15  ;;  %v5770_v28 = vrot.slane %v2547_v40, %v7153_v30 }
 0x438   :  { %v1943_v63 = vpop.xlane.xlu1 %1942  ;;  %v1892_v45 = vpop.xlane.xlu0 %1891 }
 0x439   :  { %v5855_v48 = vsel %vm3383_vm4, %v5854_v11, %v5850_v7  ;;  %v5771_v55 = vsel %vm3376_vm3, %v5770_v28, %v5766_v50  ;;  %v2535_v10 = vmul.f32 0.0625, %v1943_v63  ;;  %v2518_v29 = vmul.f32 0.0625, %v1892_v45  ;;  %vm11186_vm3 = vmmov %vm11178_vm8 }
 0x43a   :  { %v5707_v63 = vsel %vm11184_vm1, %v5706_v37, %v10983_v51  ;;  %vm11188_vm8 = vmmov %vm11186_vm3 }
 0x43b   :  { %v5711_v43 = vrot.slane %v2535_v10, %v7192_v60  ;;  %v5627_v5 = vrot.slane %v2518_v29, %v7195_v61 }
 0x43c   :  { %v2033_v21 = vpop.xlane.xlu1 %2032  ;;  %v1982_v46 = vpop.xlane.xlu0 %1981 }
 0x43d   :  { %v2565_v47 = vmul.f32 0.0625, %v2033_v21  ;;  %v2548_v34 = vmul.f32 0.0625, %v1982_v46  ;;  %v5712_v46 = vsel %vm3404_vm7, %v5711_v43, %v5707_v63 }
 0x43f   :  { %v5859_v2 = vrot.slane %v2565_v47, %v7170_v42  ;;  %v5775_v13 = vrot.slane %v2548_v34, %v11183_v15 }
 0x440   :  { %v1946_v56 = vpop.xlane.xlu1 %1945  ;;  %v1895_v23 = vpop.xlane.xlu0 %1894 }
 0x441   :  { %v5860_v20 = vsel %vm3390_vm5, %v5859_v2, %v5855_v48  ;;  %v5776_v30 = vsel %vm3383_vm4, %v5775_v13, %v5771_v55  ;;  %v2536_v24 = vmul.f32 0.0625, %v1946_v56  ;;  %v2519_v7 = vmul.f32 0.0625, %v1895_v23  ;;  %vm11187_vm4 = vmmov %vm11184_vm1 }
 0x442   :  { %v5628_v2 = vsel %vm11185_vm2, %v5627_v5, %v10992_v62 }
 0x443   :  { %v5716_v40 = vrot.slane %v2536_v24, %v7219_v19  ;;  %v5632_v45 = vrot.slane %v2519_v7, %v7192_v60 }
 0x444   :  { %v2036_v12 = vpop.xlane.xlu1 %2035  ;;  %v1985_v18 = vpop.xlane.xlu0 %1984 }
 0x445   :  { %v2566_v50 = vmul.f32 0.0625, %v2036_v12  ;;  %v2549_v31 = vmul.f32 0.0625, %v1985_v18  ;;  %v5717_v51 = vsel %vm11186_vm3, %v5716_v40, %v5712_v46 }
 0x447   :  { %v5864_v48 = vrot.slane %v2566_v50, %v7195_v61  ;;  %v5780_v47 = vrot.slane %v2549_v31, %v7170_v42 }
 0x448   :  { %v1949_v25 = vpop.xlane.xlu1 %1948  ;;  %v1898_v33 = vpop.xlane.xlu0 %1897 }
 0x449   :  { %v2537_v32 = vmul.f32 0.0625, %v1949_v25  ;;  %v2520_v36 = vmul.f32 0.0625, %v1898_v33  ;;  %v5865_v42 = vsel %vm11187_vm4, %v5864_v48, %v5860_v20  ;;  %v5781_v54 = vsel %vm3390_vm5, %v5780_v47, %v5776_v30  ;;  %vm11189_vm5 = vmmov %vm11176_vm0 }
 0x44a   :  { %vm11192_vm0 = vmmov %vm11186_vm3 }
 0x44b   :  { %v5721_v13 = vrot.slane %v2537_v32, %v7213_v14  ;;  %v5637_v56 = vrot.slane %v2520_v36, %v7219_v19  ;;  %vm11193_vm1 = vmmov %vm11192_vm0 }
 0x44c   :  { %v2039_v26 = vpop.xlane.xlu1 %2038  ;;  %v1988_v38 = vpop.xlane.xlu0 %1987  ;;  %vm11196_vm2 = vmmov %vm11189_vm5 }
 0x44d   :  { %v2567_v12 = vmul.f32 0.0625, %v2039_v26  ;;  %v5722_v26 = vsel %vm3418_vm9, %v5721_v13, %v5717_v51 }
 0x44f   :  { %v5869_v50 = vrot.slane %v2567_v12, %v7192_v60 }
 0x450   :  { %v1952_v17 = vpop.xlane.xlu1 %1951  ;;  %v1901_v3 = vpop.xlane.xlu0 %1900 }
 0x451   :  { %v2538_v11 = vmul.f32 0.0625, %v1952_v17  ;;  %v5633_v17 = vsel %vm3404_vm7, %v5632_v45, %v5628_v2  ;;  %v2521_v10 = vmul.f32 0.0625, %v1901_v3  ;;  %v5870_v47 = vsel %vm3404_vm7, %v5869_v50, %v5865_v42 }
 0x452   :  { %v5638_v24 = vsel %vm11188_vm8, %v5637_v56, %v5633_v17 }
 0x453   :  { %v5726_v18 = vrot.slane %v2538_v11, %v7239_v39  ;;  %v5642_v36 = vrot.slane %v2521_v10, %v7213_v14 }
 0x454   :  { %v2042_v41 = vpop.xlane.xlu1 %2041  ;;  %v1991_v0 = vpop.xlane.xlu0 %1990 }
 0x455   :  { %v2551_v37 = vmul.f32 0.0625, %v1991_v0  ;;  %v5727_v20 = vsel %vm3425_vm10, %v5726_v18, %v5722_v26  ;;  %v5643_v13 = vsel %vm3418_vm9, %v5642_v36, %v5638_v24 }
 0x458   :  { %v1955_v1 = vpop.xlane.xlu1 %1954  ;;  %v1904_v4 = vpop.xlane.xlu0 %1903 }
 0x459   :  { %v2539_v55 = vmul.f32 0.0625, %v1955_v1  ;;  %v2550_v1 = vmul.f32 0.0625, %v1988_v38  ;;  %v2522_v38 = vmul.f32 0.0625, %v1904_v4  ;;  %v5790_v4 = vrot.slane %v2551_v37, %v7192_v60 }
 0x45b   :  { %v5731_v62 = vrot.slane %v2539_v55, %v7233_v35  ;;  %v5785_v30 = vrot.slane %v2550_v1, %v7195_v61 }
 0x45c   :  { %v11002_v58 = vpop.xlane.xlu1 %2044  ;;  %v1994_v15 = vpop.xlane.xlu0 %1993 }
 0x45d   :  { %v5732_v3 = vsel %vm3432_vm11, %v5731_v62, %v5727_v20  ;;  %v2569_v45 = vmul.f32 0.0625, %v11002_v58 }
 0x460   :  { %v1958_v49 = vpop.xlane.xlu1 %1957  ;;  %v11004_v22 = vpop.xlane.xlu0 %1906 }
 0x461   :  { %v2540_v34 = vmul.f32 0.0625, %v1958_v49  ;;  %v2523_v11 = vmul.f32 0.0625, %v11004_v22 }
 0x463   :  { %v5736_v29 = vrot.slane %v2540_v34, %v7259_v57  ;;  %v5652_v56 = vrot.slane %v2523_v11, %v7233_v35 }
 0x464   :  { %v11006_v16 = vpop.xlane.xlu1 %2047  ;;  %v11008_v8 = vpop.xlane.xlu0 %1996 }
 0x465   :  { %v5737_v40 = vsel %vm11189_vm5, %v5736_v29, %v5732_v3  ;;  %v2553_v12 = vmul.f32 0.0625, %v11008_v8 }
 0x468   :  { %v1961_v59 = vpop.xlane.xlu1 %1960  ;;  %v11010_v52 = vpop.xlane.xlu0 %1909 }
 0x469   :  { %v2541_v23 = vmul.f32 0.0625, %v1961_v59  ;;  %v2568_v59 = vmul.f32 0.0625, %v2042_v41  ;;  %v2552_v41 = vmul.f32 0.0625, %v1994_v15  ;;  %v2524_v63 = vmul.f32 0.0625, %v11010_v52 }
 0x46a   :  { %v5647_v15 = vrot.slane %v2522_v38, %v7239_v39  ;;  %v5786_v52 = vsel %vm11190_vm6, %v5785_v30, %v5781_v54  ;;  %v2570_v54 = vmul.f32 0.0625, %v11006_v16 }
 0x46b   :  { %v5741_v7 = vrot.slane %v2541_v23, %v7253_v53  ;;  %v5874_v0 = vrot.slane %v2568_v59, %v7219_v19  ;;  %v5795_v22 = vrot.slane %v2552_v41, %v7219_v19  ;;  %v11191_v23 = vld [vmem:[#allocation17_spill] sm:$0xff]  ;;  %v5791_v51 = vsel %vm3404_vm7, %v5790_v4, %v5786_v52  ;;  %vm11194_vm7 = vmmov %vm11189_vm5 }
 0x46c   :  { %v11012_v27 = vpop.xlane.xlu1 %2050  ;;  %v11015_v44 = vpop.xlane.xlu0 %1999  ;;  %v5657_v19 = vrot.slane %v2524_v63, %v7259_v57  ;;  %v5648_v18 = vsel %vm3425_vm10, %v5647_v15, %v5643_v13  ;;  %v5884_v30 = vrot.slane %v2570_v54, %v7239_v39 }
 0x46d   :  { %v2554_v17 = vmul.f32 0.0625, %v11015_v44  ;;  %v5796_v62 = vsel %vm11193_vm1, %v5795_v22, %v5791_v51  ;;  %v5653_v29 = vsel %vm3432_vm11, %v5652_v56, %v5648_v18  ;;  %v2571_v26 = vmul.f32 0.0625, %v11012_v27  ;;  %v6553_v18 = vpop.f32.mrf.mxu0 }
 0x46e   :  { %v5658_v44 = vsel %vm11194_vm7, %v5657_v19, %v5653_v29 }
 0x46f   :  { %v5805_v38 = vrot.slane %v2554_v17, %v7239_v39  ;;  %v11195_v39 = vld [vmem:[#allocation16_spill] sm:$0xff]  ;;  %v6588_v17 = vpop.f32.mrf.mxu1 }
 0x470   :  { %v1964_v28 = vpop.xlane.xlu1 %1963  ;;  %v1913_v21 = vpop.xlane.xlu0 %1912 }
 0x471   :  { %v2542_v25 = vmul.f32 0.0625, %v1964_v28  ;;  %v5742_v28 = vsel %vm3446_vm13, %v5741_v7, %v5737_v40  ;;  %v2525_v48 = vmul.f32 0.0625, %v1913_v21  ;;  %v5875_v21 = vsel %vm11192_vm0, %v5874_v0, %v5870_v47 }
 0x472   :  { %v5800_v7 = vrot.slane %v2553_v12, %v7213_v14  ;;  %v11199_v12 = vld [vmem:[#allocation19_spill] sm:$0xff] }
 0x473   :  { %v5746_v43 = vrot.slane %v2542_v25, %v7273_v6  ;;  %v5879_v25 = vrot.slane %v2569_v45, %v7213_v14  ;;  %v5662_v42 = vrot.slane %v2525_v48, %v7253_v53 }
 0x474   :  { %v11032_v33 = vpop.xlane.xlu1 %2053  ;;  %v2003_v49 = vpop.xlane.xlu0 %2002  ;;  %v5801_v0 = vsel %vm3418_vm9, %v5800_v7, %v5796_v62 }
 0x475   :  { %v5747_v46 = vsel %vm3453_vm14, %v5746_v43, %v5742_v28  ;;  %v2555_v10 = vmul.f32 0.0625, %v2003_v49  ;;  %v2572_v50 = vmul.f32 0.0625, %v11032_v33  ;;  %v5663_v16 = vsel %vm3446_vm13, %v5662_v42, %v5658_v44 }
 0x476   :  { %v5880_v28 = vsel %vm3418_vm9, %v5879_v25, %v5875_v21  ;;  %v5806_v63 = vsel %vm3425_vm10, %v5805_v38, %v5801_v0  ;;  %vm11197_vm9 = vmmov %vm11196_vm2  ;;  %v11198_v21 = vld [vmem:[#allocation18_spill] sm:$0xff]  ;;  %v6554_v25 = vpop.f32.mrf.mxu0 }
 0x477   :  { %v5810_v27 = vrot.slane %v2555_v10, %v7233_v35  ;;  %v5894_v40 = vrot.slane %v2572_v50, %v7259_v57  ;;  %v5885_v45 = vsel %vm3425_vm10, %v5884_v30, %v5880_v28  ;;  %v6555_v10 = vadd.f32 %v6554_v25, %v6553_v18 }
 0x478   :  { %v1967_v31 = vpop.xlane.xlu1 %1966  ;;  %v1916_v32 = vpop.xlane.xlu0 %1915  ;;  %vm6504_vm10 = vcmask 238592  }
 0x479   :  { %v2543_v5 = vmul.f32 0.0625, %v1967_v31  ;;  %v2526_v34 = vmul.f32 0.0625, %v1916_v32  ;;  %v5811_v48 = vsel %vm3432_vm11, %v5810_v27, %v5806_v63  ;;  %v6623_v42 = vpop.f32.mrf.mxu0 }
 0x47b   :  { %v5751_v61 = vrot.slane %v2543_v5, %v7278_v9  ;;  %v5667_v59 = vrot.slane %v2526_v34, %v7273_v6  ;;  %v5889_v5 = vrot.slane %v2571_v26, %v7233_v35 }
 0x47c   :  { %v2057_v55 = vpop.xlane.xlu1 %2056  ;;  %v2006_v60 = vpop.xlane.xlu0 %2005 }
 0x47d   :  { %v5752_v2 = vsel %vm3460_vm15, %v5751_v61, %v5747_v46  ;;  %v2556_v24 = vmul.f32 0.0625, %v2006_v60  ;;  %v2573_v49 = vmul.f32 0.0625, %v2057_v55  ;;  %v5668_v3 = vsel %vm3453_vm14, %v5667_v59, %v5663_v16  ;;  %v6520_v59 = vld [vmem:[%s11126_s2] ss:$0 sm:$0xff]  ;;  %s6824_s2 = smov [#allocation2]  }
 0x47e   :  { %v5925_v58 = vsel %vm5911_vm12, %v5752_v2, %v11191_v23  ;;  %v5890_v47 = vsel %vm3432_vm11, %v5889_v5, %v5885_v45  ;;  %s6512_s5 = sshll.u32 %s6824_s2, 4  ;;  %s6513_s5 = int_to_ptr.vmem [resolvable:$true] %s6512_s5 }
 0x47f   :  { %6428 = vmatprep.mubr.f32.mxu0 %v5925_v58  ;;  %v5815_v33 = vrot.slane %v2556_v24, %v7259_v57  ;;  %v5899_v35 = vrot.slane %v2573_v49, %v7253_v53  ;;  %v5895_v60 = vsel %vm11197_vm9, %v5894_v40, %v5890_v47  ;;  %s6802_s6 = scalar_lea.vmem %s6513_s5, 32  ;;  %p6807_p1 = scmp.lt.s32.totalorder %s6513_s5, %s6513_s5 }
 0x480   :  { %v2009_v1 = vpop.xlane.xlu1 %2008  ;;  %v1919_v8 = vpop.xlane.xlu0 %1918  ;;  %p6803_p0 = scmp.ne.s32.totalorder %s6513_s5, %s6802_s6  ;;  %p6808_p2 = scmp.lt.s32.totalorder %s6802_s6, %s6802_s6 }
 0x481   :  { %v2527_v37 = vmul.f32 0.0625, %v1919_v8  ;;  %v2557_v20 = vmul.f32 0.0625, %v2009_v1  ;;  %v5816_v22 = vsel %vm11196_vm2, %v5815_v33, %v5811_v48  ;;  %v5900_v52 = vsel %vm3446_vm13, %v5899_v35, %v5895_v60  ;;  %v6589_v1 = vpop.f32.mrf.mxu1 }
 0x482   :  { %v6590_v29 = vadd.f32 %v6589_v1, %v6588_v17  ;;  %p6809_p3 = por %p6808_p2, %p6807_p1 }
 0x483   :  { %v5672_v43 = vrot.slane %v2527_v37, %v7278_v9  ;;  %v5820_v11 = vrot.slane %v2557_v20, %v7253_v53  ;;  %v6658_v62 = vpop.f32.mrf.mxu1  ;;  %v6011_v37 = vadd.f32 %v6555_v10, %v6520_v59 }
 0x484   :  { %v2012_v31 = vpop.xlane.xlu1 %2011  ;;  %v2060_v41 = vpop.xlane.xlu0 %2059  ;;  %p6810_p4 = pnand %p6809_p3, %p6803_p0 }
 0x485   :  { %v2558_v14 = vmul.f32 0.0625, %v2012_v31  ;;  %v2574_v32 = vmul.f32 0.0625, %v2060_v41  ;;  %v5673_v36 = vsel %vm3460_vm15, %v5672_v43, %v5668_v3  ;;  %v5821_v53 = vsel %vm3446_vm13, %v5820_v11, %v5816_v22  ;;  %v6659_v8 = vpop.f32.mrf.mxu1 }
 0x486   :  { %v5924_v4 = vsel %vm5911_vm12, %v5673_v36, %v11195_v39  ;;  %v6081_v50 = vadd.f32 %v6590_v29, %v6011_v37  ;;  %v6660_v20 = vadd.f32 %v6659_v8, %v6658_v62 }
 0x487   :  { %v5825_v61 = vrot.slane %v2558_v14, %v7273_v6  ;;  %6429 = vmatmul.mubr.f32.vlgmr.msra.gmra.mxu0 %v5924_v4  ;;  %v5904_v57 = vrot.slane %v2574_v32, %v7273_v6 }
 0x488   :  { %v2015_v15 = vpop.xlane.xlu1 %2014 }
 0x489   :  { %v2559_v55 = vmul.f32 0.0625, %v2015_v15  ;;  %v2063_v46 = vpop.xlane.xlu0 %2062  ;;  %v5826_v13 = vsel %vm3453_vm14, %v5825_v61, %v5821_v53  ;;  %v5905_v6 = vsel %vm3453_vm14, %v5904_v57, %v5900_v52 }
 0x48a   :  { %v2575_v34 = vmul.f32 0.0625, %v2063_v46 }
 0x48b   :  { %v5830_v2 = vrot.slane %v2559_v55, %v7278_v9 }
 0x48c   :  { %v5909_v56 = vrot.slane %v2575_v34, %v7278_v9  ;;  %v6624_v9 = vpop.f32.mrf.mxu0 }
 0x48d   :  { %v5831_v23 = vsel %vm3460_vm15, %v5830_v2, %v5826_v13  ;;  %v6625_v7 = vadd.f32 %v6624_v9, %v6623_v42 }
 0x48e   :  { %v5910_v58 = vsel %vm3460_vm15, %v5909_v56, %v5905_v6  ;;  %v5926_v51 = vsel %vm5911_vm12, %v5831_v23, %v11198_v21 }
 0x48f   :  { %v5927_v19 = vsel %vm5911_vm12, %v5910_v58, %v11199_v12  ;;  %v6151_v16 = vadd.f32 %v6625_v7, %v6081_v50 }
 0x490   :  { %6498 = vmatprep.mubr.f32.mxu1 %v5927_v19 }
 0x491   :  { %6499 = vmatmul.mubr.f32.vlgmr.msra.gmra.mxu1 %v5926_v51  ;;  %v6221_v31 = vadd.f32 %v6660_v20, %v6151_v16 }
 0x4c7   :  { %v6693_v54 = vpop.f32.mrf.mxu0 }
 0x4c9   :  { %v6694_v26 = vpop.f32.mrf.mxu0 }
 0x4ca   :  { %v6695_v49 = vadd.f32 %v6694_v26, %v6693_v54 }
 0x4cc   :  { %v6291_v27 = vadd.f32 %v6695_v49, %v6221_v31 }
 0x4d0   :  { %v6728_v24 = vpop.f32.mrf.mxu1 }
 0x4d2   :  { %v6729_v38 = vpop.f32.mrf.mxu1 }
 0x4d3   :  { %v6730_v30 = vadd.f32 %v6729_v38, %v6728_v24 }
 0x4d5   :  { %v6361_v41 = vadd.f32 %v6730_v30, %v6291_v27 }
 0x547   :  { %v6763_v44 = vpop.f32.mrf.mxu0 }
 0x549   :  { %v6764_v43 = vpop.f32.mrf.mxu0 }
 0x54a   :  { %v6765_v3 = vadd.f32 %v6764_v43, %v6763_v44 }
 0x54c   :  { %v6431_v33 = vadd.f32 %v6765_v3, %v6361_v41 }
 0x551   :  { %v6798_v14 = vpop.f32.mrf.mxu1 }
 0x553   :  { %v6799_v5 = vpop.f32.mrf.mxu1 }
 0x554   :  { %v6800_v32 = vadd.f32 %v6799_v5, %v6798_v14 }
 0x556   :  { %v6501_v36 = vadd.f32 %v6800_v32, %v6431_v33 }
 0x558   :  { %6505 = vst.msk [vmem:[#allocation2] sm:$0x3] %vm6504_vm10, %v6501_v36 }
 0x559   :  { %6813 = shalt.err (!%p6810_p4)
}
 0x55a   :  { %6515 = dma.vmem_to_hbm [thread:$0]  %s6513_s5, 32, %s11127_s3, [#allocation3]  }
 0x55b   :  { %6822 = dma.done.wait [#allocation3], 32  }
 0x55c   :  { %6823 = vsyncadd [#allocation3], 4294967264 }
 0x55d   :  { %6519 = vsyncpa [#allocation3], 1 }

</bundles_post_ra>
